<compile_context>
chip_gen: v7x
topology: tpu7x:2x2x1
jax: 0.10.0
libtpu: 0.0.40
codegen_flags: <defaults>
</compile_context>

<pallas_src>
import functools
import math

import jax
import jax.numpy as jnp
from jax.experimental import pallas as pl
from jax.experimental.pallas import tpu as pltpu


def getpad(in_size, kernel_size, stride, label="same"):
    if label == "same":
        out_size = math.ceil(in_size / stride)
        padding = math.ceil(((out_size - 1) * stride + kernel_size - in_size) / 2)
    else:
        out_size = math.ceil((in_size - kernel_size + 1) / stride)
        padding = math.ceil(((out_size - 1) * stride + kernel_size - in_size) / 2)
    return padding, out_size


def _lalign(p):
    """Sublane-aligned (multiple-of-8) left margin >= the conv left pad."""
    return ((p + 7) // 8) * 8


# ---------------------------------------------------------------------------
# Single fused kernel: conv1 -> conv2 -> conv3 -> LSTM -> classifier
# ---------------------------------------------------------------------------
def _fused_kernel(x_ref,                          # (N, Cin, L) raw NCL input, f32
                  w1_ref, w2_ref, w3_ref,         # packed (K*Cin, 32) bf16 conv weights (BN scale folded)
                  bnp_ref,                        # (3, 3, 32) f32: per conv [bias, scale, shift]
                  wih_ref, whh_ref, bg_ref,       # (4H, L3) bf16, (4H, H) bf16, (4H, 1) f32; gate rows i,f,o,g
                  fc1w_ref, fc1b_ref,             # (H*C, 128) bf16 (rows pre-permuted), (1, 128) f32
                  fc2w_ref, fc2b_ref,             # (128, NC) bf16, (1, NC) f32
                  out_ref,                        # (N, NC) f32
                  pad1_ref, pad2_ref, pad3_ref,   # VMEM scratch: zero-padded conv inputs (8-aligned interiors)
                  xg_ref, hs_ref,                 # VMEM scratch: (N, 4H, C), (N, H, C) f32
                  *, N, Cin, L, C, H, K1, K2, K3,
                  pad1, pad2, pad3, L1h, L2h, L3,
                  fold1, fold2, fold3):
    f32, bf16 = jnp.float32, jnp.bfloat16
    A1, A2, A3 = _lalign(pad1), _lalign(pad2), _lalign(pad3)

    # ---- stage 0: NCL -> channel-last + zero pad, entirely in VMEM ----
    if A1 > 0:
        pad1_ref[:, :A1, :] = jnp.zeros((N, A1, Cin), f32)
    if pad1 > 0:
        pad1_ref[:, A1 + L:, :] = jnp.zeros((N, pad1, Cin), f32)
    for n in range(N):                                            # small static N
        pad1_ref[n, A1:A1 + L, :] = jnp.transpose(x_ref[n], (1, 0))

    def stage_padded(dst_ref, y, a, lin, rpad):
        # zero only the pad borders; interior store is 8-sublane aligned (a % 8 == 0)
        if a > 0:
            dst_ref[:, :a, :] = jnp.zeros((N, a, C), f32)
        if rpad > 0:
            dst_ref[:, a + lin:, :] = jnp.zeros((N, rpad, C), f32)
        dst_ref[:, a:a + lin, :] = y

    def conv_pool_block(src_ref, w_ref, prm, base, lout, K, cin, folded):
        """Conv1d(stride 2) -> +bias -> ReLU -> BatchNorm1d(eval) -> MaxPool1d(2,2),
        as ONE im2col matmul (contraction K*cin) over both pool phases."""
        bias, scale, shift = prm[0:1, :], prm[1:2, :], prm[2:3, :]

        def phase(off):                                           # pool phase offset in {0, 2}
            taps = [src_ref[:, pl.ds(base + off + k, lout, stride=4), :]
                    for k in range(K)]                            # each (N, lout, cin)
            return jnp.concatenate(taps, axis=-1).reshape(N * lout, K * cin)

        patches = jnp.concatenate([phase(0), phase(2)], axis=0)   # (2*N*lout, K*cin)
        acc = jnp.dot(patches.astype(bf16), w_ref[...],
                      preferred_element_type=f32)                 # (2*N*lout, C)
        y = jnp.maximum(acc + bias, 0.0)                          # conv bias + ReLU
        if not folded:
            y = y * scale                                         # BN scale (unfolded fallback)
        y = y + shift                                             # BN shift
        y = jnp.maximum(y[:N * lout], y[N * lout:])               # fused MaxPool1d(2,2)
        return y.reshape(N, lout, C)

    # ---- conv blocks 1 & 2 ----
    y1 = conv_pool_block(pad1_ref, w1_ref, bnp_ref[0], A1 - pad1, L1h, K1, Cin, fold1)
    stage_padded(pad2_ref, y1, A2, L1h, pad2)
    y2 = conv_pool_block(pad2_ref, w2_ref, bnp_ref[1], A2 - pad2, L2h, K2, C, fold2)
    stage_padded(pad3_ref, y2, A3, L2h, pad3)

    # ---- conv block 3 (stride 1, no pool), fused with hoisted all-gate LSTM input projection ----
    prm3 = bnp_ref[2]
    b3, s3, sh3 = prm3[0:1, :], prm3[1:2, :], prm3[2:3, :]
    base3 = A3 - pad3
    for t in range(N):                                            # per LSTM timestep (= sample)
        taps = [pad3_ref[t, base3 + k:base3 + k + L3, :] for k in range(K3)]   # each (L3, C)
        acc = jnp.dot(jnp.concatenate(taps, axis=-1).astype(bf16), w3_ref[...],
                      preferred_element_type=f32)                 # (L3, C)
        y3 = jnp.maximum(acc + b3, 0.0)
        if not fold3:
            y3 = y3 * s3
        y3 = y3 + sh3
        # fused 4-gate input projection (gate rows i,f,o,g), hoisted off the recurrence path
        xg_ref[t] = jnp.dot(wih_ref[...], y3.astype(bf16),
                            preferred_element_type=f32) + bg_ref[...]          # (4H, C)

    # ---- LSTM recurrence (seq = N samples, batch = C conv channels, feat = L3), state transposed ----
    hT = jnp.zeros((H, C), f32)
    cT = jnp.zeros((H, C), f32)
    for t in range(N):
        pre = xg_ref[t] + jnp.dot(whh_ref[...], hT.astype(bf16),
                                  preferred_element_type=f32)     # ONE (4H,H)@(H,C) per step
        ifo = jax.nn.sigmoid(pre[:3 * H])                         # i, f, o gates (H=40 -> 8-aligned rows)
        g = jnp.tanh(pre[3 * H:])
        cT = ifo[H:2 * H] * cT + ifo[:H] * g
        hT = ifo[2 * H:] * jnp.tanh(cT)
        hs_ref[t] = hT

    # ---- classifier: Dropout(eval: identity) -> Flatten -> Linear -> ReLU -> Linear ----
    # TODO(synk): Dropout(0.5) reproduced as identity (eval mode); training RNG mask not modeled.
    flat = hs_ref[...].reshape(N, H * C)                          # fc1 rows pre-permuted to (h, c) order
    z = jnp.maximum(jnp.dot(flat.astype(bf16), fc1w_ref[...],
                            preferred_element_type=f32) + fc1b_ref[...], 0.0)
    out_ref[...] = jnp.dot(z.astype(bf16), fc2w_ref[...],
                           preferred_element_type=f32) + fc2b_ref[...]


# ---------------------------------------------------------------------------
# Parameter init (deterministic, PyTorch layouts, mirrors MyConvLSTM.__init__)
# ---------------------------------------------------------------------------
def init_params(key, num_classes, input_shape):
    _, in_chs, in_size = input_shape
    pad1, o1 = getpad(in_size, 8, 2, "same"); o1 //= 2
    pad2, o2 = getpad(o1, 4, 2, "same"); o2 //= 2
    pad3, _ = getpad(o2, 4, 1, "same")
    lstm_in = (o2 - 4 + 2 * pad3) // 1 + 1                        # nn.LSTM input_size
    H = 40

    # actual tensor lengths through the conv chain
    l1h = ((in_size + 2 * pad1 - 8) // 2 + 1) // 2
    l2h = ((l1h + 2 * pad2 - 4) // 2 + 1) // 2
    l3 = (l2h + 2 * pad3 - 4) // 1 + 1
    assert lstm_in == l3

    ks = list(jax.random.split(key, 20))
    ki = iter(ks)

    def uni(k, shape, bound):
        return jax.random.uniform(k, shape, jnp.float32, -bound, bound)

    def conv_p(cin, cout, ksz):
        bound = 1.0 / math.sqrt(cin * ksz)
        return uni(next(ki), (cout, cin, ksz), bound), uni(next(ki), (cout,), bound)

    params = {}
    params["conv1_w"], params["conv1_b"] = conv_p(in_chs, 32, 8)
    params["conv2_w"], params["conv2_b"] = conv_p(32, 32, 4)
    params["conv3_w"], params["conv3_b"] = conv_p(32, 32, 4)
    for name in ("bn1", "bn2", "bn3"):
        params[name + "_gamma"] = jax.random.uniform(next(ki), (32,), jnp.float32, 0.5, 1.5)
        params[name + "_beta"] = jax.random.uniform(next(ki), (32,), jnp.float32, -0.5, 0.5)
        params[name + "_rmean"] = jnp.zeros((32,), jnp.float32)
        params[name + "_rvar"] = jnp.ones((32,), jnp.float32)
    bl = 1.0 / math.sqrt(H)
    params["lstm_w_ih"] = uni(next(ki), (4 * H, lstm_in), bl)
    params["lstm_w_hh"] = uni(next(ki), (4 * H, H), bl)
    params["lstm_b_ih"] = uni(next(ki), (4 * H,), bl)
    params["lstm_b_hh"] = uni(next(ki), (4 * H,), bl)
    b1 = 1.0 / math.sqrt(32 * H)
    params["fc1_w"] = uni(next(ki), (128, 32 * H), b1)
    params["fc1_b"] = uni(next(ki), (128,), b1)
    b2 = 1.0 / math.sqrt(128)
    params["fc2_w"] = uni(next(ki), (num_classes, 128), b2)
    params["fc2_b"] = uni(next(ki), (128,), b2)[:num_classes] * 0 + uni(ks[-1], (num_classes,), b2)

    cfg = {"pad1": pad1, "pad2": pad2, "pad3": pad3,
           "L1h": l1h, "L2h": l2h, "L3": l3, "H": H}
    return params, cfg


# ---------------------------------------------------------------------------
# One-time (outside jit) repack of PyTorch-layout params into kernel layouts
# ---------------------------------------------------------------------------
def prepare_params(params, eps=1e-5):
    kp, folds, bn_blocks = {}, {}, []
    for i in (1, 2, 3):
        w = params[f"conv{i}_w"]                                  # (Cout, Cin, K)
        b = params[f"conv{i}_b"]
        scale = params[f"bn{i}_gamma"] / jnp.sqrt(params[f"bn{i}_rvar"] + eps)
        shift = params[f"bn{i}_beta"] - params[f"bn{i}_rmean"] * scale
        fold = bool(jnp.all(scale > 0.0))                         # fold only when valid (scale > 0)
        wk = jnp.transpose(w, (2, 1, 0))                          # (K, Cin, Cout), row idx = k*Cin + c
        if fold:
            wk = wk * scale[None, None, :]
            b = b * scale
            scale = jnp.ones_like(scale)
        kp[f"w{i}p"] = wk.reshape(-1, w.shape[0]).astype(jnp.bfloat16)   # (K*Cin, Cout) bf16
        bn_blocks.append(jnp.stack([b, scale, shift], axis=0))    # (3, 32)
        folds[f"fold{i}"] = fold
    kp["bnp"] = jnp.stack(bn_blocks, axis=0)                      # (3, 3, 32) f32

    H = params["lstm_w_hh"].shape[1]
    order = (0, 1, 3, 2)                                          # torch (i,f,g,o) -> kernel (i,f,o,g)

    def regate(a):
        a4 = a.reshape(4, H, -1)
        return jnp.concatenate([a4[j] for j in order], axis=0)

    kp["wih"] = regate(params["lstm_w_ih"]).astype(jnp.bfloat16)  # (4H, L3)
    kp["whh"] = regate(params["lstm_w_hh"]).astype(jnp.bfloat16)  # (4H, H)
    kp["bg"] = regate(params["lstm_b_ih"] + params["lstm_b_hh"])  # (4H, 1) f32

    C = 32
    w1 = params["fc1_w"]                                          # (128, C*H), col idx = c*H + h
    # permute fc1^T rows from PyTorch flatten order (c*H + h) to transposed-state order (h*C + c)
    kp["fc1_wt"] = (jnp.transpose(w1.reshape(w1.shape[0], C, H), (2, 1, 0))
                    .reshape(H * C, w1.shape[0])).astype(jnp.bfloat16)
    kp["fc1_b"] = params["fc1_b"].reshape(1, -1)
    kp["fc2_wt"] = params["fc2_w"].T.astype(jnp.bfloat16)
    kp["fc2_b"] = params["fc2_b"].reshape(1, -1)
    return kp, folds


# ---------------------------------------------------------------------------
# Full forward (matches MyConvLSTM.forward) — single pallas_call
# ---------------------------------------------------------------------------
def my_conv_lstm_forward(kparams, x, *, cfg):
    N, Cin, L = x.shape
    C, H = 32, cfg["H"]
    NC = kparams["fc2_wt"].shape[1]
    pad1, pad2, pad3 = cfg["pad1"], cfg["pad2"], cfg["pad3"]
    L1h, L2h, L3 = cfg["L1h"], cfg["L2h"], cfg["L3"]
    A1, A2, A3 = _lalign(pad1), _lalign(pad2), _lalign(pad3)
    K1 = kparams["w1p"].shape[0] // Cin
    K2 = kparams["w2p"].shape[0] // C
    K3 = kparams["w3p"].shape[0] // C

    kernel = functools.partial(
        _fused_kernel, N=N, Cin=Cin, L=L, C=C, H=H,
        K1=K1, K2=K2, K3=K3,
        pad1=pad1, pad2=pad2, pad3=pad3, L1h=L1h, L2h=L2h, L3=L3,
        fold1=cfg["fold1"], fold2=cfg["fold2"], fold3=cfg["fold3"])

    vmem = pl.BlockSpec(memory_space=pltpu.MemorySpace.VMEM)
    return pl.pallas_call(
        kernel,
        out_shape=jax.ShapeDtypeStruct((N, NC), jnp.float32),
        in_specs=[vmem] * 12,
        out_specs=vmem,
        scratch_shapes=[
            pltpu.VMEM((N, A1 + L + pad1, Cin), jnp.float32),     # padded conv1 input (channel-last)
            pltpu.VMEM((N, A2 + L1h + pad2, C), jnp.float32),     # padded conv2 input
            pltpu.VMEM((N, A3 + L2h + pad3, C), jnp.float32),     # padded conv3 input
            pltpu.VMEM((N, 4 * H, C), jnp.float32),               # hoisted fused-gate input projections
            pltpu.VMEM((N, H, C), jnp.float32),                   # LSTM hidden states (transposed)
        ],
    )(x.astype(jnp.float32),
      kparams["w1p"], kparams["w2p"], kparams["w3p"], kparams["bnp"],
      kparams["wih"], kparams["whh"], kparams["bg"],
      kparams["fc1_wt"], kparams["fc1_b"], kparams["fc2_wt"], kparams["fc2_b"])


if __name__ == "__main__":
    num_classes = 6
    input_shape = (2, 4, 128)          # (batch, in_channels, length)
    key = jax.random.PRNGKey(0)
    pkey, xkey = jax.random.split(key)
    params, cfg = init_params(pkey, num_classes, input_shape)
    kparams, folds = prepare_params(params)
    cfg.update(folds)
    x = jax.random.normal(xkey, input_shape, jnp.float32)

    fwd = jax.jit(functools.partial(my_conv_lstm_forward, cfg=cfg))
    out = jax.block_until_ready(fwd(kparams, x))
    assert out.shape == (input_shape[0], num_classes)
    assert bool(jnp.all(jnp.isfinite(out)))
    print("KERNEL_OK")
</pallas_src>

<mosaic_0001>
module attributes {stable_mosaic.version = 11 : i64} {
  func.func @_fused_kernel(%arg0: memref<2x4x128xf32, #tpu.memory_space<vmem>>, %arg1: memref<32x32xbf16, #tpu.memory_space<vmem>>, %arg2: memref<128x32xbf16, #tpu.memory_space<vmem>>, %arg3: memref<128x32xbf16, #tpu.memory_space<vmem>>, %arg4: memref<3x3x32xf32, #tpu.memory_space<vmem>>, %arg5: memref<160x9xbf16, #tpu.memory_space<vmem>>, %arg6: memref<160x40xbf16, #tpu.memory_space<vmem>>, %arg7: memref<160x1xf32, #tpu.memory_space<vmem>>, %arg8: memref<1280x128xbf16, #tpu.memory_space<vmem>>, %arg9: memref<1x128xf32, #tpu.memory_space<vmem>>, %arg10: memref<128x6xbf16, #tpu.memory_space<vmem>>, %arg11: memref<1x6xf32, #tpu.memory_space<vmem>>, %arg12: memref<2x6xf32, #tpu.memory_space<vmem>>, %arg13: memref<2x139x4xf32, #tpu.memory_space<vmem>>, %arg14: memref<2x41x32xf32, #tpu.memory_space<vmem>>, %arg15: memref<2x18x32xf32, #tpu.memory_space<vmem>>, %arg16: memref<2x160x32xf32, #tpu.memory_space<vmem>>, %arg17: memref<2x40x32xf32, #tpu.memory_space<vmem>>) attributes {dimension_semantics = [], scalar_prefetch = 0 : i64, scratch_operands = 5 : i64, tpu.core_type = #tpu.core_type<tc>} {
    %cst = arith.constant 0.000000e+00 : f32
    %0 = vector.broadcast %cst : f32 to vector<2x8x4xf32>
    %c0 = arith.constant 0 : index
    %c0_0 = arith.constant 0 : index
    %c0_1 = arith.constant 0 : index
    %1 = vector.load %arg13[%c0, %c0_0, %c0_1] : memref<2x139x4xf32, #tpu.memory_space<vmem>>, vector<2x8x4xf32>
    tpu.vector_store %arg13[%c0, %c0_0, %c0_1], %0 {strides = array<i32>} : memref<2x139x4xf32, #tpu.memory_space<vmem>>, vector<2x8x4xf32>,
    %cst_2 = arith.constant 0.000000e+00 : f32
    %2 = vector.broadcast %cst_2 : f32 to vector<2x3x4xf32>
    %c0_3 = arith.constant 0 : index
    %c136 = arith.constant 136 : index
    %c0_4 = arith.constant 0 : index
    %3 = vector.load %arg13[%c0_3, %c136, %c0_4] : memref<2x139x4xf32, #tpu.memory_space<vmem>>, vector<2x3x4xf32>
    tpu.vector_store %arg13[%c0_3, %c136, %c0_4], %2 {strides = array<i32>} : memref<2x139x4xf32, #tpu.memory_space<vmem>>, vector<2x3x4xf32>,
    %c0_5 = arith.constant 0 : index
    %c0_6 = arith.constant 0 : index
    %c0_7 = arith.constant 0 : index
    %4 = vector.load %arg0[%c0_5, %c0_6, %c0_7] : memref<2x4x128xf32, #tpu.memory_space<vmem>>, vector<1x4x128xf32>
    %5 = vector.shape_cast %4 : vector<1x4x128xf32> to vector<4x128xf32>
    %6 = tpu.transpose %5, [1, 0] : vector<4x128xf32> -> vector<128x4xf32>
    %c0_8 = arith.constant 0 : index
    %c8 = arith.constant 8 : index
    %c0_9 = arith.constant 0 : index
    %7 = vector.load %arg13[%c0_8, %c8, %c0_9] : memref<2x139x4xf32, #tpu.memory_space<vmem>>, vector<1x128x4xf32>
    %8 = vector.shape_cast %7 : vector<1x128x4xf32> to vector<128x4xf32>
    %9 = vector.shape_cast %6 : vector<128x4xf32> to vector<1x128x4xf32>
    tpu.vector_store %arg13[%c0_8, %c8, %c0_9], %9 {strides = array<i32>} : memref<2x139x4xf32, #tpu.memory_space<vmem>>, vector<1x128x4xf32>,
    %c1 = arith.constant 1 : index
    %c0_10 = arith.constant 0 : index
    %c0_11 = arith.constant 0 : index
    %10 = vector.load %arg0[%c1, %c0_10, %c0_11] : memref<2x4x128xf32, #tpu.memory_space<vmem>>, vector<1x4x128xf32>
    %11 = vector.shape_cast %10 : vector<1x4x128xf32> to vector<4x128xf32>
    %12 = tpu.transpose %11, [1, 0] : vector<4x128xf32> -> vector<128x4xf32>
    %c1_12 = arith.constant 1 : index
    %c8_13 = arith.constant 8 : index
    %c0_14 = arith.constant 0 : index
    %13 = vector.load %arg13[%c1_12, %c8_13, %c0_14] : memref<2x139x4xf32, #tpu.memory_space<vmem>>, vector<1x128x4xf32>
    %14 = vector.shape_cast %13 : vector<1x128x4xf32> to vector<128x4xf32>
    %15 = vector.shape_cast %12 : vector<128x4xf32> to vector<1x128x4xf32>
    tpu.vector_store %arg13[%c1_12, %c8_13, %c0_14], %15 {strides = array<i32>} : memref<2x139x4xf32, #tpu.memory_space<vmem>>, vector<1x128x4xf32>,
    %c0_15 = arith.constant 0 : index
    %c0_16 = arith.constant 0 : index
    %c0_17 = arith.constant 0 : index
    %16 = vector.load %arg4[%c0_15, %c0_16, %c0_17] : memref<3x3x32xf32, #tpu.memory_space<vmem>>, vector<1x3x32xf32>
    %17 = vector.shape_cast %16 : vector<1x3x32xf32> to vector<3x32xf32>
    %18 = vector.extract_strided_slice %17 {offsets = [0, 0], sizes = [1, 32], strides = [1, 1]} : vector<3x32xf32> to vector<1x32xf32>
    %19 = vector.extract_strided_slice %17 {offsets = [2, 0], sizes = [1, 32], strides = [1, 1]} : vector<3x32xf32> to vector<1x32xf32>
    %c0_18 = arith.constant 0 : index
    %c5 = arith.constant 5 : index
    %c0_19 = arith.constant 0 : index
    %20 = tpu.strided_load %arg13[%c0_18, %c5, %c0_19] {strides = array<i32: 1, 4, 1>} : memref<2x139x4xf32, #tpu.memory_space<vmem>>, vector<2x32x4xf32>
    %c0_20 = arith.constant 0 : index
    %c6 = arith.constant 6 : index
    %c0_21 = arith.constant 0 : index
    %21 = tpu.strided_load %arg13[%c0_20, %c6, %c0_21] {strides = array<i32: 1, 4, 1>} : memref<2x139x4xf32, #tpu.memory_space<vmem>>, vector<2x32x4xf32>
    %c0_22 = arith.constant 0 : index
    %c7 = arith.constant 7 : index
    %c0_23 = arith.constant 0 : index
    %22 = tpu.strided_load %arg13[%c0_22, %c7, %c0_23] {strides = array<i32: 1, 4, 1>} : memref<2x139x4xf32, #tpu.memory_space<vmem>>, vector<2x32x4xf32>
    %c0_24 = arith.constant 0 : index
    %c8_25 = arith.constant 8 : index
    %c0_26 = arith.constant 0 : index
    %23 = tpu.strided_load %arg13[%c0_24, %c8_25, %c0_26] {strides = array<i32: 1, 4, 1>} : memref<2x139x4xf32, #tpu.memory_space<vmem>>, vector<2x32x4xf32>
    %c0_27 = arith.constant 0 : index
    %c9 = arith.constant 9 : index
    %c0_28 = arith.constant 0 : index
    %24 = tpu.strided_load %arg13[%c0_27, %c9, %c0_28] {strides = array<i32: 1, 4, 1>} : memref<2x139x4xf32, #tpu.memory_space<vmem>>, vector<2x32x4xf32>
    %c0_29 = arith.constant 0 : index
    %c10 = arith.constant 10 : index
    %c0_30 = arith.constant 0 : index
    %25 = tpu.strided_load %arg13[%c0_29, %c10, %c0_30] {strides = array<i32: 1, 4, 1>} : memref<2x139x4xf32, #tpu.memory_space<vmem>>, vector<2x32x4xf32>
    %c0_31 = arith.constant 0 : index
    %c11 = arith.constant 11 : index
    %c0_32 = arith.constant 0 : index
    %26 = tpu.strided_load %arg13[%c0_31, %c11, %c0_32] {strides = array<i32: 1, 4, 1>} : memref<2x139x4xf32, #tpu.memory_space<vmem>>, vector<2x32x4xf32>
    %c0_33 = arith.constant 0 : index
    %c12 = arith.constant 12 : index
    %c0_34 = arith.constant 0 : index
    %27 = tpu.strided_load %arg13[%c0_33, %c12, %c0_34] {strides = array<i32: 1, 4, 1>} : memref<2x139x4xf32, #tpu.memory_space<vmem>>, vector<2x32x4xf32>
    %28 = tpu.concatenate %20, %21, %22, %23, %24, %25, %26, %27 in 2 : vector<2x32x4xf32>, vector<2x32x4xf32>, vector<2x32x4xf32>, vector<2x32x4xf32>, vector<2x32x4xf32>, vector<2x32x4xf32>, vector<2x32x4xf32>, vector<2x32x4xf32> -> vector<2x32x32xf32>
    %29 = vector.shape_cast %28 : vector<2x32x32xf32> to vector<64x32xf32>
    %c0_35 = arith.constant 0 : index
    %c7_36 = arith.constant 7 : index
    %c0_37 = arith.constant 0 : index
    %30 = tpu.strided_load %arg13[%c0_35, %c7_36, %c0_37] {strides = array<i32: 1, 4, 1>} : memref<2x139x4xf32, #tpu.memory_space<vmem>>, vector<2x32x4xf32>
    %c0_38 = arith.constant 0 : index
    %c8_39 = arith.constant 8 : index
    %c0_40 = arith.constant 0 : index
    %31 = tpu.strided_load %arg13[%c0_38, %c8_39, %c0_40] {strides = array<i32: 1, 4, 1>} : memref<2x139x4xf32, #tpu.memory_space<vmem>>, vector<2x32x4xf32>
    %c0_41 = arith.constant 0 : index
    %c9_42 = arith.constant 9 : index
    %c0_43 = arith.constant 0 : index
    %32 = tpu.strided_load %arg13[%c0_41, %c9_42, %c0_43] {strides = array<i32: 1, 4, 1>} : memref<2x139x4xf32, #tpu.memory_space<vmem>>, vector<2x32x4xf32>
    %c0_44 = arith.constant 0 : index
    %c10_45 = arith.constant 10 : index
    %c0_46 = arith.constant 0 : index
    %33 = tpu.strided_load %arg13[%c0_44, %c10_45, %c0_46] {strides = array<i32: 1, 4, 1>} : memref<2x139x4xf32, #tpu.memory_space<vmem>>, vector<2x32x4xf32>
    %c0_47 = arith.constant 0 : index
    %c11_48 = arith.constant 11 : index
    %c0_49 = arith.constant 0 : index
    %34 = tpu.strided_load %arg13[%c0_47, %c11_48, %c0_49] {strides = array<i32: 1, 4, 1>} : memref<2x139x4xf32, #tpu.memory_space<vmem>>, vector<2x32x4xf32>
    %c0_50 = arith.constant 0 : index
    %c12_51 = arith.constant 12 : index
    %c0_52 = arith.constant 0 : index
    %35 = tpu.strided_load %arg13[%c0_50, %c12_51, %c0_52] {strides = array<i32: 1, 4, 1>} : memref<2x139x4xf32, #tpu.memory_space<vmem>>, vector<2x32x4xf32>
    %c0_53 = arith.constant 0 : index
    %c13 = arith.constant 13 : index
    %c0_54 = arith.constant 0 : index
    %36 = tpu.strided_load %arg13[%c0_53, %c13, %c0_54] {strides = array<i32: 1, 4, 1>} : memref<2x139x4xf32, #tpu.memory_space<vmem>>, vector<2x32x4xf32>
    %c0_55 = arith.constant 0 : index
    %c14 = arith.constant 14 : index
    %c0_56 = arith.constant 0 : index
    %37 = tpu.strided_load %arg13[%c0_55, %c14, %c0_56] {strides = array<i32: 1, 4, 1>} : memref<2x139x4xf32, #tpu.memory_space<vmem>>, vector<2x32x4xf32>
    %38 = tpu.concatenate %30, %31, %32, %33, %34, %35, %36, %37 in 2 : vector<2x32x4xf32>, vector<2x32x4xf32>, vector<2x32x4xf32>, vector<2x32x4xf32>, vector<2x32x4xf32>, vector<2x32x4xf32>, vector<2x32x4xf32>, vector<2x32x4xf32> -> vector<2x32x32xf32>
    %39 = vector.shape_cast %38 : vector<2x32x32xf32> to vector<64x32xf32>
    %40 = tpu.concatenate %29, %39 in 0 : vector<64x32xf32>, vector<64x32xf32> -> vector<128x32xf32>
    %41 = arith.truncf %40 : vector<128x32xf32> to vector<128x32xbf16>
    %c0_57 = arith.constant 0 : index
    %c0_58 = arith.constant 0 : index
    %42 = vector.load %arg1[%c0_57, %c0_58] : memref<32x32xbf16, #tpu.memory_space<vmem>>, vector<32x32xbf16>
    %cst_59 = arith.constant dense<0.000000e+00> : vector<128x32xf32>
    %43 = tpu.matmul %41, %42, %cst_59 {dimension_numbers = #tpu.dot_dimension_numbers<[1], [0], [0], [1], [0, 0, 1, 1], [], []>} : vector<128x32xbf16>, vector<32x32xbf16>, vector<128x32xf32> -> vector<128x32xf32>
    %44 = vector.broadcast %18 : vector<1x32xf32> to vector<128x32xf32>
    %45 = arith.addf %43, %44 : vector<128x32xf32>
    %cst_60 = arith.constant 0.000000e+00 : f32
    %46 = vector.broadcast %cst_60 : f32 to vector<128x32xf32>
    %47 = arith.maximumf %45, %46 : vector<128x32xf32>
    %48 = vector.broadcast %19 : vector<1x32xf32> to vector<128x32xf32>
    %49 = arith.addf %47, %48 : vector<128x32xf32>
    %50 = vector.extract_strided_slice %49 {offsets = [0, 0], sizes = [64, 32], strides = [1, 1]} : vector<128x32xf32> to vector<64x32xf32>
    %51 = vector.extract_strided_slice %49 {offsets = [64, 0], sizes = [64, 32], strides = [1, 1]} : vector<128x32xf32> to vector<64x32xf32>
    %52 = arith.maximumf %50, %51 : vector<64x32xf32>
    %53 = vector.shape_cast %52 : vector<64x32xf32> to vector<2x32x32xf32>
    %cst_61 = arith.constant 0.000000e+00 : f32
    %54 = vector.broadcast %cst_61 : f32 to vector<2x8x32xf32>
    %c0_62 = arith.constant 0 : index
    %c0_63 = arith.constant 0 : index
    %c0_64 = arith.constant 0 : index
    %55 = vector.load %arg14[%c0_62, %c0_63, %c0_64] : memref<2x41x32xf32, #tpu.memory_space<vmem>>, vector<2x8x32xf32>
    tpu.vector_store %arg14[%c0_62, %c0_63, %c0_64], %54 {strides = array<i32>} : memref<2x41x32xf32, #tpu.memory_space<vmem>>, vector<2x8x32xf32>,
    %cst_65 = arith.constant 0.000000e+00 : f32
    %56 = vector.broadcast %cst_65 : f32 to vector<2x1x32xf32>
    %c0_66 = arith.constant 0 : index
    %c40 = arith.constant 40 : index
    %c0_67 = arith.constant 0 : index
    %57 = vector.load %arg14[%c0_66, %c40, %c0_67] : memref<2x41x32xf32, #tpu.memory_space<vmem>>, vector<2x1x32xf32>
    tpu.vector_store %arg14[%c0_66, %c40, %c0_67], %56 {strides = array<i32>} : memref<2x41x32xf32, #tpu.memory_space<vmem>>, vector<2x1x32xf32>,
    %c0_68 = arith.constant 0 : index
    %c8_69 = arith.constant 8 : index
    %c0_70 = arith.constant 0 : index
    %58 = vector.load %arg14[%c0_68, %c8_69, %c0_70] : memref<2x41x32xf32, #tpu.memory_space<vmem>>, vector<2x32x32xf32>
    tpu.vector_store %arg14[%c0_68, %c8_69, %c0_70], %53 {strides = array<i32>} : memref<2x41x32xf32, #tpu.memory_space<vmem>>, vector<2x32x32xf32>,
    %c1_71 = arith.constant 1 : index
    %c0_72 = arith.constant 0 : index
    %c0_73 = arith.constant 0 : index
    %59 = vector.load %arg4[%c1_71, %c0_72, %c0_73] : memref<3x3x32xf32, #tpu.memory_space<vmem>>, vector<1x3x32xf32>
    %60 = vector.shape_cast %59 : vector<1x3x32xf32> to vector<3x32xf32>
    %61 = vector.extract_strided_slice %60 {offsets = [0, 0], sizes = [1, 32], strides = [1, 1]} : vector<3x32xf32> to vector<1x32xf32>
    %62 = vector.extract_strided_slice %60 {offsets = [2, 0], sizes = [1, 32], strides = [1, 1]} : vector<3x32xf32> to vector<1x32xf32>
    %c0_74 = arith.constant 0 : index
    %c7_75 = arith.constant 7 : index
    %c0_76 = arith.constant 0 : index
    %63 = tpu.strided_load %arg14[%c0_74, %c7_75, %c0_76] {strides = array<i32: 1, 4, 1>} : memref<2x41x32xf32, #tpu.memory_space<vmem>>, vector<2x8x32xf32>
    %c0_77 = arith.constant 0 : index
    %c8_78 = arith.constant 8 : index
    %c0_79 = arith.constant 0 : index
    %64 = tpu.strided_load %arg14[%c0_77, %c8_78, %c0_79] {strides = array<i32: 1, 4, 1>} : memref<2x41x32xf32, #tpu.memory_space<vmem>>, vector<2x8x32xf32>
    %c0_80 = arith.constant 0 : index
    %c9_81 = arith.constant 9 : index
    %c0_82 = arith.constant 0 : index
    %65 = tpu.strided_load %arg14[%c0_80, %c9_81, %c0_82] {strides = array<i32: 1, 4, 1>} : memref<2x41x32xf32, #tpu.memory_space<vmem>>, vector<2x8x32xf32>
    %c0_83 = arith.constant 0 : index
    %c10_84 = arith.constant 10 : index
    %c0_85 = arith.constant 0 : index
    %66 = tpu.strided_load %arg14[%c0_83, %c10_84, %c0_85] {strides = array<i32: 1, 4, 1>} : memref<2x41x32xf32, #tpu.memory_space<vmem>>, vector<2x8x32xf32>
    %67 = tpu.concatenate %63, %64, %65, %66 in 2 : vector<2x8x32xf32>, vector<2x8x32xf32>, vector<2x8x32xf32>, vector<2x8x32xf32> -> vector<2x8x128xf32>
    %68 = vector.shape_cast %67 : vector<2x8x128xf32> to vector<16x128xf32>
    %c0_86 = arith.constant 0 : index
    %c9_87 = arith.constant 9 : index
    %c0_88 = arith.constant 0 : index
    %69 = tpu.strided_load %arg14[%c0_86, %c9_87, %c0_88] {strides = array<i32: 1, 4, 1>} : memref<2x41x32xf32, #tpu.memory_space<vmem>>, vector<2x8x32xf32>
    %c0_89 = arith.constant 0 : index
    %c10_90 = arith.constant 10 : index
    %c0_91 = arith.constant 0 : index
    %70 = tpu.strided_load %arg14[%c0_89, %c10_90, %c0_91] {strides = array<i32: 1, 4, 1>} : memref<2x41x32xf32, #tpu.memory_space<vmem>>, vector<2x8x32xf32>
    %c0_92 = arith.constant 0 : index
    %c11_93 = arith.constant 11 : index
    %c0_94 = arith.constant 0 : index
    %71 = tpu.strided_load %arg14[%c0_92, %c11_93, %c0_94] {strides = array<i32: 1, 4, 1>} : memref<2x41x32xf32, #tpu.memory_space<vmem>>, vector<2x8x32xf32>
    %c0_95 = arith.constant 0 : index
    %c12_96 = arith.constant 12 : index
    %c0_97 = arith.constant 0 : index
    %72 = tpu.strided_load %arg14[%c0_95, %c12_96, %c0_97] {strides = array<i32: 1, 4, 1>} : memref<2x41x32xf32, #tpu.memory_space<vmem>>, vector<2x8x32xf32>
    %73 = tpu.concatenate %69, %70, %71, %72 in 2 : vector<2x8x32xf32>, vector<2x8x32xf32>, vector<2x8x32xf32>, vector<2x8x32xf32> -> vector<2x8x128xf32>
    %74 = vector.shape_cast %73 : vector<2x8x128xf32> to vector<16x128xf32>
    %75 = tpu.concatenate %68, %74 in 0 : vector<16x128xf32>, vector<16x128xf32> -> vector<32x128xf32>
    %76 = arith.truncf %75 : vector<32x128xf32> to vector<32x128xbf16>
    %c0_98 = arith.constant 0 : index
    %c0_99 = arith.constant 0 : index
    %77 = vector.load %arg2[%c0_98, %c0_99] : memref<128x32xbf16, #tpu.memory_space<vmem>>, vector<128x32xbf16>
    %cst_100 = arith.constant dense<0.000000e+00> : vector<32x32xf32>
    %78 = tpu.matmul %76, %77, %cst_100 {dimension_numbers = #tpu.dot_dimension_numbers<[1], [0], [0], [1], [0, 0, 1, 1], [], []>} : vector<32x128xbf16>, vector<128x32xbf16>, vector<32x32xf32> -> vector<32x32xf32>
    %79 = vector.broadcast %61 : vector<1x32xf32> to vector<32x32xf32>
    %80 = arith.addf %78, %79 : vector<32x32xf32>
    %cst_101 = arith.constant 0.000000e+00 : f32
    %81 = vector.broadcast %cst_101 : f32 to vector<32x32xf32>
    %82 = arith.maximumf %80, %81 : vector<32x32xf32>
    %83 = vector.broadcast %62 : vector<1x32xf32> to vector<32x32xf32>
    %84 = arith.addf %82, %83 : vector<32x32xf32>
    %85 = vector.extract_strided_slice %84 {offsets = [0, 0], sizes = [16, 32], strides = [1, 1]} : vector<32x32xf32> to vector<16x32xf32>
    %86 = vector.extract_strided_slice %84 {offsets = [16, 0], sizes = [16, 32], strides = [1, 1]} : vector<32x32xf32> to vector<16x32xf32>
    %87 = arith.maximumf %85, %86 : vector<16x32xf32>
    %88 = vector.shape_cast %87 : vector<16x32xf32> to vector<2x8x32xf32>
    %cst_102 = arith.constant 0.000000e+00 : f32
    %89 = vector.broadcast %cst_102 : f32 to vector<2x8x32xf32>
    %c0_103 = arith.constant 0 : index
    %c0_104 = arith.constant 0 : index
    %c0_105 = arith.constant 0 : index
    %90 = vector.load %arg15[%c0_103, %c0_104, %c0_105] : memref<2x18x32xf32, #tpu.memory_space<vmem>>, vector<2x8x32xf32>
    tpu.vector_store %arg15[%c0_103, %c0_104, %c0_105], %89 {strides = array<i32>} : memref<2x18x32xf32, #tpu.memory_space<vmem>>, vector<2x8x32xf32>,
    %cst_106 = arith.constant 0.000000e+00 : f32
    %91 = vector.broadcast %cst_106 : f32 to vector<2x2x32xf32>
    %c0_107 = arith.constant 0 : index
    %c16 = arith.constant 16 : index
    %c0_108 = arith.constant 0 : index
    %92 = vector.load %arg15[%c0_107, %c16, %c0_108] : memref<2x18x32xf32, #tpu.memory_space<vmem>>, vector<2x2x32xf32>
    tpu.vector_store %arg15[%c0_107, %c16, %c0_108], %91 {strides = array<i32>} : memref<2x18x32xf32, #tpu.memory_space<vmem>>, vector<2x2x32xf32>,
    %c0_109 = arith.constant 0 : index
    %c8_110 = arith.constant 8 : index
    %c0_111 = arith.constant 0 : index
    %93 = vector.load %arg15[%c0_109, %c8_110, %c0_111] : memref<2x18x32xf32, #tpu.memory_space<vmem>>, vector<2x8x32xf32>
    tpu.vector_store %arg15[%c0_109, %c8_110, %c0_111], %88 {strides = array<i32>} : memref<2x18x32xf32, #tpu.memory_space<vmem>>, vector<2x8x32xf32>,
    %c2 = arith.constant 2 : index
    %c0_112 = arith.constant 0 : index
    %c0_113 = arith.constant 0 : index
    %94 = vector.load %arg4[%c2, %c0_112, %c0_113] : memref<3x3x32xf32, #tpu.memory_space<vmem>>, vector<1x3x32xf32>
    %95 = vector.shape_cast %94 : vector<1x3x32xf32> to vector<3x32xf32>
    %96 = vector.extract_strided_slice %95 {offsets = [0, 0], sizes = [1, 32], strides = [1, 1]} : vector<3x32xf32> to vector<1x32xf32>
    %97 = vector.extract_strided_slice %95 {offsets = [2, 0], sizes = [1, 32], strides = [1, 1]} : vector<3x32xf32> to vector<1x32xf32>
    %c0_114 = arith.constant 0 : index
    %c6_115 = arith.constant 6 : index
    %c0_116 = arith.constant 0 : index
    %98 = vector.load %arg15[%c0_114, %c6_115, %c0_116] : memref<2x18x32xf32, #tpu.memory_space<vmem>>, vector<1x9x32xf32>
    %99 = vector.shape_cast %98 : vector<1x9x32xf32> to vector<9x32xf32>
    %c0_117 = arith.constant 0 : index
    %c7_118 = arith.constant 7 : index
    %c0_119 = arith.constant 0 : index
    %100 = vector.load %arg15[%c0_117, %c7_118, %c0_119] : memref<2x18x32xf32, #tpu.memory_space<vmem>>, vector<1x9x32xf32>
    %101 = vector.shape_cast %100 : vector<1x9x32xf32> to vector<9x32xf32>
    %c0_120 = arith.constant 0 : index
    %c8_121 = arith.constant 8 : index
    %c0_122 = arith.constant 0 : index
    %102 = vector.load %arg15[%c0_120, %c8_121, %c0_122] : memref<2x18x32xf32, #tpu.memory_space<vmem>>, vector<1x9x32xf32>
    %103 = vector.shape_cast %102 : vector<1x9x32xf32> to vector<9x32xf32>
    %c0_123 = arith.constant 0 : index
    %c9_124 = arith.constant 9 : index
    %c0_125 = arith.constant 0 : index
    %104 = vector.load %arg15[%c0_123, %c9_124, %c0_125] : memref<2x18x32xf32, #tpu.memory_space<vmem>>, vector<1x9x32xf32>
    %105 = vector.shape_cast %104 : vector<1x9x32xf32> to vector<9x32xf32>
    %106 = tpu.concatenate %99, %101, %103, %105 in 1 : vector<9x32xf32>, vector<9x32xf32>, vector<9x32xf32>, vector<9x32xf32> -> vector<9x128xf32>
    %107 = arith.truncf %106 : vector<9x128xf32> to vector<9x128xbf16>
    %c0_126 = arith.constant 0 : index
    %c0_127 = arith.constant 0 : index
    %108 = vector.load %arg3[%c0_126, %c0_127] : memref<128x32xbf16, #tpu.memory_space<vmem>>, vector<128x32xbf16>
    %cst_128 = arith.constant dense<0.000000e+00> : vector<9x32xf32>
    %109 = tpu.matmul %107, %108, %cst_128 {dimension_numbers = #tpu.dot_dimension_numbers<[1], [0], [0], [1], [0, 0, 1, 1], [], []>} : vector<9x128xbf16>, vector<128x32xbf16>, vector<9x32xf32> -> vector<9x32xf32>
    %110 = vector.broadcast %96 : vector<1x32xf32> to vector<9x32xf32>
    %111 = arith.addf %109, %110 : vector<9x32xf32>
    %cst_129 = arith.constant 0.000000e+00 : f32
    %112 = vector.broadcast %cst_129 : f32 to vector<9x32xf32>
    %113 = arith.maximumf %111, %112 : vector<9x32xf32>
    %114 = vector.broadcast %97 : vector<1x32xf32> to vector<9x32xf32>
    %115 = arith.addf %113, %114 : vector<9x32xf32>
    %c0_130 = arith.constant 0 : index
    %c0_131 = arith.constant 0 : index
    %116 = vector.load %arg5[%c0_130, %c0_131] : memref<160x9xbf16, #tpu.memory_space<vmem>>, vector<160x9xbf16>
    %117 = arith.truncf %115 : vector<9x32xf32> to vector<9x32xbf16>
    %cst_132 = arith.constant dense<0.000000e+00> : vector<160x32xf32>
    %118 = tpu.matmul %116, %117, %cst_132 {dimension_numbers = #tpu.dot_dimension_numbers<[1], [0], [0], [1], [0, 0, 1, 1], [], []>} : vector<160x9xbf16>, vector<9x32xbf16>, vector<160x32xf32> -> vector<160x32xf32>
    %c0_133 = arith.constant 0 : index
    %c0_134 = arith.constant 0 : index
    %119 = vector.load %arg7[%c0_133, %c0_134] : memref<160x1xf32, #tpu.memory_space<vmem>>, vector<160x1xf32>
    %120 = vector.broadcast %119 : vector<160x1xf32> to vector<160x32xf32>
    %121 = arith.addf %118, %120 : vector<160x32xf32>
    %c0_135 = arith.constant 0 : index
    %c0_136 = arith.constant 0 : index
    %c0_137 = arith.constant 0 : index
    %122 = vector.load %arg16[%c0_135, %c0_136, %c0_137] : memref<2x160x32xf32, #tpu.memory_space<vmem>>, vector<1x160x32xf32>
    %123 = vector.shape_cast %122 : vector<1x160x32xf32> to vector<160x32xf32>
    %124 = vector.shape_cast %121 : vector<160x32xf32> to vector<1x160x32xf32>
    tpu.vector_store %arg16[%c0_135, %c0_136, %c0_137], %124 {strides = array<i32>} : memref<2x160x32xf32, #tpu.memory_space<vmem>>, vector<1x160x32xf32>,
    %c1_138 = arith.constant 1 : index
    %c6_139 = arith.constant 6 : index
    %c0_140 = arith.constant 0 : index
    %125 = vector.load %arg15[%c1_138, %c6_139, %c0_140] : memref<2x18x32xf32, #tpu.memory_space<vmem>>, vector<1x9x32xf32>
    %126 = vector.shape_cast %125 : vector<1x9x32xf32> to vector<9x32xf32>
    %c1_141 = arith.constant 1 : index
    %c7_142 = arith.constant 7 : index
    %c0_143 = arith.constant 0 : index
    %127 = vector.load %arg15[%c1_141, %c7_142, %c0_143] : memref<2x18x32xf32, #tpu.memory_space<vmem>>, vector<1x9x32xf32>
    %128 = vector.shape_cast %127 : vector<1x9x32xf32> to vector<9x32xf32>
    %c1_144 = arith.constant 1 : index
    %c8_145 = arith.constant 8 : index
    %c0_146 = arith.constant 0 : index
    %129 = vector.load %arg15[%c1_144, %c8_145, %c0_146] : memref<2x18x32xf32, #tpu.memory_space<vmem>>, vector<1x9x32xf32>
    %130 = vector.shape_cast %129 : vector<1x9x32xf32> to vector<9x32xf32>
    %c1_147 = arith.constant 1 : index
    %c9_148 = arith.constant 9 : index
    %c0_149 = arith.constant 0 : index
    %131 = vector.load %arg15[%c1_147, %c9_148, %c0_149] : memref<2x18x32xf32, #tpu.memory_space<vmem>>, vector<1x9x32xf32>
    %132 = vector.shape_cast %131 : vector<1x9x32xf32> to vector<9x32xf32>
    %133 = tpu.concatenate %126, %128, %130, %132 in 1 : vector<9x32xf32>, vector<9x32xf32>, vector<9x32xf32>, vector<9x32xf32> -> vector<9x128xf32>
    %134 = arith.truncf %133 : vector<9x128xf32> to vector<9x128xbf16>
    %c0_150 = arith.constant 0 : index
    %c0_151 = arith.constant 0 : index
    %135 = vector.load %arg3[%c0_150, %c0_151] : memref<128x32xbf16, #tpu.memory_space<vmem>>, vector<128x32xbf16>
    %cst_152 = arith.constant dense<0.000000e+00> : vector<9x32xf32>
    %136 = tpu.matmul %134, %135, %cst_152 {dimension_numbers = #tpu.dot_dimension_numbers<[1], [0], [0], [1], [0, 0, 1, 1], [], []>} : vector<9x128xbf16>, vector<128x32xbf16>, vector<9x32xf32> -> vector<9x32xf32>
    %137 = vector.broadcast %96 : vector<1x32xf32> to vector<9x32xf32>
    %138 = arith.addf %136, %137 : vector<9x32xf32>
    %cst_153 = arith.constant 0.000000e+00 : f32
    %139 = vector.broadcast %cst_153 : f32 to vector<9x32xf32>
    %140 = arith.maximumf %138, %139 : vector<9x32xf32>
    %141 = vector.broadcast %97 : vector<1x32xf32> to vector<9x32xf32>
    %142 = arith.addf %140, %141 : vector<9x32xf32>
    %c0_154 = arith.constant 0 : index
    %c0_155 = arith.constant 0 : index
    %143 = vector.load %arg5[%c0_154, %c0_155] : memref<160x9xbf16, #tpu.memory_space<vmem>>, vector<160x9xbf16>
    %144 = arith.truncf %142 : vector<9x32xf32> to vector<9x32xbf16>
    %cst_156 = arith.constant dense<0.000000e+00> : vector<160x32xf32>
    %145 = tpu.matmul %143, %144, %cst_156 {dimension_numbers = #tpu.dot_dimension_numbers<[1], [0], [0], [1], [0, 0, 1, 1], [], []>} : vector<160x9xbf16>, vector<9x32xbf16>, vector<160x32xf32> -> vector<160x32xf32>
    %c0_157 = arith.constant 0 : index
    %c0_158 = arith.constant 0 : index
    %146 = vector.load %arg7[%c0_157, %c0_158] : memref<160x1xf32, #tpu.memory_space<vmem>>, vector<160x1xf32>
    %147 = vector.broadcast %146 : vector<160x1xf32> to vector<160x32xf32>
    %148 = arith.addf %145, %147 : vector<160x32xf32>
    %c1_159 = arith.constant 1 : index
    %c0_160 = arith.constant 0 : index
    %c0_161 = arith.constant 0 : index
    %149 = vector.load %arg16[%c1_159, %c0_160, %c0_161] : memref<2x160x32xf32, #tpu.memory_space<vmem>>, vector<1x160x32xf32>
    %150 = vector.shape_cast %149 : vector<1x160x32xf32> to vector<160x32xf32>
    %151 = vector.shape_cast %148 : vector<160x32xf32> to vector<1x160x32xf32>
    tpu.vector_store %arg16[%c1_159, %c0_160, %c0_161], %151 {strides = array<i32>} : memref<2x160x32xf32, #tpu.memory_space<vmem>>, vector<1x160x32xf32>,
    %cst_162 = arith.constant 0.000000e+00 : f32
    %152 = vector.broadcast %cst_162 : f32 to vector<40x32xf32>
    %cst_163 = arith.constant 0.000000e+00 : f32
    %153 = vector.broadcast %cst_163 : f32 to vector<40x32xf32>
    %c0_164 = arith.constant 0 : index
    %c0_165 = arith.constant 0 : index
    %c0_166 = arith.constant 0 : index
    %154 = vector.load %arg16[%c0_164, %c0_165, %c0_166] : memref<2x160x32xf32, #tpu.memory_space<vmem>>, vector<1x160x32xf32>
    %155 = vector.shape_cast %154 : vector<1x160x32xf32> to vector<160x32xf32>
    %c0_167 = arith.constant 0 : index
    %c0_168 = arith.constant 0 : index
    %156 = vector.load %arg6[%c0_167, %c0_168] : memref<160x40xbf16, #tpu.memory_space<vmem>>, vector<160x40xbf16>
    %157 = arith.truncf %152 : vector<40x32xf32> to vector<40x32xbf16>
    %cst_169 = arith.constant dense<0.000000e+00> : vector<160x32xf32>
    %158 = tpu.matmul %156, %157, %cst_169 {dimension_numbers = #tpu.dot_dimension_numbers<[1], [0], [0], [1], [0, 0, 1, 1], [], []>} : vector<160x40xbf16>, vector<40x32xbf16>, vector<160x32xf32> -> vector<160x32xf32>
    %159 = arith.addf %155, %158 : vector<160x32xf32>
    %160 = vector.extract_strided_slice %159 {offsets = [0, 0], sizes = [120, 32], strides = [1, 1]} : vector<160x32xf32> to vector<120x32xf32>
    %161 = arith.negf %160 : vector<120x32xf32>
    %162 = math.exp %161 : vector<120x32xf32>
    %cst_170 = arith.constant 1.000000e+00 : f32
    %163 = vector.broadcast %cst_170 : f32 to vector<120x32xf32>
    %164 = arith.addf %163, %162 : vector<120x32xf32>
    %165 = arith.divf %163, %164 : vector<120x32xf32>
    %166 = vector.extract_strided_slice %159 {offsets = [120, 0], sizes = [40, 32], strides = [1, 1]} : vector<160x32xf32> to vector<40x32xf32>
    %167 = math.tanh %166 : vector<40x32xf32>
    %168 = vector.extract_strided_slice %165 {offsets = [40, 0], sizes = [40, 32], strides = [1, 1]} : vector<120x32xf32> to vector<40x32xf32>
    %169 = arith.mulf %168, %153 : vector<40x32xf32>
    %170 = vector.extract_strided_slice %165 {offsets = [0, 0], sizes = [40, 32], strides = [1, 1]} : vector<120x32xf32> to vector<40x32xf32>
    %171 = arith.mulf %170, %167 : vector<40x32xf32>
    %172 = arith.addf %169, %171 : vector<40x32xf32>
    %173 = vector.extract_strided_slice %165 {offsets = [80, 0], sizes = [40, 32], strides = [1, 1]} : vector<120x32xf32> to vector<40x32xf32>
    %174 = math.tanh %172 : vector<40x32xf32>
    %175 = arith.mulf %173, %174 : vector<40x32xf32>
    %c0_171 = arith.constant 0 : index
    %c0_172 = arith.constant 0 : index
    %c0_173 = arith.constant 0 : index
    %176 = vector.load %arg17[%c0_171, %c0_172, %c0_173] : memref<2x40x32xf32, #tpu.memory_space<vmem>>, vector<1x40x32xf32>
    %177 = vector.shape_cast %176 : vector<1x40x32xf32> to vector<40x32xf32>
    %178 = vector.shape_cast %175 : vector<40x32xf32> to vector<1x40x32xf32>
    tpu.vector_store %arg17[%c0_171, %c0_172, %c0_173], %178 {strides = array<i32>} : memref<2x40x32xf32, #tpu.memory_space<vmem>>, vector<1x40x32xf32>,
    %c1_174 = arith.constant 1 : index
    %c0_175 = arith.constant 0 : index
    %c0_176 = arith.constant 0 : index
    %179 = vector.load %arg16[%c1_174, %c0_175, %c0_176] : memref<2x160x32xf32, #tpu.memory_space<vmem>>, vector<1x160x32xf32>
    %180 = vector.shape_cast %179 : vector<1x160x32xf32> to vector<160x32xf32>
    %c0_177 = arith.constant 0 : index
    %c0_178 = arith.constant 0 : index
    %181 = vector.load %arg6[%c0_177, %c0_178] : memref<160x40xbf16, #tpu.memory_space<vmem>>, vector<160x40xbf16>
    %182 = arith.truncf %175 : vector<40x32xf32> to vector<40x32xbf16>
    %cst_179 = arith.constant dense<0.000000e+00> : vector<160x32xf32>
    %183 = tpu.matmul %181, %182, %cst_179 {dimension_numbers = #tpu.dot_dimension_numbers<[1], [0], [0], [1], [0, 0, 1, 1], [], []>} : vector<160x40xbf16>, vector<40x32xbf16>, vector<160x32xf32> -> vector<160x32xf32>
    %184 = arith.addf %180, %183 : vector<160x32xf32>
    %185 = vector.extract_strided_slice %184 {offsets = [0, 0], sizes = [120, 32], strides = [1, 1]} : vector<160x32xf32> to vector<120x32xf32>
    %186 = arith.negf %185 : vector<120x32xf32>
    %187 = math.exp %186 : vector<120x32xf32>
    %cst_180 = arith.constant 1.000000e+00 : f32
    %188 = vector.broadcast %cst_180 : f32 to vector<120x32xf32>
    %189 = arith.addf %188, %187 : vector<120x32xf32>
    %190 = arith.divf %188, %189 : vector<120x32xf32>
    %191 = vector.extract_strided_slice %184 {offsets = [120, 0], sizes = [40, 32], strides = [1, 1]} : vector<160x32xf32> to vector<40x32xf32>
    %192 = math.tanh %191 : vector<40x32xf32>
    %193 = vector.extract_strided_slice %190 {offsets = [40, 0], sizes = [40, 32], strides = [1, 1]} : vector<120x32xf32> to vector<40x32xf32>
    %194 = arith.mulf %193, %172 : vector<40x32xf32>
    %195 = vector.extract_strided_slice %190 {offsets = [0, 0], sizes = [40, 32], strides = [1, 1]} : vector<120x32xf32> to vector<40x32xf32>
    %196 = arith.mulf %195, %192 : vector<40x32xf32>
    %197 = arith.addf %194, %196 : vector<40x32xf32>
    %198 = vector.extract_strided_slice %190 {offsets = [80, 0], sizes = [40, 32], strides = [1, 1]} : vector<120x32xf32> to vector<40x32xf32>
    %199 = math.tanh %197 : vector<40x32xf32>
    %200 = arith.mulf %198, %199 : vector<40x32xf32>
    %c1_181 = arith.constant 1 : index
    %c0_182 = arith.constant 0 : index
    %c0_183 = arith.constant 0 : index
    %201 = vector.load %arg17[%c1_181, %c0_182, %c0_183] : memref<2x40x32xf32, #tpu.memory_space<vmem>>, vector<1x40x32xf32>
    %202 = vector.shape_cast %201 : vector<1x40x32xf32> to vector<40x32xf32>
    %203 = vector.shape_cast %200 : vector<40x32xf32> to vector<1x40x32xf32>
    tpu.vector_store %arg17[%c1_181, %c0_182, %c0_183], %203 {strides = array<i32>} : memref<2x40x32xf32, #tpu.memory_space<vmem>>, vector<1x40x32xf32>,
    %c0_184 = arith.constant 0 : index
    %c0_185 = arith.constant 0 : index
    %c0_186 = arith.constant 0 : index
    %204 = vector.load %arg17[%c0_184, %c0_185, %c0_186] : memref<2x40x32xf32, #tpu.memory_space<vmem>>, vector<2x40x32xf32>
    %205 = vector.shape_cast %204 : vector<2x40x32xf32> to vector<2x1280xf32>
    %206 = arith.truncf %205 : vector<2x1280xf32> to vector<2x1280xbf16>
    %c0_187 = arith.constant 0 : index
    %c0_188 = arith.constant 0 : index
    %207 = vector.load %arg8[%c0_187, %c0_188] : memref<1280x128xbf16, #tpu.memory_space<vmem>>, vector<1280x128xbf16>
    %cst_189 = arith.constant dense<0.000000e+00> : vector<2x128xf32>
    %208 = tpu.matmul %206, %207, %cst_189 {dimension_numbers = #tpu.dot_dimension_numbers<[1], [0], [0], [1], [0, 0, 1, 1], [], []>} : vector<2x1280xbf16>, vector<1280x128xbf16>, vector<2x128xf32> -> vector<2x128xf32>
    %c0_190 = arith.constant 0 : index
    %c0_191 = arith.constant 0 : index
    %209 = vector.load %arg9[%c0_190, %c0_191] : memref<1x128xf32, #tpu.memory_space<vmem>>, vector<1x128xf32>
    %210 = vector.broadcast %209 : vector<1x128xf32> to vector<2x128xf32>
    %211 = arith.addf %208, %210 : vector<2x128xf32>
    %cst_192 = arith.constant 0.000000e+00 : f32
    %212 = vector.broadcast %cst_192 : f32 to vector<2x128xf32>
    %213 = arith.maximumf %211, %212 : vector<2x128xf32>
    %214 = arith.truncf %213 : vector<2x128xf32> to vector<2x128xbf16>
    %c0_193 = arith.constant 0 : index
    %c0_194 = arith.constant 0 : index
    %215 = vector.load %arg10[%c0_193, %c0_194] : memref<128x6xbf16, #tpu.memory_space<vmem>>, vector<128x6xbf16>
    %cst_195 = arith.constant dense<0.000000e+00> : vector<2x6xf32>
    %216 = tpu.matmul %214, %215, %cst_195 {dimension_numbers = #tpu.dot_dimension_numbers<[1], [0], [0], [1], [0, 0, 1, 1], [], []>} : vector<2x128xbf16>, vector<128x6xbf16>, vector<2x6xf32> -> vector<2x6xf32>
    %c0_196 = arith.constant 0 : index
    %c0_197 = arith.constant 0 : index
    %217 = vector.load %arg11[%c0_196, %c0_197] : memref<1x6xf32, #tpu.memory_space<vmem>>, vector<1x6xf32>
    %218 = vector.broadcast %217 : vector<1x6xf32> to vector<2x6xf32>
    %219 = arith.addf %216, %218 : vector<2x6xf32>
    %c0_198 = arith.constant 0 : index
    %c0_199 = arith.constant 0 : index
    %220 = vector.load %arg12[%c0_198, %c0_199] : memref<2x6xf32, #tpu.memory_space<vmem>>, vector<2x6xf32>
    tpu.vector_store %arg12[%c0_198, %c0_199], %219 {strides = array<i32>} : memref<2x6xf32, #tpu.memory_space<vmem>>, vector<2x6xf32>,
    return
  }
}

</mosaic_0001>

<bundles_post_ra>
// kernel: my_conv_lstm_forward.1
= control target key start
LH: loop header
LB: loop body
LE: loop exit
PB: predicated region body
PF: predicated region fallthrough
CT: control target
= control target key end

     0   :  { %17 = vsyncpa [#allocation8], 0  ;;  %s7221_s0 = inlined_call_operand.vmem [shape: f32[2,4,128], index: 0, kind: input, shape index: {}]   ;;  %s7222_s1 = inlined_call_operand.vmem [shape: bf16[32,32], index: 1, kind: input, shape index: {}]   ;;  %s7223_s2 = inlined_call_operand.vmem [shape: bf16[128,32], index: 2, kind: input, shape index: {}]   ;;  %s7224_s3 = inlined_call_operand.vmem [shape: bf16[128,32], index: 3, kind: input, shape index: {}]   ;;  %s7225_s4 = inlined_call_operand.vmem [shape: f32[3,3,32], index: 4, kind: input, shape index: {}]   ;;  %s7226_s5 = inlined_call_operand.vmem [shape: bf16[160,9], index: 5, kind: input, shape index: {}]   ;;  %s7227_s6 = inlined_call_operand.vmem [shape: bf16[160,40], index: 6, kind: input, shape index: {}]   ;;  %s7228_s7 = inlined_call_operand.vmem [shape: f32[160,1], index: 7, kind: input, shape index: {}]   ;;  %s7229_s8 = inlined_call_operand.hbm [shape: bf16[1280,128], index: 8, kind: input, shape index: {}]   ;;  %s7230_s9 = inlined_call_operand.vmem [shape: f32[1,128], index: 9, kind: input, shape index: {}]   ;;  %s7231_s10 = inlined_call_operand.vmem [shape: bf16[128,6], index: 10, kind: input, shape index: {}]   ;;  %s7232_s11 = inlined_call_operand.vmem [shape: f32[1,6], index: 11, kind: input, shape index: {}]   ;;  %s7233_s12 = inlined_call_operand.hbm [shape: f32[2,6], index: 12, kind: output, shape index: {}]  }
   0x1   :  { %18 = vsyncpa [#allocation9], 0  ;;  %s5986_s21 = smov [#allocation7]   ;;  %s5938_s25 = scalar_lea.hbm %s7229_s8, 10240 }
   0x2   :  { %s40_s22 = sshll.u32 %s5986_s21, 4  ;;  %p5939_p0 = scmp.ne.s32.totalorder %s7229_s8, %s5938_s25  ;;  %s41_s22 = int_to_ptr.vmem [resolvable:$true] %s40_s22 }
   0x3   :  { %p5942_p1 = scmp.lt.u32.totalorder %s5938_s25, %s7229_s8 }
   0x5   :  { %p5944_p2 = pnand %p5942_p1, %p5939_p0 }
   0x7   :  { %5947 = shalt.err (!%p5944_p2)
}
   0x8   :  { %s5948_s30 = scalar_lea.vmem %s41_s22, 10240  ;;  %p5953_p4 = scmp.lt.s32.totalorder %s41_s22, %s41_s22 }
   0x9   :  { %p5949_p3 = scmp.ne.s32.totalorder %s41_s22, %s5948_s30  ;;  %p5954_p5 = scmp.lt.s32.totalorder %s5948_s30, %s5948_s30 }
   0xb   :  { %p5955_p6 = por %p5954_p5, %p5953_p4 }
   0xd   :  { %p5956_p7 = pnand %p5955_p6, %p5949_p3 }
   0xf   :  { %5959 = shalt.err (!%p5956_p7)
}
  0x10   :  { %s5987_s13 = smov 64   ;;  %s5988_s14 = smov 4  }
  0x11   :  { %46 = dma.hbm_to_vmem [thread:$0]  %s7229_s8, 10240, %s41_s22, [#allocation8], %s5987_s13, %s5987_s13, %s5988_s14  }
  0x12   :  { %5982 = dma.done.wait [#allocation8], 10240  }
  0x13   :  { %5983 = vsyncadd [#allocation8], 4294957056  ;;  %v63_v0 = vld [vmem:[%s7221_s0] sm:$0xf]  ;;  %vm57_vm0 = vcmask 31744   ;;  %v5989_v1 = vmov 0.0  }
  0x14   :  { %64 = vxpose.xlu0.b32.start.end [1/1] (short) %v63_v0, 128  ;;  %58 = vst.msk [vmem:[#allocation2] sm:$0xff] %vm57_vm0, %v5989_v1  ;;  %59 = vst.msk [vmem:[#allocation2 + $0x90] sm:$0xff] %vm57_vm0, %v5989_v1  ;;  %5034 = vmatprep.subr.bf16.mxu0 %v5989_v1  ;;  %v4554_v2 = vld [vmem:[%s7221_s0 + $0x4] sm:$0xf]  ;;  %vm60_vm1 = vcmask 26624   ;;  %s5990_s0 = smov 8  }
  0x15   :  { %61 = vst.msk [vmem:[#allocation2 + $0x88] sm:$0x7] %vm60_vm1, %v5989_v1  ;;  %62 = vst.msk [vmem:[#allocation2 + $0x118] sm:$0x7] %vm60_vm1, %v5989_v1  ;;  %s5991_s8 = smov 12   ;;  %s5992_s21 = smov 16  }
  0x16   :  { %s5993_s22 = smov 20   ;;  %s5994_s23 = smov 24   ;;  %vm878_vm2 = vcmask 261120   ;;  %vm524_vm3 = vcmask 64512   ;;  %vm533_vm4 = vcmask 97280   ;;  %vm542_vm5 = vcmask 130048  }
  0x17   :  { %1044 = vst.msk [vmem:[#allocation3] sm:$0xff] %vm878_vm2, %v5989_v1  ;;  %1045 = vst.msk [vmem:[#allocation3 + $0x30] sm:$0xff] %vm878_vm2, %v5989_v1  ;;  %s5995_s24 = smov 28   ;;  %vm551_vm6 = vcmask 162816   ;;  %vm560_vm7 = vcmask 195584   ;;  %vm569_vm8 = vcmask 228352  }
  0x18   :  { %1276 = vst.msk [vmem:[#allocation4] sm:$0xff] %vm878_vm2, %v5989_v1  ;;  %1277 = vst.msk [vmem:[#allocation4 + $0x18] sm:$0xff] %vm878_vm2, %v5989_v1  ;;  %vm1046_vm9 = vcmask 253952   ;;  %s5996_s27 = smov 32   ;;  %s5997_s28 = smov 96   ;;  %vm1101_vm10 = vcmask 523264  }
  0x19   :  { %1047 = vst.msk [vmem:[#allocation3 + $0x28] sm:$0x1] %vm1046_vm9, %v5989_v1  ;;  %1048 = vst.msk [vmem:[#allocation3 + $0x58] sm:$0x1] %vm1046_vm9, %v5989_v1  ;;  %vm1104_vm11 = vcmask 785408   ;;  %vm1278_vm12 = vcmask 254976  }
  0x1a   :  { %1279 = vst.msk [vmem:[#allocation4 + $0x10] sm:$0x3] %vm1278_vm12, %v5989_v1  ;;  %1280 = vst.msk [vmem:[#allocation4 + $0x28] sm:$0x3] %vm1278_vm12, %v5989_v1  ;;  %vm5998_vm13 = vmmov 0   ;;  %vm1632_vm14 = vcmask 72704  }
  0x1b   :  { %5050 = vmatprep.mubr.msk.bf16.mxu0 %vm5998_vm13, %v5989_v1  ;;  %vm1663_vm15 = vcmask 1043456   ;;  %vm2400_vm1 = vcmask 326656   ;;  %s6003_s30 = smov [#allocation10]  }
  0x51   :  { %114 = vxpose.xlu0.b32.start.end [1/1] (short) %v4554_v2, 128 }
  0x94   :  { %v80_v3 = vpop.trf.xlu0 }
  0x95   :  { %96 = vst.msk [vmem:[#allocation2 + $0x8] sm:$0xff] %vm57_vm0, %v80_v3 }
  0x98   :  { %v81_v4 = vpop.trf.xlu0 }
  0x99   :  { %97 = vst.msk [vmem:[#allocation2 + $0x10] sm:$0xff] %vm57_vm0, %v81_v4 }
  0x9c   :  { %v82_v5 = vpop.trf.xlu0 }
  0x9d   :  { %98 = vst.msk [vmem:[#allocation2 + $0x18] sm:$0xff] %vm57_vm0, %v82_v5 }
  0xa0   :  { %v83_v6 = vpop.trf.xlu0 }
  0xa1   :  { %99 = vst.msk [vmem:[#allocation2 + $0x20] sm:$0xff] %vm57_vm0, %v83_v6 }
  0xa4   :  { %v84_v7 = vpop.trf.xlu0 }
  0xa5   :  { %100 = vst.msk [vmem:[#allocation2 + $0x28] sm:$0xff] %vm57_vm0, %v84_v7 }
  0xa8   :  { %v85_v8 = vpop.trf.xlu0  ;;  %v181_v12 = vld [vmem:[#allocation2 + $0x6] ss:$4 sm:$0xff]  ;;  %v213_v13 = vld [vmem:[#allocation2 + $0x8] ss:$4 sm:$0xff]  ;;  %v229_v17 = vld [vmem:[#allocation2 + $0x9] ss:$4 sm:$0xff] }
  0xa9   :  { %101 = vst.msk [vmem:[#allocation2 + $0x30] sm:$0xff] %vm57_vm0, %v85_v8  ;;  %v245_v24 = vld [vmem:[#allocation2 + $0xa] ss:$4 sm:$0xff]  ;;  %v261_v25 = vld [vmem:[#allocation2 + $0xb] ss:$4 sm:$0xff] }
  0xaa   :  { %v6118_v30 = vld [vmem:[#allocation2 + $0x7] ss:$4 sm:$0xff] }
  0xac   :  { %v86_v9 = vpop.trf.xlu0  ;;  %v277_v31 = vld [vmem:[#allocation2 + $0xc] ss:$4 sm:$0xff] }
  0xad   :  { %102 = vst.msk [vmem:[#allocation2 + $0x38] sm:$0xff] %vm57_vm0, %v86_v9 }
  0xb0   :  { %v87_v10 = vpop.trf.xlu0 }
  0xb1   :  { %103 = vst.msk [vmem:[#allocation2 + $0x40] sm:$0xff] %vm57_vm0, %v87_v10 }
  0xb4   :  { %v88_v11 = vpop.trf.xlu0 }
  0xb5   :  { %104 = vst.msk [vmem:[#allocation2 + $0x48] sm:$0xff] %vm57_vm0, %v88_v11 }
  0xb8   :  { %v89_v14 = vpop.trf.xlu0  ;;  %v183_v15 = vld [vmem:[#allocation2 + $0x26] ss:$4 sm:$0xff]  ;;  %v215_v16 = vld [vmem:[#allocation2 + $0x28] ss:$4 sm:$0xff]  ;;  %v231_v19 = vld [vmem:[#allocation2 + $0x29] ss:$4 sm:$0xff] }
  0xb9   :  { %105 = vst.msk [vmem:[#allocation2 + $0x50] sm:$0xff] %vm57_vm0, %v89_v14  ;;  %v5207_v18 = vpack.i.bf16 %v183_v15, %v181_v12  ;;  %v247_v20 = vld [vmem:[#allocation2 + $0x2a] ss:$4 sm:$0xff]  ;;  %v263_v21 = vld [vmem:[#allocation2 + $0x2b] ss:$4 sm:$0xff]  ;;  %v6107_v22 = vpack.i.bf16 %v215_v16, %v213_v13  ;;  %v6112_v26 = vpack.i.bf16 %v231_v19, %v229_v17 }
  0xba   :  { %v6109_v23 = vld [vmem:[#allocation2 + $0x27] ss:$4 sm:$0xff]  ;;  %v6114_v27 = vpack.i.bf16 %v247_v20, %v245_v24  ;;  %v6116_v28 = vpack.i.bf16 %v263_v21, %v261_v25 }
  0xbb   :  { %5208 = vrot.lane.b32.xlu1 %v5207_v18, %s5988_s14  ;;  %v5212_v33 = vpack.i.bf16 %v6109_v23, %v6118_v30 }
  0xbc   :  { %v90_v29 = vpop.trf.xlu0  ;;  %v279_v32 = vld [vmem:[#allocation2 + $0x2c] ss:$4 sm:$0xff] }
  0xbd   :  { %106 = vst.msk [vmem:[#allocation2 + $0x58] sm:$0xff] %vm57_vm0, %v90_v29  ;;  %v6123_v34 = vpack.i.bf16 %v279_v32, %v277_v31 }
  0xbf   :  { %5213 = vrot.lane.b32.xlu1 %v5212_v33, %s5990_s0 }
  0xc0   :  { %v91_v35 = vpop.trf.xlu0 }
  0xc1   :  { %107 = vst.msk [vmem:[#allocation2 + $0x60] sm:$0xff] %vm57_vm0, %v91_v35 }
  0xc3   :  { %5218 = vrot.lane.b32.xlu1 %v6107_v22, %s5991_s8 }
  0xc4   :  { %v92_v36 = vpop.trf.xlu0 }
  0xc5   :  { %108 = vst.msk [vmem:[#allocation2 + $0x68] sm:$0xff] %vm57_vm0, %v92_v36 }
  0xc7   :  { %5223 = vrot.lane.b32.xlu1 %v6112_v26, %s5992_s21 }
  0xc8   :  { %v93_v37 = vpop.trf.xlu0  ;;  %v217_v41 = vld [vmem:[#allocation2 + $0x48] ss:$4 sm:$0xff]  ;;  %v233_v44 = vld [vmem:[#allocation2 + $0x49] ss:$4 sm:$0xff]  ;;  %v249_v45 = vld [vmem:[#allocation2 + $0x4a] ss:$4 sm:$0xff] }
  0xc9   :  { %109 = vst.msk [vmem:[#allocation2 + $0x70] sm:$0xff] %vm57_vm0, %v93_v37  ;;  %v265_v50 = vld [vmem:[#allocation2 + $0x4b] ss:$4 sm:$0xff]  ;;  %v185_v33 = vld [vmem:[#allocation2 + $0x46] ss:$4 sm:$0xff] }
  0xcb   :  { %5228 = vrot.lane.b32.xlu1 %v6114_v27, %s5993_s22 }
  0xcc   :  { %v94_v38 = vpop.trf.xlu0  ;;  %v281_v51 = vld [vmem:[#allocation2 + $0x4c] ss:$4 sm:$0xff] }
  0xcd   :  { %110 = vst.msk [vmem:[#allocation2 + $0x78] sm:$0xff] %vm57_vm0, %v94_v38  ;;  %v6193_v38 = vld [vmem:[#allocation2 + $0x47] ss:$4 sm:$0xff] }
  0xcf   :  { %5233 = vrot.lane.b32.xlu1 %v6116_v28, %s5994_s23 }
  0xd0   :  { %v95_v39 = vpop.trf.xlu0 }
  0xd1   :  { %111 = vst.msk [vmem:[#allocation2 + $0x80] sm:$0xff] %vm57_vm0, %v95_v39 }
  0xd4   :  { %v130_v40 = vpop.trf.xlu0 }
  0xd5   :  { %147 = vst.msk [vmem:[#allocation2 + $0x98] sm:$0xff] %vm57_vm0, %v130_v40 }
  0xd8   :  { %v131_v42 = vpop.trf.xlu0  ;;  %v219_v43 = vld [vmem:[#allocation2 + $0x68] ss:$4 sm:$0xff]  ;;  %v235_v46 = vld [vmem:[#allocation2 + $0x69] ss:$4 sm:$0xff]  ;;  %v251_v47 = vld [vmem:[#allocation2 + $0x6a] ss:$4 sm:$0xff] }
  0xd9   :  { %148 = vst.msk [vmem:[#allocation2 + $0xa0] sm:$0xff] %vm57_vm0, %v131_v42  ;;  %v267_v48 = vld [vmem:[#allocation2 + $0x6b] ss:$4 sm:$0xff]  ;;  %v6141_v49 = vpack.i.bf16 %v219_v43, %v217_v41  ;;  %v283_v52 = vld [vmem:[#allocation2 + $0x6c] ss:$4 sm:$0xff]  ;;  %v6143_v53 = vpack.i.bf16 %v235_v46, %v233_v44  ;;  %v6145_v54 = vpack.i.bf16 %v251_v47, %v249_v45 }
  0xda   :  { %v6147_v55 = vpack.i.bf16 %v267_v48, %v265_v50  ;;  %v6149_v56 = vpack.i.bf16 %v283_v52, %v281_v51  ;;  %v187_v31 = vld [vmem:[#allocation2 + $0x66] ss:$4 sm:$0xff]  ;;  %v6190_v36 = vld [vmem:[#allocation2 + $0x67] ss:$4 sm:$0xff] }
  0xdb   :  { %v5252_v35 = vpack.i.bf16 %v187_v31, %v185_v33  ;;  %v5257_v39 = vpack.i.bf16 %v6190_v36, %v6193_v38  ;;  %v5624_v42 = vld [vmem:[%s7222_s1] sm:$0xff]   ;;  %v5625_v43 = vld [vmem:[%s7222_s1 + $0x8] sm:$0xff]  }
  0xdc   :  { %v132_v57 = vpop.trf.xlu0  ;;  %4994 = vmatprep.subr.bf16.mxu1 %v5624_v42  ;;  %v167_v33 = vld [vmem:[#allocation2 + $0x25] ss:$4 sm:$0xff] }
  0xdd   :  { %149 = vst.msk [vmem:[#allocation2 + $0xa8] sm:$0xff] %vm57_vm0, %v132_v57  ;;  %4995 = vmatpush3.bf16.msra.mxu1 %v5624_v42 }
  0xde   :  { %4996 = vmatprep.subr.bf16.mxu1 %v5625_v43 }
  0xe0   :  { %v133_v58 = vpop.trf.xlu0 }
  0xe1   :  { %150 = vst.msk [vmem:[#allocation2 + $0xb0] sm:$0xff] %vm57_vm0, %v133_v58  ;;  %4997 = vmatpush3.bf16.msra.mxu1 %v5625_v43  ;;  %v581_v43 = vld [vmem:[#allocation2 + $0x2d] ss:$4 sm:$0xff] }
  0xe4   :  { %v134_v59 = vpop.trf.xlu0 }
  0xe5   :  { %151 = vst.msk [vmem:[#allocation2 + $0xb8] sm:$0xff] %vm57_vm0, %v134_v59 }
  0xe8   :  { %v135_v60 = vpop.trf.xlu0  ;;  %v189_v0 = vld [vmem:[#allocation2 + $0x96] ss:$4 sm:$0xff]  ;;  %v221_v2 = vld [vmem:[#allocation2 + $0x98] ss:$4 sm:$0xff]  ;;  %v237_v6 = vld [vmem:[#allocation2 + $0x99] ss:$4 sm:$0xff] }
  0xe9   :  { %152 = vst.msk [vmem:[#allocation2 + $0xc0] sm:$0xff] %vm57_vm0, %v135_v60  ;;  %v253_v13 = vld [vmem:[#allocation2 + $0x9a] ss:$4 sm:$0xff]  ;;  %v269_v14 = vld [vmem:[#allocation2 + $0x9b] ss:$4 sm:$0xff] }
  0xea   :  { %v6164_v15 = vld [vmem:[#allocation2 + $0x97] ss:$4 sm:$0xff] }
  0xec   :  { %v136_v61 = vpop.trf.xlu0  ;;  %v285_v20 = vld [vmem:[#allocation2 + $0x9c] ss:$4 sm:$0xff] }
  0xed   :  { %153 = vst.msk [vmem:[#allocation2 + $0xc8] sm:$0xff] %vm57_vm0, %v136_v61 }
  0xf0   :  { %v137_v62 = vpop.trf.xlu0 }
  0xf1   :  { %154 = vst.msk [vmem:[#allocation2 + $0xd0] sm:$0xff] %vm57_vm0, %v137_v62 }
  0xf4   :  { %v138_v63 = vpop.trf.xlu0 }
  0xf5   :  { %155 = vst.msk [vmem:[#allocation2 + $0xd8] sm:$0xff] %vm57_vm0, %v138_v63 }
  0xf8   :  { %v139_v3 = vpop.trf.xlu0  ;;  %v191_v4 = vld [vmem:[#allocation2 + $0xb6] ss:$4 sm:$0xff]  ;;  %v223_v5 = vld [vmem:[#allocation2 + $0xb8] ss:$4 sm:$0xff]  ;;  %v239_v8 = vld [vmem:[#allocation2 + $0xb9] ss:$4 sm:$0xff] }
  0xf9   :  { %156 = vst.msk [vmem:[#allocation2 + $0xe0] sm:$0xff] %vm57_vm0, %v139_v3  ;;  %v5237_v7 = vpack.i.bf16 %v191_v4, %v189_v0  ;;  %v255_v9 = vld [vmem:[#allocation2 + $0xba] ss:$4 sm:$0xff]  ;;  %v271_v10 = vld [vmem:[#allocation2 + $0xbb] ss:$4 sm:$0xff]  ;;  %v6159_v11 = vpack.i.bf16 %v223_v5, %v221_v2  ;;  %v6166_v16 = vpack.i.bf16 %v239_v8, %v237_v6 }
  0xfa   :  { %v6161_v12 = vld [vmem:[#allocation2 + $0xb7] ss:$4 sm:$0xff]  ;;  %v6168_v17 = vpack.i.bf16 %v255_v9, %v253_v13  ;;  %v6170_v18 = vpack.i.bf16 %v271_v10, %v269_v14 }
  0xfb   :  { %5238 = vrot.lane.b32.xlu1 %v5237_v7, %s5988_s14  ;;  %v5242_v24 = vpack.i.bf16 %v6161_v12, %v6164_v15 }
  0xfc   :  { %v140_v19 = vpop.trf.xlu0  ;;  %v287_v21 = vld [vmem:[#allocation2 + $0xbc] ss:$4 sm:$0xff] }
  0xfd   :  { %157 = vst.msk [vmem:[#allocation2 + $0xe8] sm:$0xff] %vm57_vm0, %v140_v19  ;;  %v6183_v25 = vpack.i.bf16 %v287_v21, %v285_v20 }
  0xff   :  { %5243 = vrot.lane.b32.xlu1 %v5242_v24, %s5990_s0 }
 0x100   :  { %v141_v29 = vpop.trf.xlu0 }
 0x101   :  { %158 = vst.msk [vmem:[#allocation2 + $0xf0] sm:$0xff] %vm57_vm0, %v141_v29 }
 0x103   :  { %5248 = vrot.lane.b32.xlu1 %v6123_v34, %s5995_s24 }
 0x104   :  { %v142_v32 = vpop.trf.xlu0 }
 0x105   :  { %159 = vst.msk [vmem:[#allocation2 + $0xf8] sm:$0xff] %vm57_vm0, %v142_v32 }
 0x107   :  { %5253 = vrot.lane.b32.xlu1 %v5252_v35, %s5988_s14  ;;  %v165_v35 = vld [vmem:[#allocation2 + $0x5] ss:$4 sm:$0xff] }
 0x108   :  { %v143_v37 = vpop.trf.xlu0  ;;  %v6213_v44 = vld [vmem:[#allocation2 + $0xd7] ss:$4 sm:$0xff]  ;;  %v225_v48 = vld [vmem:[#allocation2 + $0xd8] ss:$4 sm:$0xff]  ;;  %v241_v57 = vld [vmem:[#allocation2 + $0xd9] ss:$4 sm:$0xff] }
 0x109   :  { %160 = vst.msk [vmem:[#allocation2 + $0x100] sm:$0xff] %vm57_vm0, %v143_v37  ;;  %v193_v58 = vld [vmem:[#allocation2 + $0xd6] ss:$4 sm:$0xff]  ;;  %v273_v2 = vld [vmem:[#allocation2 + $0xdb] ss:$4 sm:$0xff] }
 0x10a   :  { %v257_v62 = vld [vmem:[#allocation2 + $0xda] ss:$4 sm:$0xff] }
 0x10b   :  { %5258 = vrot.lane.b32.xlu1 %v5257_v39, %s5990_s0 }
 0x10c   :  { %v144_v40 = vpop.trf.xlu0  ;;  %v289_v5 = vld [vmem:[#allocation2 + $0xdc] ss:$4 sm:$0xff]  ;;  %v591_v8 = vld [vmem:[#allocation2 + $0xdd] ss:$4 sm:$0xff]  ;;  %v607_v13 = vld [vmem:[#allocation2 + $0xde] ss:$4 sm:$0xff] }
 0x10d   :  { %161 = vst.msk [vmem:[#allocation2 + $0x108] sm:$0xff] %vm57_vm0, %v144_v40 }
 0x10f   :  { %5263 = vrot.lane.b32.xlu1 %v6141_v49, %s5991_s8 }
 0x110   :  { %v145_v41 = vpop.trf.xlu0 }
 0x111   :  { %162 = vst.msk [vmem:[#allocation2 + $0x110] sm:$0xff] %vm57_vm0, %v145_v41 }
 0x113   :  { %5268 = vrot.lane.b32.xlu1 %v6143_v53, %s5992_s21 }
 0x117   :  { %5273 = vrot.lane.b32.xlu1 %v6145_v54, %s5993_s22 }
 0x118   :  { %v6215_v45 = vld [vmem:[#allocation2 + $0xf7] ss:$4 sm:$0xff]  ;;  %v227_v47 = vld [vmem:[#allocation2 + $0xf8] ss:$4 sm:$0xff]  ;;  %v243_v51 = vld [vmem:[#allocation2 + $0xf9] ss:$4 sm:$0xff] }
 0x119   :  { %v5292_v46 = vpack.i.bf16 %v6215_v45, %v6213_v44  ;;  %v5422_v50 = vpack.i.bf16 %v227_v47, %v225_v48  ;;  %v195_v52 = vld [vmem:[#allocation2 + $0xf6] ss:$4 sm:$0xff]  ;;  %v5432_v59 = vpack.i.bf16 %v243_v51, %v241_v57  ;;  %v275_v0 = vld [vmem:[#allocation2 + $0xfb] ss:$4 sm:$0xff]  ;;  %v291_v4 = vld [vmem:[#allocation2 + $0xfc] ss:$4 sm:$0xff] }
 0x11a   :  { %v5287_v60 = vpack.i.bf16 %v195_v52, %v193_v58  ;;  %v259_v61 = vld [vmem:[#allocation2 + $0xfa] ss:$4 sm:$0xff]  ;;  %v5452_v3 = vpack.i.bf16 %v275_v0, %v273_v2  ;;  %v5462_v6 = vpack.i.bf16 %v291_v4, %v289_v5  ;;  %v593_v7 = vld [vmem:[#allocation2 + $0xfd] ss:$4 sm:$0xff] }
 0x11b   :  { %5293 = vrot.lane.b32.xlu0 %v5292_v46, %s5990_s0  ;;  %5278 = vrot.lane.b32.xlu1 %v6147_v55, %s5994_s23  ;;  %v5442_v63 = vpack.i.bf16 %v259_v61, %v257_v62  ;;  %v5472_v9 = vpack.i.bf16 %v593_v7, %v591_v8  ;;  %v609_v10 = vld [vmem:[#allocation2 + $0xfe] ss:$4 sm:$0xff]  ;;  %v579_v52 = vld [vmem:[#allocation2 + $0xd] ss:$4 sm:$0xff] }
 0x11c   :  { %v5482_v14 = vpack.i.bf16 %v609_v10, %v607_v13  ;;  %v583_v4 = vld [vmem:[#allocation2 + $0x4d] ss:$4 sm:$0xff]  ;;  %v597_v10 = vld [vmem:[#allocation2 + $0x2e] ss:$4 sm:$0xff] }
 0x11d   :  { %v595_v13 = vld [vmem:[#allocation2 + $0xe] ss:$4 sm:$0xff] }
 0x11f   :  { %5423 = vrot.lane.b32.xlu0 %v5422_v50, %s5988_s14  ;;  %5283 = vrot.lane.b32.xlu1 %v6149_v56, %s5995_s24 }
 0x123   :  { %5433 = vrot.lane.b32.xlu0 %v5432_v59, %s5990_s0  ;;  %5288 = vrot.lane.b32.xlu1 %v5287_v60, %s5988_s14  ;;  %v5397_v60 = vpack.i.bf16 %v581_v43, %v579_v52 }
 0x127   :  { %5443 = vrot.lane.b32.xlu0 %v5442_v63, %s5991_s8  ;;  %5298 = vrot.lane.b32.xlu1 %v6159_v11, %s5991_s8 }
 0x12b   :  { %5453 = vrot.lane.b32.xlu0 %v5452_v3, %s5992_s21  ;;  %5303 = vrot.lane.b32.xlu1 %v6166_v16, %s5992_s21 }
 0x12d   :  { %v5209_v19 = vpop.permute.xlu1 %5208 }
 0x12e   :  { %v5210_v24 = vunpack.i.l.bf16 %v5209_v19 }
 0x12f   :  { %5463 = vrot.lane.b32.xlu0 %v5462_v6, %s5993_s22  ;;  %5308 = vrot.lane.b32.xlu1 %v6168_v17, %s5993_s22 }
 0x130   :  { %v516_v40 = vsel %vm57_vm0, %v165_v35, %v5210_v24  ;;  %v169_v35 = vld [vmem:[#allocation2 + $0x45] ss:$4 sm:$0xff] }
 0x131   :  { %v5214_v20 = vpop.permute.xlu1 %5213 }
 0x132   :  { %v5216_v29 = vunpack.i.h.bf16 %v5214_v20  ;;  %v5215_v31 = vunpack.i.l.bf16 %v5214_v20  ;;  %v601_v20 = vld [vmem:[#allocation2 + $0x6e] ss:$4 sm:$0xff] }
 0x133   :  { %5473 = vrot.lane.b32.xlu0 %v5472_v9, %s5994_s23  ;;  %5313 = vrot.lane.b32.xlu1 %v6170_v18, %s5994_s23 }
 0x135   :  { %v5219_v21 = vpop.permute.xlu1 %5218 }
 0x136   :  { %v5221_v32 = vunpack.i.h.bf16 %v5219_v21 }
 0x137   :  { %5483 = vrot.lane.b32.xlu0 %v5482_v14, %s5995_s24  ;;  %5318 = vrot.lane.b32.xlu1 %v6183_v25, %s5995_s24 }
 0x13b   :  { %5323 = vrot.lane.b32.xlu1 %v6107_v22, %s5988_s14  ;;  %v5224_v22 = vpop.permute.xlu1 %5223 }
 0x13c   :  { %v5225_v37 = vunpack.i.l.bf16 %v5224_v22 }
 0x13f   :  { %5328 = vrot.lane.b32.xlu1 %v6112_v26, %s5990_s0  ;;  %v5229_v26 = vpop.permute.xlu1 %5228 }
 0x140   :  { %v5231_v41 = vunpack.i.h.bf16 %v5229_v26  ;;  %v5230_v42 = vunpack.i.l.bf16 %v5229_v26 }
 0x143   :  { %5333 = vrot.lane.b32.xlu1 %v6114_v27, %s5991_s8  ;;  %v5234_v27 = vpop.permute.xlu1 %5233 }
 0x144   :  { %v5236_v47 = vunpack.i.h.bf16 %v5234_v27  ;;  %v5235_v48 = vunpack.i.l.bf16 %v5234_v27 }
 0x147   :  { %5338 = vrot.lane.b32.xlu1 %v6116_v28, %s5992_s21 }
 0x14b   :  { %5343 = vrot.lane.b32.xlu1 %v6123_v34, %s5993_s22  ;;  %v5211_v34 = vunpack.i.h.bf16 %v5209_v19  ;;  %v5407_v19 = vpack.i.bf16 %v597_v10, %v595_v13 }
 0x14f   :  { %5348 = vrot.lane.b32.xlu1 %v5422_v50, %s5991_s8 }
 0x153   :  { %5353 = vrot.lane.b32.xlu1 %v5432_v59, %s5992_s21 }
 0x157   :  { %5358 = vrot.lane.b32.xlu1 %v5442_v63, %s5993_s22  ;;  %v585_v63 = vld [vmem:[#allocation2 + $0x6d] ss:$4 sm:$0xff] }
 0x158   :  { %v5402_v8 = vpack.i.bf16 %v585_v63, %v583_v4  ;;  %v587_v4 = vld [vmem:[#allocation2 + $0x9d] ss:$4 sm:$0xff] }
 0x15b   :  { %5363 = vrot.lane.b32.xlu1 %v5452_v3, %s5994_s23 }
 0x15f   :  { %5368 = vrot.lane.b32.xlu1 %v5462_v6, %s5995_s24 }
 0x163   :  { %5373 = vrot.lane.b32.xlu1 %v6141_v49, %s5988_s14  ;;  %v5220_v49 = vunpack.i.l.bf16 %v5219_v21  ;;  %v599_v21 = vld [vmem:[#allocation2 + $0x4e] ss:$4 sm:$0xff] }
 0x164   :  { %v5412_v26 = vpack.i.bf16 %v601_v20, %v599_v21 }
 0x167   :  { %5378 = vrot.lane.b32.xlu1 %v6143_v53, %s5990_s0  ;;  %v5226_v53 = vunpack.i.h.bf16 %v5224_v22 }
 0x16b   :  { %5383 = vrot.lane.b32.xlu1 %v6145_v54, %s5991_s8  ;;  %v517_v54 = vsel %vm57_vm0, %v167_v33, %v5211_v34 }
 0x16c   :  { %v526_v46 = vsel %vm524_vm3, %v517_v54, %v5216_v29 }
 0x16d   :  { %v6263_v28 = vpop.permute.xlu1 %5238  ;;  %v535_v51 = vsel %vm533_vm4, %v526_v46, %v5221_v32 }
 0x16e   :  { %v544_v58 = vsel %vm542_vm5, %v535_v51, %v5226_v53  ;;  %v171_v53 = vld [vmem:[#allocation2 + $0x65] ss:$4 sm:$0xff]  ;;  %v5241_v13 = vunpack.i.h.bf16 %v6263_v28 }
 0x16f   :  { %5388 = vrot.lane.b32.xlu1 %v6147_v55, %s5992_s21  ;;  %v525_v55 = vsel %vm524_vm3, %v516_v40, %v5215_v31 }
 0x170   :  { %v534_v50 = vsel %vm533_vm4, %v525_v55, %v5220_v49 }
 0x171   :  { %v6267_v39 = vpop.permute.xlu1 %5243  ;;  %v543_v57 = vsel %vm542_vm5, %v534_v50, %v5225_v37 }
 0x172   :  { %v552_v0 = vsel %vm551_vm6, %v543_v57, %v5230_v42 }
 0x173   :  { %5393 = vrot.lane.b32.xlu1 %v6149_v56, %s5993_s22  ;;  %v553_v56 = vsel %vm551_vm6, %v544_v58, %v5231_v41  ;;  %v561_v2 = vsel %vm560_vm7, %v552_v0, %v5235_v48 }
 0x174   :  { %v562_v3 = vsel %vm560_vm7, %v553_v56, %v5236_v47 }
 0x175   :  { %v5249_v59 = vpop.permute.xlu1 %5248 }
 0x176   :  { %v5251_v61 = vunpack.i.h.bf16 %v5249_v59  ;;  %v5250_v62 = vunpack.i.l.bf16 %v5249_v59 }
 0x177   :  { %5398 = vrot.lane.b32.xlu1 %v5397_v60, %s5994_s23 }
 0x178   :  { %v570_v5 = vsel %vm569_vm8, %v561_v2, %v5250_v62  ;;  %v571_v6 = vsel %vm569_vm8, %v562_v3, %v5251_v61  ;;  %v589_v3 = vld [vmem:[#allocation2 + $0xbd] ss:$4 sm:$0xff] }
 0x179   :  { %v5254_v7 = vpop.permute.xlu1 %5253  ;;  %v850_v9 = vpack.c.bf16 %v571_v6, %v570_v5  ;;  %v5467_v6 = vpack.i.bf16 %v589_v3, %v587_v4  ;;  %v179_v3 = vld [vmem:[#allocation2 + $0xf5] ss:$4 sm:$0xff] }
 0x17a   :  { %v5256_v24 = vunpack.i.h.bf16 %v5254_v7  ;;  %v5255_v29 = vunpack.i.l.bf16 %v5254_v7  ;;  %v605_v7 = vld [vmem:[#allocation2 + $0xbe] ss:$4 sm:$0xff] }
 0x17b   :  { %5403 = vrot.lane.b32.xlu1 %v5402_v8, %s5994_s23  ;;  %4998 = vmatprep.mubr.msk.bf16.mxu1 %vm878_vm2, %v850_v9 }
 0x17c   :  { %v519_v41 = vsel %vm57_vm0, %v171_v53, %v5256_v24  ;;  %v518_v42 = vsel %vm57_vm0, %v169_v35, %v5255_v29 }
 0x17d   :  { %v5259_v14 = vpop.permute.xlu1 %5258 }
 0x17e   :  { %v5261_v31 = vunpack.i.h.bf16 %v5259_v14  ;;  %v5260_v32 = vunpack.i.l.bf16 %v5259_v14  ;;  %v5240_v14 = vunpack.i.l.bf16 %v6263_v28 }
 0x17f   :  { %5408 = vrot.lane.b32.xlu1 %v5407_v19, %s5995_s24  ;;  %v5245_v19 = vunpack.i.l.bf16 %v6267_v39 }
 0x180   :  { %v527_v55 = vsel %vm524_vm3, %v518_v42, %v5260_v32  ;;  %v528_v46 = vsel %vm524_vm3, %v519_v41, %v5261_v31 }
 0x181   :  { %v5264_v22 = vpop.permute.xlu1 %5263 }
 0x182   :  { %v5266_v49 = vunpack.i.h.bf16 %v5264_v22  ;;  %v5265_v33 = vunpack.i.l.bf16 %v5264_v22  ;;  %v173_v22 = vld [vmem:[#allocation2 + $0x95] ss:$4 sm:$0xff] }
 0x183   :  { %5413 = vrot.lane.b32.xlu1 %v5412_v26, %s5995_s24  ;;  %v175_v26 = vld [vmem:[#allocation2 + $0xb5] ss:$4 sm:$0xff]  ;;  %v520_v31 = vsel %vm57_vm0, %v173_v22, %v5240_v14 }
 0x184   :  { %v537_v50 = vsel %vm533_vm4, %v528_v46, %v5266_v49  ;;  %v521_v29 = vsel %vm57_vm0, %v175_v26, %v5241_v13 }
 0x185   :  { %v5269_v27 = vpop.permute.xlu1 %5268 }
 0x186   :  { %v5271_v37 = vunpack.i.h.bf16 %v5269_v27  ;;  %v5270_v54 = vunpack.i.l.bf16 %v5269_v27 }
 0x187   :  { %5418 = vrot.lane.b32.xlu1 %v6159_v11, %s5988_s14  ;;  %s4545_s14 = sshll.u32 %s6003_s30, 4  ;;  %s4546_s14 = int_to_ptr.vmem [resolvable:$true] %s4545_s14 }
 0x188   :  { %v546_v52 = vsel %vm542_vm5, %v537_v50, %v5271_v37  ;;  %p5965_p9 = scmp.lt.s32.totalorder %s4546_s14, %s4546_s14 }
 0x189   :  { %v5274_v34 = vpop.permute.xlu1 %5273 }
 0x18a   :  { %v5276_v11 = vunpack.i.h.bf16 %v5274_v34  ;;  %v5275_v43 = vunpack.i.l.bf16 %v5274_v34 }
 0x18b   :  { %5428 = vrot.lane.b32.xlu1 %v6166_v16, %s5990_s0  ;;  %v536_v16 = vsel %vm533_vm4, %v527_v55, %v5265_v33  ;;  %v529_v33 = vsel %vm524_vm3, %v520_v31, %v5245_v19 }
 0x18c   :  { %v545_v51 = vsel %vm542_vm5, %v536_v16, %v5270_v54  ;;  %v555_v59 = vsel %vm551_vm6, %v546_v52, %v5276_v11 }
 0x18d   :  { %v5279_v40 = vpop.permute.xlu1 %5278  ;;  %v554_v58 = vsel %vm551_vm6, %v545_v51, %v5275_v43 }
 0x18e   :  { %v5281_v47 = vunpack.i.h.bf16 %v5279_v40  ;;  %v5280_v48 = vunpack.i.l.bf16 %v5279_v40 }
 0x18f   :  { %5438 = vrot.lane.b32.xlu1 %v6168_v17, %s5991_s8 }
 0x190   :  { %v563_v62 = vsel %vm560_vm7, %v554_v58, %v5280_v48  ;;  %v564_v63 = vsel %vm560_vm7, %v555_v59, %v5281_v47 }
 0x191   :  { %v5284_v57 = vpop.permute.xlu1 %5283 }
 0x192   :  { %v5286_v60 = vunpack.i.h.bf16 %v5284_v57  ;;  %v5285_v61 = vunpack.i.l.bf16 %v5284_v57 }
 0x193   :  { %5448 = vrot.lane.b32.xlu1 %v6170_v18, %s5992_s21  ;;  %v603_v18 = vld [vmem:[#allocation2 + $0x9e] ss:$4 sm:$0xff] }
 0x194   :  { %v572_v17 = vsel %vm569_vm8, %v563_v62, %v5285_v61  ;;  %v573_v0 = vsel %vm569_vm8, %v564_v63, %v5286_v60  ;;  %v5477_v9 = vpack.i.bf16 %v605_v7, %v603_v18 }
 0x195   :  { %v6312_v56 = vpop.permute.xlu1 %5288  ;;  %v851_v2 = vpack.c.bf16 %v573_v0, %v572_v17  ;;  %v5294_v0 = vpop.permute.xlu0 %5293 }
 0x196   :  { %v5291_v62 = vunpack.i.h.bf16 %v6312_v56  ;;  %v5290_v63 = vunpack.i.l.bf16 %v6312_v56  ;;  %v5296_v18 = vunpack.i.h.bf16 %v5294_v0 }
 0x197   :  { %5458 = vrot.lane.b32.xlu1 %v6183_v25, %s5993_s22  ;;  %4999 = vmatmul.mubr.msk.bf16.vlgmr.msra.gmra.mrb[0].mxu1 %vm878_vm2, %v851_v2  ;;  %v5246_v25 = vunpack.i.h.bf16 %v6267_v39  ;;  %v177_v2 = vld [vmem:[#allocation2 + $0xd5] ss:$4 sm:$0xff] }
 0x198   :  { %v523_v4 = vsel %vm57_vm0, %v179_v3, %v5291_v62 }
 0x199   :  { %v5299_v5 = vpop.permute.xlu1 %5298  ;;  %v530_v28 = vsel %vm524_vm3, %v521_v29, %v5246_v25  ;;  %v532_v56 = vsel %vm524_vm3, %v523_v4, %v5296_v18 }
 0x19a   :  { %v5301_v20 = vunpack.i.h.bf16 %v5299_v5  ;;  %v5300_v21 = vunpack.i.l.bf16 %v5299_v5  ;;  %v522_v5 = vsel %vm57_vm0, %v177_v2, %v5290_v63 }
 0x19b   :  { %5468 = vrot.lane.b32.xlu1 %v5467_v6, %s5994_s23 }
 0x19c   :  { %v538_v39 = vsel %vm533_vm4, %v529_v33, %v5300_v21  ;;  %v539_v37 = vsel %vm533_vm4, %v530_v28, %v5301_v20 }
 0x19d   :  { %v5304_v8 = vpop.permute.xlu1 %5303 }
 0x19e   :  { %v5306_v27 = vunpack.i.h.bf16 %v5304_v8  ;;  %v5305_v34 = vunpack.i.l.bf16 %v5304_v8  ;;  %v5295_v8 = vunpack.i.l.bf16 %v5294_v0 }
 0x19f   :  { %5478 = vrot.lane.b32.xlu1 %v5477_v9, %s5995_s24 }
 0x1a0   :  { %v547_v54 = vsel %vm542_vm5, %v538_v39, %v5305_v34  ;;  %v548_v40 = vsel %vm542_vm5, %v539_v37, %v5306_v27  ;;  %v531_v19 = vsel %vm524_vm3, %v522_v5, %v5295_v8 }
 0x1a1   :  { %v5309_v10 = vpop.permute.xlu1 %5308 }
 0x1a2   :  { %v5311_v32 = vunpack.i.h.bf16 %v5309_v10  ;;  %v5310_v49 = vunpack.i.l.bf16 %v5309_v10 }
 0x1a4   :  { %v556_v42 = vsel %vm551_vm6, %v547_v54, %v5310_v49  ;;  %v557_v11 = vsel %vm551_vm6, %v548_v40, %v5311_v32 }
 0x1a5   :  { %v5314_v24 = vpop.permute.xlu1 %5313 }
 0x1a6   :  { %v5316_v35 = vunpack.i.h.bf16 %v5314_v24  ;;  %v5315_v53 = vunpack.i.l.bf16 %v5314_v24 }
 0x1a8   :  { %v565_v46 = vsel %vm560_vm7, %v556_v42, %v5315_v53  ;;  %v566_v47 = vsel %vm560_vm7, %v557_v11, %v5316_v35  ;;  %v6365_v11 = vpop.permute.xlu0 %5423 }
 0x1a9   :  { %v5319_v41 = vpop.permute.xlu1 %5318 }
 0x1aa   :  { %v5321_v43 = vunpack.i.h.bf16 %v5319_v41  ;;  %v5320_v55 = vunpack.i.l.bf16 %v5319_v41 }
 0x1ac   :  { %v574_v48 = vsel %vm569_vm8, %v565_v46, %v5320_v55  ;;  %v575_v16 = vsel %vm569_vm8, %v566_v47, %v5321_v43 }
 0x1ad   :  { %v6337_v50 = vpop.permute.xlu1 %5323  ;;  %v852_v51 = vpack.c.bf16 %v575_v16, %v574_v48 }
 0x1ae   :  { %v5326_v43 = vunpack.i.h.bf16 %v6337_v50  ;;  %v5325_v55 = vunpack.i.l.bf16 %v6337_v50 }
 0x1af   :  { %5002 = vmatprep.mubr.msk.bf16.mxu1 %vm878_vm2, %v852_v51 }
 0x1b0   :  { %v795_v62 = vsel %vm57_vm0, %v6109_v23, %v5326_v43  ;;  %v794_v63 = vsel %vm57_vm0, %v6118_v30, %v5325_v55 }
 0x1b1   :  { %v6340_v52 = vpop.permute.xlu1 %5328 }
 0x1b2   :  { %v5331_v46 = vunpack.i.h.bf16 %v6340_v52  ;;  %v5330_v47 = vunpack.i.l.bf16 %v6340_v52  ;;  %v6381_v52 = vpop.permute.xlu0 %5433 }
 0x1b4   :  { %v802_v0 = vsel %vm524_vm3, %v794_v63, %v5330_v47 }
 0x1b5   :  { %v6342_v57 = vpop.permute.xlu1 %5333 }
 0x1b6   :  { %v5336_v48 = vunpack.i.h.bf16 %v6342_v57  ;;  %v5335_v16 = vunpack.i.l.bf16 %v6342_v57  ;;  %v803_v57 = vsel %vm524_vm3, %v795_v62, %v5331_v46 }
 0x1b8   :  { %v811_v4 = vsel %vm533_vm4, %v803_v57, %v5336_v48  ;;  %v5435_v57 = vunpack.i.l.bf16 %v6381_v52 }
 0x1b9   :  { %v6344_v58 = vpop.permute.xlu1 %5338 }
 0x1bd   :  { %v6346_v59 = vpop.permute.xlu1 %5343 }
 0x1be   :  { %v5346_v50 = vunpack.i.h.bf16 %v6346_v59 }
 0x1c1   :  { %v5349_v60 = vpop.permute.xlu1 %5348 }
 0x1c2   :  { %v5351_v6 = vunpack.i.h.bf16 %v5349_v60  ;;  %v5350_v7 = vunpack.i.l.bf16 %v5349_v60  ;;  %v5341_v60 = vunpack.i.h.bf16 %v6344_v58 }
 0x1c4   :  { %v540_v22 = vsel %vm533_vm4, %v531_v19, %v5350_v7  ;;  %v541_v26 = vsel %vm533_vm4, %v532_v56, %v5351_v6  ;;  %v819_v7 = vsel %vm542_vm5, %v811_v4, %v5341_v60 }
 0x1c5   :  { %v5354_v61 = vpop.permute.xlu1 %5353  ;;  %v827_v18 = vsel %vm551_vm6, %v819_v7, %v5346_v50  ;;  %v5426_v50 = vunpack.i.h.bf16 %v6365_v11 }
 0x1c6   :  { %v5356_v9 = vunpack.i.h.bf16 %v5354_v61  ;;  %v5355_v10 = vunpack.i.l.bf16 %v5354_v61  ;;  %v5340_v61 = vunpack.i.l.bf16 %v6344_v58  ;;  %v810_v58 = vsel %vm533_vm4, %v802_v0, %v5335_v16 }
 0x1c7   :  { %v5436_v0 = vunpack.i.h.bf16 %v6381_v52 }
 0x1c8   :  { %v549_v27 = vsel %vm542_vm5, %v540_v22, %v5355_v10  ;;  %v550_v34 = vsel %vm542_vm5, %v541_v26, %v5356_v9  ;;  %v818_v30 = vsel %vm542_vm5, %v810_v58, %v5340_v61  ;;  %v5444_v26 = vpop.permute.xlu0 %5443 }
 0x1c9   :  { %v5359_v17 = vpop.permute.xlu1 %5358  ;;  %v5445_v58 = vunpack.i.l.bf16 %v5444_v26 }
 0x1ca   :  { %v5361_v14 = vunpack.i.h.bf16 %v5359_v17  ;;  %v5360_v25 = vunpack.i.l.bf16 %v5359_v17  ;;  %v5345_v17 = vunpack.i.l.bf16 %v6346_v59 }
 0x1cc   :  { %v558_v29 = vsel %vm551_vm6, %v549_v27, %v5360_v25  ;;  %v559_v31 = vsel %vm551_vm6, %v550_v34, %v5361_v14  ;;  %v826_v59 = vsel %vm551_vm6, %v818_v30, %v5345_v17  ;;  %v5454_v47 = vpop.permute.xlu0 %5453  ;;  %v5425_v17 = vunpack.i.l.bf16 %v6365_v11 }
 0x1cd   :  { %v5364_v13 = vpop.permute.xlu1 %5363 }
 0x1ce   :  { %v5366_v20 = vunpack.i.h.bf16 %v5364_v13  ;;  %v5365_v21 = vunpack.i.l.bf16 %v5364_v13  ;;  %v800_v30 = vsel %vm57_vm0, %v6213_v44, %v5425_v17 }
 0x1cf   :  { %v808_v7 = vsel %vm524_vm3, %v800_v30, %v5435_v57 }
 0x1d0   :  { %v567_v33 = vsel %vm560_vm7, %v558_v29, %v5365_v21  ;;  %v568_v28 = vsel %vm560_vm7, %v559_v31, %v5366_v20  ;;  %v5464_v62 = vpop.permute.xlu0 %5463 }
 0x1d1   :  { %v5369_v24 = vpop.permute.xlu1 %5368 }
 0x1d2   :  { %v5371_v32 = vunpack.i.h.bf16 %v5369_v24  ;;  %v5370_v49 = vunpack.i.l.bf16 %v5369_v24 }
 0x1d4   :  { %v576_v35 = vsel %vm569_vm8, %v567_v33, %v5370_v49  ;;  %v577_v53 = vsel %vm569_vm8, %v568_v28, %v5371_v32 }
 0x1d5   :  { %v5374_v39 = vpop.permute.xlu1 %5373  ;;  %v853_v37 = vpack.c.bf16 %v577_v53, %v576_v35 }
 0x1d6   :  { %v5376_v2 = vunpack.i.h.bf16 %v5374_v39  ;;  %v5375_v3 = vunpack.i.l.bf16 %v5374_v39 }
 0x1d7   :  { %5003 = vmatmul.mubr.msk.bf16.gmra.mrb[4].mxu1 %vm878_vm2, %v853_v37 }
 0x1d8   :  { %v797_v10 = vsel %vm57_vm0, %v6190_v36, %v5376_v2  ;;  %v796_v13 = vsel %vm57_vm0, %v6193_v38, %v5375_v3  ;;  %v5474_v2 = vpop.permute.xlu0 %5473  ;;  %v5446_v3 = vunpack.i.h.bf16 %v5444_v26 }
 0x1d9   :  { %v5379_v54 = vpop.permute.xlu1 %5378 }
 0x1da   :  { %v5381_v23 = vunpack.i.h.bf16 %v5379_v54  ;;  %v5380_v5 = vunpack.i.l.bf16 %v5379_v54 }
 0x1dc   :  { %v804_v19 = vsel %vm524_vm3, %v796_v13, %v5380_v5  ;;  %v805_v56 = vsel %vm524_vm3, %v797_v10, %v5381_v23  ;;  %v5456_v23 = vunpack.i.h.bf16 %v5454_v47  ;;  %v5455_v5 = vunpack.i.l.bf16 %v5454_v47  ;;  %v5484_v10 = vpop.permute.xlu0 %5483 }
 0x1dd   :  { %v5384_v40 = vpop.permute.xlu1 %5383  ;;  %v5486_v26 = vunpack.i.h.bf16 %v5484_v10 }
 0x1de   :  { %v5386_v14 = vunpack.i.h.bf16 %v5384_v40  ;;  %v5385_v25 = vunpack.i.l.bf16 %v5384_v40 }
 0x1e0   :  { %v812_v49 = vsel %vm533_vm4, %v804_v19, %v5385_v25  ;;  %v813_v33 = vsel %vm533_vm4, %v805_v56, %v5386_v14  ;;  %v5465_v25 = vunpack.i.l.bf16 %v5464_v62  ;;  %v5476_v56 = vunpack.i.h.bf16 %v5474_v2 }
 0x1e1   :  { %v5389_v41 = vpop.permute.xlu1 %5388 }
 0x1e2   :  { %v5391_v20 = vunpack.i.h.bf16 %v5389_v41  ;;  %v5390_v21 = vunpack.i.l.bf16 %v5389_v41 }
 0x1e4   :  { %v820_v53 = vsel %vm542_vm5, %v812_v49, %v5390_v21  ;;  %v821_v39 = vsel %vm542_vm5, %v813_v33, %v5391_v20  ;;  %v5475_v20 = vunpack.i.l.bf16 %v5474_v2 }
 0x1e5   :  { %v5394_v42 = vpop.permute.xlu1 %5393 }
 0x1e6   :  { %v5396_v27 = vunpack.i.h.bf16 %v5394_v42  ;;  %v5395_v34 = vunpack.i.l.bf16 %v5394_v42 }
 0x1e8   :  { %v828_v40 = vsel %vm551_vm6, %v820_v53, %v5395_v34  ;;  %v829_v41 = vsel %vm551_vm6, %v821_v39, %v5396_v27  ;;  %v5485_v27 = vunpack.i.l.bf16 %v5484_v10 }
 0x1e9   :  { %v5399_v51 = vpop.permute.xlu1 %5398 }
 0x1ea   :  { %v5401_v8 = vunpack.i.h.bf16 %v5399_v51  ;;  %v5400_v9 = vunpack.i.l.bf16 %v5399_v51 }
 0x1ec   :  { %v834_v31 = vsel %vm560_vm7, %v826_v59, %v5400_v9  ;;  %v835_v36 = vsel %vm560_vm7, %v827_v18, %v5401_v8  ;;  %v816_v59 = vsel %vm533_vm4, %v808_v7, %v5445_v58  ;;  %v5627_v58 = vld [vmem:[%s7223_s2 + $0x8] sm:$0xff]  }
 0x1ed   :  { %v5404_v6 = vpop.permute.xlu1 %5403  ;;  %v824_v8 = vsel %vm542_vm5, %v816_v59, %v5455_v5  ;;  %v5630_v5 = vld [vmem:[%s7223_s2 + $0x20] sm:$0xff]   ;;  %v862_v59 = vlaneseq }
 0x1ee   :  { %v5406_v32 = vunpack.i.h.bf16 %v5404_v6  ;;  %v5405_v38 = vunpack.i.l.bf16 %v5404_v6  ;;  %v801_v6 = vsel %vm57_vm0, %v6215_v45, %v5426_v50  ;;  %v5466_v45 = vunpack.i.h.bf16 %v5464_v62 }
 0x1ef   :  { %v809_v11 = vsel %vm524_vm3, %v801_v6, %v5436_v0  ;;  %v832_v39 = vsel %vm551_vm6, %v824_v8, %v5465_v25  ;;  %v163_v8 = vld [vmem:[%s7225_s4] sm:$0x7] }
 0x1f0   :  { %v836_v55 = vsel %vm560_vm7, %v828_v40, %v5405_v38  ;;  %v837_v46 = vsel %vm560_vm7, %v829_v41, %v5406_v32  ;;  %v817_v52 = vsel %vm533_vm4, %v809_v11, %v5446_v3  ;;  %v5626_v3 = vld [vmem:[%s7223_s2] sm:$0xff]  }
 0x1f1   :  { %v5409_v22 = vpop.permute.xlu1 %5408  ;;  %v825_v9 = vsel %vm542_vm5, %v817_v52, %v5456_v23  ;;  %5014 = vmatprep.subr.bf16.mxu1 %v5626_v3  ;;  %v5629_v23 = vld [vmem:[%s7223_s2 + $0x18] sm:$0xff]   ;;  %v6468_v52 = vshrl.u32 %v862_v59, 7 }
 0x1f2   :  { %v5411_v24 = vunpack.i.h.bf16 %v5409_v22  ;;  %v5410_v29 = vunpack.i.l.bf16 %v5409_v22  ;;  %v833_v53 = vsel %vm551_vm6, %v825_v9, %v5466_v45  ;;  %5015 = vmatpush3.bf16.msra.mxu1 %v5626_v3 }
 0x1f3   :  { %5016 = vmatprep.subr.bf16.mxu1 %v5627_v58 }
 0x1f4   :  { %v842_v28 = vsel %vm569_vm8, %v834_v31, %v5410_v29  ;;  %v843_v35 = vsel %vm569_vm8, %v835_v36, %v5411_v24 }
 0x1f5   :  { %v854_v37 = vpack.c.bf16 %v843_v35, %v842_v28  ;;  %v5414_v54 = vpop.permute.xlu1 %5413 }
 0x1f6   :  { %v5416_v42 = vunpack.i.h.bf16 %v5414_v54  ;;  %v5415_v43 = vunpack.i.l.bf16 %v5414_v54  ;;  %5017 = vmatpush3.bf16.msra.mxu1 %v5627_v58 }
 0x1f7   :  { %5006 = vmatprep.mubr.msk.bf16.mxu1 %vm878_vm2, %v854_v37 }
 0x1f8   :  { %v844_v48 = vsel %vm569_vm8, %v836_v55, %v5415_v43  ;;  %v845_v16 = vsel %vm569_vm8, %v837_v46, %v5416_v42 }
 0x1f9   :  { %v855_v51 = vpack.c.bf16 %v845_v16, %v844_v48  ;;  %v5419_v60 = vpop.permute.xlu1 %5418 }
 0x1fa   :  { %v5421_v13 = vunpack.i.h.bf16 %v5419_v60  ;;  %v5420_v14 = vunpack.i.l.bf16 %v5419_v60 }
 0x1fb   :  { %5007 = vmatmul.mubr.msk.bf16.gmra.mrb[8].mxu1 %vm878_vm2, %v855_v51 }
 0x1fc   :  { %v799_v31 = vsel %vm57_vm0, %v6161_v12, %v5421_v13  ;;  %v798_v36 = vsel %vm57_vm0, %v6164_v15, %v5420_v14  ;;  %v840_v12 = vsel %vm560_vm7, %v832_v39, %v5475_v20  ;;  %v841_v15 = vsel %vm560_vm7, %v833_v53, %v5476_v56 }
 0x1fd   :  { %v5429_v61 = vpop.permute.xlu1 %5428  ;;  %v848_v48 = vsel %vm569_vm8, %v840_v12, %v5485_v27  ;;  %v849_v16 = vsel %vm569_vm8, %v841_v15, %v5486_v26  ;;  %v6478_v13 = vsub.s32 2, %v6468_v52  ;;  %vm1664_vm0 = vcmask 1044480  }
 0x1fe   :  { %v5431_v19 = vunpack.i.h.bf16 %v5429_v61  ;;  %v5430_v44 = vunpack.i.l.bf16 %v5429_v61  ;;  %v857_v50 = vpack.c.bf16 %v849_v16, %v848_v48 }
 0x1ff   :  { %v1019_v56 = vrot.slane %v163_v8, %v6478_v13 }
 0x200   :  { %v806_v49 = vsel %vm524_vm3, %v798_v36, %v5430_v44  ;;  %v807_v33 = vsel %vm524_vm3, %v799_v31, %v5431_v19 }
 0x201   :  { %v5439_v63 = vpop.permute.xlu1 %5438 }
 0x202   :  { %v5441_v21 = vunpack.i.h.bf16 %v5439_v63  ;;  %v5440_v22 = vunpack.i.l.bf16 %v5439_v63 }
 0x204   :  { %v814_v37 = vsel %vm533_vm4, %v806_v49, %v5440_v22  ;;  %v815_v54 = vsel %vm533_vm4, %v807_v33, %v5441_v21 }
 0x205   :  { %v5449_v4 = vpop.permute.xlu1 %5448 }
 0x206   :  { %v5451_v34 = vunpack.i.h.bf16 %v5449_v4  ;;  %v5450_v24 = vunpack.i.l.bf16 %v5449_v4  ;;  %v5628_v4 = vld [vmem:[%s7223_s2 + $0x10] sm:$0xff]  }
 0x207   :  { %5018 = vmatprep.subr.bf16.mxu1 %v5628_v4 }
 0x208   :  { %v822_v40 = vsel %vm542_vm5, %v814_v37, %v5450_v24  ;;  %v823_v41 = vsel %vm542_vm5, %v815_v54, %v5451_v34  ;;  %5019 = vmatpush3.bf16.msra.mxu1 %v5628_v4 }
 0x209   :  { %v5459_v18 = vpop.permute.xlu1 %5458  ;;  %5020 = vmatprep.subr.bf16.mxu1 %v5629_v23 }
 0x20a   :  { %v5461_v32 = vunpack.i.h.bf16 %v5459_v18  ;;  %v5460_v38 = vunpack.i.l.bf16 %v5459_v18  ;;  %v6471_v18 = vsub.s32 0, %v6468_v52 }
 0x20c   :  { %v830_v43 = vsel %vm551_vm6, %v822_v40, %v5460_v38  ;;  %v831_v55 = vsel %vm551_vm6, %v823_v41, %v5461_v32  ;;  %5021 = vmatpush3.bf16.msra.mxu1 %v5629_v23  ;;  %v865_v9 = vrot.slane %v163_v8, %v6471_v18 }
 0x20d   :  { %v5469_v29 = vpop.permute.xlu1 %5468  ;;  %5022 = vmatprep.subr.bf16.mxu1 %v5630_v5 }
 0x20e   :  { %v5471_v28 = vunpack.i.h.bf16 %v5469_v29  ;;  %v5470_v35 = vunpack.i.l.bf16 %v5469_v29 }
 0x210   :  { %v838_v51 = vsel %vm560_vm7, %v830_v43, %v5470_v35  ;;  %v839_v60 = vsel %vm560_vm7, %v831_v55, %v5471_v28  ;;  %5023 = vmatpush3.bf16.msra.mxu1 %v5630_v5 }
 0x211   :  { %v5479_v42 = vpop.permute.xlu1 %5478 }
 0x212   :  { %v5481_v46 = vunpack.i.h.bf16 %v5479_v42  ;;  %v5480_v47 = vunpack.i.l.bf16 %v5479_v42 }
 0x214   :  { %v846_v61 = vsel %vm569_vm8, %v838_v51, %v5480_v47  ;;  %v847_v62 = vsel %vm569_vm8, %v839_v60, %v5481_v46 }
 0x215   :  { %v856_v63 = vpack.c.bf16 %v847_v62, %v846_v61 }
 0x217   :  { %5010 = vmatprep.mubr.msk.bf16.mxu1 %vm878_vm2, %v856_v63 }
 0x218   :  { %5011 = vmatmul.mubr.msk.bf16.gmra.mrb[12].mxu1 %vm878_vm2, %v857_v50 }
 0x26a   :  { %v5000_v17 = vpop.f32.mrb[0].mxu1 }
 0x26b   :  { %v937_v0 = vpop.f32.mrb[1].mxu1  ;;  %v946_v10 = vadd.f32 %v5000_v17, %v865_v9 }
 0x26c   :  { %v5001_v57 = vpop.f32.mrb[2].mxu1  ;;  %v938_v14 = vadd.f32 %v937_v0, %v865_v9 }
 0x26d   :  { %v940_v2 = vpop.f32.mrb[3].mxu1  ;;  %v949_v45 = vadd.f32 %v5001_v57, %v865_v9  ;;  %v1002_v44 = vmax.f32 %v946_v10, 0.0 }
 0x26e   :  { %v941_v25 = vadd.f32 %v940_v2, %v865_v9  ;;  %v1000_v22 = vmax.f32 %v938_v14, 0.0 }
 0x26f   :  { %v1003_v34 = vmax.f32 %v949_v45, 0.0  ;;  %v1022_v49 = vadd.f32 %v1019_v56, %v1002_v44 }
 0x270   :  { %v1001_v36 = vmax.f32 %v941_v25, 0.0  ;;  %v1020_v35 = vadd.f32 %v1019_v56, %v1000_v22 }
 0x271   :  { %v1023_v37 = vadd.f32 %v1019_v56, %v1003_v34 }
 0x272   :  { %v1021_v15 = vadd.f32 %v1019_v56, %v1001_v36 }
 0x2aa   :  { %v5004_v6 = vpop.f32.mrb[4].mxu1 }
 0x2ab   :  { %v953_v30 = vpop.f32.mrb[5].mxu1  ;;  %v962_v55 = vadd.f32 %v5004_v6, %v865_v9 }
 0x2ac   :  { %v5005_v7 = vpop.f32.mrb[6].mxu1  ;;  %v954_v46 = vadd.f32 %v953_v30, %v865_v9 }
 0x2ad   :  { %v956_v11 = vpop.f32.mrb[7].mxu1  ;;  %v965_v47 = vadd.f32 %v5005_v7, %v865_v9  ;;  %v1006_v51 = vmax.f32 %v962_v55, 0.0 }
 0x2ae   :  { %v957_v48 = vadd.f32 %v956_v11, %v865_v9  ;;  %v1004_v62 = vmax.f32 %v954_v46, 0.0 }
 0x2af   :  { %v1007_v17 = vmax.f32 %v965_v47, 0.0  ;;  %v1026_v23 = vadd.f32 %v1019_v56, %v1006_v51 }
 0x2b0   :  { %v1005_v3 = vmax.f32 %v957_v48, 0.0  ;;  %v1024_v30 = vadd.f32 %v1019_v56, %v1004_v62 }
 0x2b1   :  { %v1027_v59 = vadd.f32 %v1019_v56, %v1007_v17 }
 0x2b2   :  { %v1025_v14 = vadd.f32 %v1019_v56, %v1005_v3 }
 0x2ce   :  { %v5008_v19 = vpop.f32.mrb[8].mxu1 }
 0x2cf   :  { %v978_v20 = vadd.f32 %v5008_v19, %v865_v9  ;;  %v969_v21 = vpop.f32.mrb[9].mxu1 }
 0x2d0   :  { %v970_v26 = vadd.f32 %v969_v21, %v865_v9  ;;  %v5009_v27 = vpop.f32.mrb[10].mxu1 }
 0x2d1   :  { %v1010_v24 = vmax.f32 %v978_v20, 0.0  ;;  %v981_v29 = vadd.f32 %v5009_v27, %v865_v9  ;;  %v972_v31 = vpop.f32.mrb[11].mxu1 }
 0x2d2   :  { %v1008_v32 = vmax.f32 %v970_v26, 0.0  ;;  %v973_v38 = vadd.f32 %v972_v31, %v865_v9 }
 0x2d3   :  { %v1030_v33 = vadd.f32 %v1019_v56, %v1010_v24  ;;  %v1011_v28 = vmax.f32 %v981_v29, 0.0  ;;  %v5633_v29 = vld [vmem:[%s7223_s2 + $0x38] sm:$0xff]  }
 0x2d4   :  { %v1028_v53 = vadd.f32 %v1019_v56, %v1008_v32  ;;  %v1009_v39 = vmax.f32 %v973_v38, 0.0 }
 0x2d5   :  { %v1038_v54 = vmax.f32 %v1022_v49, %v1030_v33  ;;  %v1031_v12 = vadd.f32 %v1019_v56, %v1011_v28 }
 0x2d6   :  { %v1036_v40 = vmax.f32 %v1020_v35, %v1028_v53  ;;  %v1029_v41 = vadd.f32 %v1019_v56, %v1009_v39 }
 0x2d7   :  { %1051 = vst.msk [vmem:[#allocation3 + $0x18] sm:$0xff] %vm878_vm2, %v1038_v54  ;;  %v1039_v42 = vmax.f32 %v1023_v37, %v1031_v12 }
 0x2d8   :  { %1049 = vst.msk [vmem:[#allocation3 + $0x8] sm:$0xff] %vm878_vm2, %v1036_v40  ;;  %v1037_v43 = vmax.f32 %v1021_v15, %v1029_v41 }
 0x2d9   :  { %1052 = vst.msk [vmem:[#allocation3 + $0x20] sm:$0xff] %vm878_vm2, %v1039_v42 }
 0x2da   :  { %1050 = vst.msk [vmem:[#allocation3 + $0x10] sm:$0xff] %vm878_vm2, %v1037_v43 }
 0x2e1   :  { %v1068_v20 = vld [vmem:[#allocation3 + $0x9] ss:$4 sm:$0xff]  ;;  %v1064_v22 = vld [vmem:[#allocation3 + $0x8] ss:$4 sm:$0xff]  ;;  %v1072_v31 = vld [vmem:[#allocation3 + $0xa] ss:$4 sm:$0xff] }
 0x2e2   :  { %v1112_v49 = vld [vmem:[#allocation3 + $0xc] ss:$4 sm:$0xff]  ;;  %v1108_v33 = vld [vmem:[#allocation3 + $0xb] ss:$4 sm:$0xff] }
 0x2e3   :  { %v1060_v41 = vld [vmem:[#allocation3 + $0x7] ss:$4 sm:$0xff] }
 0x2eb   :  { %v5012_v16 = vpop.f32.mrb[12].mxu1 }
 0x2ec   :  { %v994_v60 = vadd.f32 %v5012_v16, %v865_v9  ;;  %v985_v61 = vpop.f32.mrb[13].mxu1 }
 0x2ed   :  { %v986_v63 = vadd.f32 %v985_v61, %v865_v9  ;;  %v5013_v50 = vpop.f32.mrb[14].mxu1 }
 0x2ee   :  { %v1014_v0 = vmax.f32 %v994_v60, 0.0  ;;  %v997_v57 = vadd.f32 %v5013_v50, %v865_v9  ;;  %v988_v2 = vpop.f32.mrb[15].mxu1 }
 0x2ef   :  { %v1012_v58 = vmax.f32 %v986_v63, 0.0  ;;  %v989_v4 = vadd.f32 %v988_v2, %v865_v9  ;;  %v5631_v9 = vld [vmem:[%s7223_s2 + $0x28] sm:$0xff]  }
 0x2f0   :  { %v1034_v5 = vadd.f32 %v1019_v56, %v1014_v0  ;;  %v1015_v6 = vmax.f32 %v997_v57, 0.0  ;;  %5024 = vmatprep.subr.bf16.mxu1 %v5631_v9 }
 0x2f1   :  { %v1032_v7 = vadd.f32 %v1019_v56, %v1012_v58  ;;  %v1013_v11 = vmax.f32 %v989_v4, 0.0  ;;  %5025 = vmatpush3.bf16.msra.mxu1 %v5631_v9 }
 0x2f2   :  { %v1042_v8 = vmax.f32 %v1026_v23, %v1034_v5  ;;  %v1035_v10 = vadd.f32 %v1019_v56, %v1015_v6 }
 0x2f3   :  { %v1040_v45 = vmax.f32 %v1024_v30, %v1032_v7  ;;  %v1033_v25 = vadd.f32 %v1019_v56, %v1013_v11  ;;  %v5632_v56 = vld [vmem:[%s7223_s2 + $0x30] sm:$0xff]  }
 0x2f4   :  { %1055 = vst.msk [vmem:[#allocation3 + $0x48] sm:$0xff] %vm878_vm2, %v1042_v8  ;;  %v1043_v19 = vmax.f32 %v1027_v59, %v1035_v10  ;;  %5026 = vmatprep.subr.bf16.mxu1 %v5632_v56  ;;  %v5634_v59 = vld [vmem:[%s7224_s3] sm:$0xff]   ;;  %v5635_v8 = vld [vmem:[%s7224_s3 + $0x8] sm:$0xff]   ;;  %v5636_v10 = vld [vmem:[%s7224_s3 + $0x10] sm:$0xff]  }
 0x2f5   :  { %1053 = vst.msk [vmem:[#allocation3 + $0x38] sm:$0xff] %vm878_vm2, %v1040_v45  ;;  %v1041_v44 = vmax.f32 %v1025_v14, %v1033_v25  ;;  %5027 = vmatpush3.bf16.msra.mxu1 %v5632_v56  ;;  %5035 = vmatpush3.bf16.msra.mxu0 %v5634_v59  ;;  %v5637_v14 = vld [vmem:[%s7224_s3 + $0x18] sm:$0xff]   ;;  %v5638_v45 = vld [vmem:[%s7224_s3 + $0x20] sm:$0xff]   ;;  %v5639_v25 = vld [vmem:[%s7224_s3 + $0x28] sm:$0xff]  }
 0x2f6   :  { %1056 = vst.msk [vmem:[#allocation3 + $0x50] sm:$0xff] %vm878_vm2, %v1043_v19  ;;  %5028 = vmatprep.subr.bf16.mxu1 %v5633_v29  ;;  %5036 = vmatprep.subr.bf16.mxu0 %v5989_v1  ;;  %v4565_v19 = vld [vmem:[%s7225_s4 + $0x4] sm:$0x7] }
 0x2f7   :  { %1054 = vst.msk [vmem:[#allocation3 + $0x40] sm:$0xff] %vm878_vm2, %v1041_v44  ;;  %v1164_v44 = vrot.slane %v4565_v19, %v6471_v18 }
 0x2f9   :  { %5029 = vmatpush3.bf16.msra.mxu1 %v5633_v29  ;;  %5037 = vmatpush3.bf16.msra.mxu0 %v5635_v8 }
 0x2fa   :  { %5038 = vmatprep.subr.bf16.mxu0 %v5989_v1 }
 0x2fd   :  { %5039 = vmatpush3.bf16.msra.mxu0 %v5636_v10 }
 0x2fe   :  { %v1070_v21 = vld [vmem:[#allocation3 + $0x39] ss:$4 sm:$0xff]  ;;  %v1066_v26 = vld [vmem:[#allocation3 + $0x38] ss:$4 sm:$0xff]  ;;  %v1074_v24 = vld [vmem:[#allocation3 + $0x3a] ss:$4 sm:$0xff]  ;;  %5040 = vmatprep.subr.bf16.mxu0 %v5989_v1 }
 0x2ff   :  { %v5492_v27 = vpack.i.bf16 %v1070_v21, %v1068_v20  ;;  %v5487_v34 = vpack.i.bf16 %v1066_v26, %v1064_v22  ;;  %v5502_v36 = vpack.i.bf16 %v1074_v24, %v1072_v31  ;;  %v1114_v32 = vld [vmem:[#allocation3 + $0x3c] ss:$4 sm:$0xff]  ;;  %v1110_v38 = vld [vmem:[#allocation3 + $0x3b] ss:$4 sm:$0xff] }
 0x300   :  { %v5512_v28 = vpack.i.bf16 %v1114_v32, %v1112_v49  ;;  %v5507_v35 = vpack.i.bf16 %v1110_v38, %v1108_v33  ;;  %v1062_v40 = vld [vmem:[#allocation3 + $0x37] ss:$4 sm:$0xff] }
 0x301   :  { %5493 = vrot.lane.b32.xlu0 %v5492_v27, %s5987_s13  ;;  %5488 = vrot.lane.b32.xlu1 %v5487_v34, %s5996_s27 }
 0x302   :  { %5041 = vmatpush3.bf16.msra.mxu0 %v5637_v14 }
 0x303   :  { %5042 = vmatprep.subr.bf16.mxu0 %v5989_v1 }
 0x305   :  { %5503 = vrot.lane.b32.xlu0 %v5502_v36, %s5997_s28  ;;  %5498 = vrot.lane.b32.xlu1 %v5502_v36, %s5996_s27 }
 0x306   :  { %5043 = vmatpush3.bf16.msra.mxu0 %v5638_v45 }
 0x307   :  { %5044 = vmatprep.subr.bf16.mxu0 %v5989_v1 }
 0x309   :  { %5513 = vrot.lane.b32.xlu0 %v5512_v28, %s5997_s28  ;;  %5508 = vrot.lane.b32.xlu1 %v5507_v35, %s5987_s13 }
 0x30a   :  { %5045 = vmatpush3.bf16.msra.mxu0 %v5639_v25  ;;  %v5642_v25 = vld [vmem:[%s7226_s5] sm:$0xff]  }
 0x30b   :  { %5046 = vmatprep.subr.bf16.mxu0 %v5989_v1 }
 0x373   :  { %v5494_v53 = vpop.permute.xlu0 %5493  ;;  %v5489_v39 = vpop.permute.xlu1 %5488 }
 0x374   :  { %v5491_v37 = vunpack.i.h.bf16 %v5489_v39  ;;  %v5490_v54 = vunpack.i.l.bf16 %v5489_v39  ;;  %v5496_v12 = vunpack.i.h.bf16 %v5494_v53  ;;  %v5495_v15 = vunpack.i.l.bf16 %v5494_v53  ;;  %v5640_v53 = vld [vmem:[%s7224_s3 + $0x30] sm:$0xff]  }
 0x375   :  { %5047 = vmatpush3.bf16.msra.mxu0 %v5640_v53  ;;  %v1479_v53 = vld [vmem:[%s7228_s7 + $0x88] sm:$0xff] }
 0x376   :  { %v1100_v42 = vsel %vm878_vm2, %v1062_v40, %v5491_v37  ;;  %v1099_v43 = vsel %vm878_vm2, %v1060_v41, %v5490_v54  ;;  %5048 = vmatprep.subr.bf16.mxu0 %v5989_v1  ;;  %v5641_v37 = vld [vmem:[%s7224_s3 + $0x38] sm:$0xff]   ;;  %v1290_v54 = vld [vmem:[#allocation4 + $0x10] sm:$0x1] }
 0x377   :  { %v5504_v55 = vpop.permute.xlu0 %5503  ;;  %v5499_v46 = vpop.permute.xlu1 %5498  ;;  %v1102_v60 = vsel %vm1101_vm10, %v1099_v43, %v5495_v15  ;;  %v1103_v61 = vsel %vm1101_vm10, %v1100_v42, %v5496_v12  ;;  %v1292_v43 = vld [vmem:[#allocation4 + $0x11] sm:$0x1] }
 0x378   :  { %v5506_v47 = vunpack.i.h.bf16 %v5504_v55  ;;  %v5505_v48 = vunpack.i.l.bf16 %v5504_v55  ;;  %v5501_v16 = vunpack.i.h.bf16 %v5499_v46  ;;  %v5500_v51 = vunpack.i.l.bf16 %v5499_v46 }
 0x379   :  { %5049 = vmatpush3.bf16.msra.mxu0 %v5641_v37  ;;  %v4574_v37 = vld [vmem:[%s7225_s4 + $0x8] sm:$0x7] }
 0x37a   :  { %v1105_v62 = vsel %vm1104_vm11, %v1102_v60, %v5505_v48  ;;  %v1106_v63 = vsel %vm1104_vm11, %v1103_v61, %v5506_v47  ;;  %v1138_v4 = vsel %vm878_vm2, %v1070_v21, %v5501_v16  ;;  %v1137_v23 = vsel %vm878_vm2, %v1068_v20, %v5500_v51  ;;  %v1811_v51 = vld [vmem:[#allocation4 + $0x29] sm:$0x1] }
 0x37b   :  { %v5514_v50 = vpop.permute.xlu0 %5513  ;;  %v5509_v17 = vpop.permute.xlu1 %5508  ;;  %v1143_v0 = vpack.c.bf16 %v1106_v63, %v1105_v62  ;;  %v1269_v20 = vrot.slane %v4565_v19, %v6478_v13  ;;  %v1809_v62 = vld [vmem:[#allocation4 + $0x28] sm:$0x1]  ;;  %v5643_v19 = vld [vmem:[%s7226_s5 + $0x40] sm:$0xff]  }
 0x37c   :  { %v5516_v57 = vunpack.i.h.bf16 %v5514_v50  ;;  %v5515_v2 = vunpack.i.l.bf16 %v5514_v50  ;;  %v5511_v3 = vunpack.i.h.bf16 %v5509_v17  ;;  %v5510_v58 = vunpack.i.l.bf16 %v5509_v17 }
 0x37d   :  { %5030 = vmatprep.mubr.bf16.mxu1 %v1143_v0 }
 0x37e   :  { %v1139_v5 = vsel %vm1101_vm10, %v1137_v23, %v5510_v58  ;;  %v1140_v6 = vsel %vm1101_vm10, %v1138_v4, %v5511_v3 }
 0x37f   :  { %v1141_v30 = vsel %vm1104_vm11, %v1139_v5, %v5515_v2  ;;  %v1142_v7 = vsel %vm1104_vm11, %v1140_v6, %v5516_v57 }
 0x380   :  { %v1144_v11 = vpack.c.bf16 %v1142_v7, %v1141_v30 }
 0x382   :  { %5031 = vmatmul.mubr.bf16.vlgmr.msra.gmra.mrb[16].mxu1 %v1144_v11 }
 0x383   :  { %5072 = vmatprep.mubr.msk.bf16.mxu1 %vm1632_vm14, %v5643_v19 }
 0x455   :  { %v5032_v9 = vpop.f32.mrb[16].mxu1 }
 0x456   :  { %v1256_v56 = vadd.f32 %v5032_v9, %v1164_v44  ;;  %v1247_v21 = vpop.f32.mrb[17].mxu1  ;;  %v1462_v9 = vld [vmem:[%s7228_s7] sm:$0xff] }
 0x457   :  { %v1248_v22 = vadd.f32 %v1247_v21, %v1164_v44  ;;  %v5033_v26 = vpop.f32.mrb[18].mxu1  ;;  %v1465_v21 = vld [vmem:[%s7228_s7 + $0x18] sm:$0xff] }
 0x458   :  { %v1264_v27 = vmax.f32 %v1256_v56, 0.0  ;;  %v1259_v34 = vadd.f32 %v5033_v26, %v1164_v44  ;;  %v1250_v24 = vpop.f32.mrb[19].mxu1  ;;  %v1467_v56 = vld [vmem:[%s7228_s7 + $0x28] sm:$0xff]  ;;  %v1470_v26 = vld [vmem:[%s7228_s7 + $0x40] sm:$0xff] }
 0x459   :  { %v1262_v29 = vmax.f32 %v1248_v22, 0.0  ;;  %v1251_v31 = vadd.f32 %v1250_v24, %v1164_v44  ;;  %v5999_v44 = vmov 0   ;;  %v1463_v22 = vld [vmem:[%s7228_s7 + $0x8] sm:$0xff]  ;;  %v1469_v24 = vld [vmem:[%s7228_s7 + $0x38] sm:$0xff] }
 0x45a   :  { %v1272_v36 = vadd.f32 %v1269_v20, %v1264_v27  ;;  %v1265_v32 = vmax.f32 %v1259_v34, 0.0  ;;  %5547 = vset.pattern.permute.xlu1 %v5999_v44  ;;  %5548 = vset.pattern.permute.xlu0 %v5999_v44  ;;  %v1464_v27 = vld [vmem:[%s7228_s7 + $0x10] sm:$0xff]  ;;  %v1471_v34 = vld [vmem:[%s7228_s7 + $0x48] sm:$0xff] }
 0x45b   :  { %v1270_v38 = vadd.f32 %v1269_v20, %v1262_v29  ;;  %v1263_v49 = vmax.f32 %v1251_v31, 0.0  ;;  %v1473_v29 = vld [vmem:[%s7228_s7 + $0x58] sm:$0xff]  ;;  %v1466_v31 = vld [vmem:[%s7228_s7 + $0x20] sm:$0xff] }
 0x45c   :  { %v1273_v33 = vadd.f32 %v1269_v20, %v1265_v32  ;;  %v1472_v32 = vld [vmem:[%s7228_s7 + $0x50] sm:$0xff] }
 0x45d   :  { %v1274_v28 = vmax.f32 %v1270_v38, %v1272_v36  ;;  %v1271_v35 = vadd.f32 %v1269_v20, %v1263_v49  ;;  %v1468_v20 = vld [vmem:[%s7228_s7 + $0x30] sm:$0xff]  ;;  %v1478_v36 = vld [vmem:[%s7228_s7 + $0x80] sm:$0xff]  ;;  %v1475_v38 = vld [vmem:[%s7228_s7 + $0x68] sm:$0xff] }
 0x45e   :  { %v1477_v49 = vld [vmem:[%s7228_s7 + $0x78] sm:$0xff] }
 0x45f   :  { %1281 = vst.msk [vmem:[#allocation4 + $0x8] sm:$0xff] %vm878_vm2, %v1274_v28  ;;  %v1275_v39 = vmax.f32 %v1271_v35, %v1273_v33  ;;  %v1480_v33 = vld [vmem:[%s7228_s7 + $0x90] sm:$0xff]  ;;  %v1474_v28 = vld [vmem:[%s7228_s7 + $0x60] sm:$0xff]  ;;  %v1481_v35 = vld [vmem:[%s7228_s7 + $0x98] sm:$0xff] }
 0x461   :  { %1282 = vst.msk [vmem:[#allocation4 + $0x20] sm:$0xff] %vm878_vm2, %v1275_v39  ;;  %v1476_v39 = vld [vmem:[%s7228_s7 + $0x70] sm:$0xff]  ;;  %s5960_s7 = scalar_lea.vmem %s4546_s14, 32 }
 0x462   :  { %p5961_p8 = scmp.ne.s32.totalorder %s4546_s14, %s5960_s7  ;;  %p5966_p10 = scmp.lt.s32.totalorder %s5960_s7, %s5960_s7 }
 0x464   :  { %p5967_p11 = por %p5966_p10, %p5965_p9 }
 0x466   :  { %v1289_v12 = vld [vmem:[#allocation4 + $0x8] sm:$0xff]  ;;  %p5968_p12 = pnand %p5967_p11, %p5961_p8 }
 0x467   :  { %v1287_v15 = vld [vmem:[#allocation4 + $0x7] sm:$0xff]  ;;  %v1288_v40 = vld [vmem:[#allocation4 + $0xf] sm:$0x1]  ;;  %v5522_v41 = vpack.i.bf16 %v1290_v54, %v1289_v12  ;;  %v6644_v54 = vrot.slane %v4574_v37, %v6471_v18 }
 0x468   :  { %v5517_v42 = vpack.i.bf16 %v1288_v40, %v1287_v15  ;;  %v1806_v55 = vld [vmem:[#allocation4 + $0x1f] sm:$0xff]  ;;  %v1807_v46 = vld [vmem:[#allocation4 + $0x27] sm:$0x1]  ;;  %v1291_v47 = vld [vmem:[#allocation4 + $0x9] sm:$0xff] }
 0x469   :  { %5523 = vrot.lane.b32.xlu0 %v5522_v41, %s5987_s13  ;;  %v5532_v48 = vpack.i.bf16 %v1807_v46, %v1806_v55  ;;  %v5527_v16 = vpack.i.bf16 %v1292_v43, %v1291_v47  ;;  %v1810_v60 = vld [vmem:[#allocation4 + $0x21] sm:$0xff]  ;;  %v1286_v23 = vld [vmem:[#allocation4 + $0xe] sm:$0x1]  ;;  %v6648_v43 = vrot.slane %v4574_v37, %v6478_v13 }
 0x46a   :  { %5518 = vrot.lane.b32.xlu1 %v5517_v42, %s5996_s27  ;;  %v1808_v61 = vld [vmem:[#allocation4 + $0x20] sm:$0xff]  ;;  %v5542_v63 = vpack.i.bf16 %v1811_v51, %v1810_v60  ;;  %v5644_v13 = vld [vmem:[%s7226_s5 + $0x8] sm:$0xff]  }
 0x46b   :  { %v5537_v50 = vpack.i.bf16 %v1809_v62, %v1808_v61  ;;  %v1285_v4 = vld [vmem:[#allocation4 + $0x6] sm:$0xff] }
 0x46c   :  { %v5670_v37 = vld [vmem:[%s7226_s5] sm:$0xff]  }
 0x46d   :  { %5533 = vrot.lane.b32.xlu0 %v5532_v48, %s5996_s27  ;;  %v6000_v48 = vmov 65535  }
 0x46e   :  { %5528 = vrot.lane.b32.xlu1 %v5527_v16, %s5997_s28  ;;  %v1665_v16 = vsel %vm1663_vm15, 4294967295, %v6000_v48 }
 0x46f   :  { %v6654_v60 = vsel %vm1664_vm0, %v1665_v16, 0 }
 0x471   :  { %5543 = vrot.lane.b32.xlu0 %v5542_v63, %s5997_s28  ;;  %v5645_v63 = vld [vmem:[%s7226_s5 + $0x48] sm:$0xff]  }
 0x472   :  { %5538 = vrot.lane.b32.xlu1 %v5537_v50, %s5987_s13  ;;  %v5646_v50 = vld [vmem:[%s7224_s3] sm:$0xff]  }
 0x475   :  { %1489 = vperm.xlu0 %5548, %v1463_v22  }
 0x476   :  { %1484 = vperm.xlu1 %5547, %v1462_v9  }
 0x479   :  { %1494 = vperm.xlu0 %5548, %v1464_v27  }
 0x47a   :  { %1509 = vperm.xlu1 %5547, %v1467_v56  }
 0x47d   :  { %1519 = vperm.xlu0 %5548, %v1469_v24  }
 0x47e   :  { %1514 = vperm.xlu1 %5547, %v1468_v20  }
 0x481   :  { %1504 = vperm.xlu0 %5548, %v1466_v31  }
 0x482   :  { %1499 = vperm.xlu1 %5547, %v1465_v21  }
 0x485   :  { %1534 = vperm.xlu0 %5548, %v1472_v32  }
 0x486   :  { %1524 = vperm.xlu1 %5547, %v1470_v26  }
 0x489   :  { %1559 = vperm.xlu0 %5548, %v1477_v49  }
 0x48a   :  { %1529 = vperm.xlu1 %5547, %v1471_v34  }
 0x48d   :  { %1544 = vperm.xlu0 %5548, %v1474_v28  }
 0x48e   :  { %1539 = vperm.xlu1 %5547, %v1473_v29  }
 0x491   :  { %1569 = vperm.xlu0 %5548, %v1479_v53  }
 0x492   :  { %1564 = vperm.xlu1 %5547, %v1478_v36  }
 0x495   :  { %1554 = vperm.xlu0 %5548, %v1476_v39  }
 0x496   :  { %1549 = vperm.xlu1 %5547, %v1475_v38  }
 0x499   :  { %1995 = vperm.xlu0 %5548, %v1462_v9  }
 0x49a   :  { %1574 = vperm.xlu1 %5547, %v1480_v33  }
 0x49d   :  { %2045 = vperm.xlu0 %5548, %v1472_v32  }
 0x49e   :  { %1579 = vperm.xlu1 %5547, %v1481_v35  }
 0x4a1   :  { %2000 = vperm.xlu0 %5548, %v1463_v22   ;;  %v1804_v22 = vld [vmem:[#allocation4 + $0x1e] sm:$0xff] }
 0x4a2   :  { %2020 = vperm.xlu1 %5547, %v1467_v56   ;;  %v5662_v56 = vld [vmem:[%s7226_s5 + $0x38] sm:$0xff]  }
 0x4a5   :  { %2005 = vperm.xlu0 %5548, %v1464_v27   ;;  %v5666_v27 = vld [vmem:[%s7227_s6 + $0x30] sm:$0xff]  }
 0x4a6   :  { %2070 = vperm.xlu1 %5547, %v1477_v49  }
 0x4a9   :  { %2050 = vperm.xlu0 %5548, %v1473_v29  }
 0x4aa   :  { %2025 = vperm.xlu1 %5547, %v1468_v20   ;;  %v5663_v20 = vld [vmem:[%s7227_s6 + $0x28] sm:$0xff]  }
 0x4ad   :  { %2055 = vperm.xlu0 %5548, %v1474_v28   ;;  %v5667_v28 = vld [vmem:[%s7227_s6 + $0x38] sm:$0xff]  }
 0x4ae   :  { %2030 = vperm.xlu1 %5547, %v1469_v24  }
 0x4b1   :  { %2010 = vperm.xlu0 %5548, %v1465_v21   ;;  %v5664_v21 = vld [vmem:[%s7224_s3 + $0x30] sm:$0xff]  }
 0x4b2   :  { %2075 = vperm.xlu1 %5547, %v1478_v36  }
 0x4b5   :  { %2015 = vperm.xlu0 %5548, %v1466_v31  }
 0x4b6   :  { %2080 = vperm.xlu1 %5547, %v1479_v53  }
 0x4b9   :  { %2060 = vperm.xlu0 %5548, %v1475_v38   ;;  %v5665_v38 = vld [vmem:[%s7224_s3 + $0x38] sm:$0xff]  }
 0x4ba   :  { %2035 = vperm.xlu1 %5547, %v1470_v26   ;;  %v1805_v26 = vld [vmem:[#allocation4 + $0x26] sm:$0x1] }
 0x4bd   :  { %2065 = vperm.xlu0 %5548, %v1476_v39   ;;  %v5669_v39 = vld [vmem:[%s7227_s6 + $0x48] sm:$0xff]  }
 0x4be   :  { %2040 = vperm.xlu1 %5547, %v1471_v34  }
 0x4c2   :  { %2085 = vperm.xlu1 %5547, %v1480_v33  }
 0x4c6   :  { %2090 = vperm.xlu1 %5547, %v1481_v35   ;;  %v5668_v35 = vld [vmem:[%s7227_s6 + $0x40] sm:$0xff]  }
 0x4db   :  { %v5524_v17 = vpop.permute.xlu0 %5523 }
 0x4dc   :  { %v5519_v0 = vpop.permute.xlu1 %5518  ;;  %v5526_v3 = vunpack.i.h.bf16 %v5524_v17  ;;  %v5525_v58 = vunpack.i.l.bf16 %v5524_v17  ;;  %v5648_v17 = vld [vmem:[%s7226_s5 + $0x10] sm:$0xff]  }
 0x4dd   :  { %v5521_v57 = vunpack.i.h.bf16 %v5519_v0  ;;  %v5520_v2 = vunpack.i.l.bf16 %v5519_v0  ;;  %v5649_v0 = vld [vmem:[%s7227_s6] sm:$0xff]  }
 0x4df   :  { %v1317_v5 = vsel %vm878_vm2, %v1285_v4, %v5520_v2  ;;  %v1318_v6 = vsel %vm878_vm2, %v1286_v23, %v5521_v57  ;;  %v5647_v57 = vld [vmem:[%s7224_s3 + $0x8] sm:$0xff]   ;;  %v5650_v2 = vld [vmem:[%s7226_s5 + $0x18] sm:$0xff]   ;;  %v5654_v4 = vld [vmem:[%s7226_s5 + $0x20] sm:$0xff]  }
 0x4e0   :  { %v5529_v30 = vpop.permute.xlu1 %5528  ;;  %v1319_v59 = vsel %vm1101_vm10, %v1317_v5, %v5525_v58  ;;  %v1320_v8 = vsel %vm1101_vm10, %v1318_v6, %v5526_v3  ;;  %v5651_v3 = vld [vmem:[%s7227_s6 + $0x8] sm:$0xff]   ;;  %v5652_v58 = vld [vmem:[%s7224_s3 + $0x10] sm:$0xff]   ;;  %v5653_v5 = vld [vmem:[%s7224_s3 + $0x18] sm:$0xff]  }
 0x4e1   :  { %v5531_v7 = vunpack.i.h.bf16 %v5529_v30  ;;  %v5530_v11 = vunpack.i.l.bf16 %v5529_v30  ;;  %v5655_v23 = vld [vmem:[%s7227_s6 + $0x10] sm:$0xff]   ;;  %v5656_v6 = vld [vmem:[%s7226_s5 + $0x28] sm:$0xff]   ;;  %v5657_v30 = vld [vmem:[%s7227_s6 + $0x18] sm:$0xff]  }
 0x4e3   :  { %v1321_v10 = vsel %vm1104_vm11, %v1319_v59, %v5530_v11  ;;  %v1322_v14 = vsel %vm1104_vm11, %v1320_v8, %v5531_v7  ;;  %v5658_v7 = vld [vmem:[%s7224_s3 + $0x20] sm:$0xff]   ;;  %v5660_v11 = vld [vmem:[%s7226_s5 + $0x30] sm:$0xff]   ;;  %v5534_v59 = vpop.permute.xlu0 %5533 }
 0x4e4   :  { %v1323_v45 = vpack.c.bf16 %v1322_v14, %v1321_v10  ;;  %v5661_v8 = vld [vmem:[%s7227_s6 + $0x20] sm:$0xff]   ;;  %v5539_v10 = vpop.permute.xlu1 %5538  ;;  %v5659_v14 = vld [vmem:[%s7224_s3 + $0x28] sm:$0xff]  }
 0x4e5   :  { %v5540_v9 = vunpack.i.l.bf16 %v5539_v10 }
 0x4e6   :  { %5051 = vmatmul.mubr.bf16.vlgmr.msra.gmra.mrb[0].mxu0 %v1323_v45  ;;  %v5536_v45 = vunpack.i.h.bf16 %v5534_v59 }
 0x4e7   :  { %5056 = vmatprep.mubr.msk.bf16.mxu0 %vm1632_vm14, %v5642_v25  ;;  %v5535_v25 = vunpack.i.l.bf16 %v5534_v59  ;;  %v5544_v19 = vpop.permute.xlu0 %5543 }
 0x4e8   :  { %v1837_v34 = vsel %vm878_vm2, %v1805_v26, %v5536_v45  ;;  %v5546_v29 = vunpack.i.h.bf16 %v5544_v19  ;;  %v5545_v31 = vunpack.i.l.bf16 %v5544_v19 }
 0x4e9   :  { %v1836_v24 = vsel %vm878_vm2, %v1804_v22, %v5535_v25 }
 0x4ea   :  { %v1838_v32 = vsel %vm1101_vm10, %v1836_v24, %v5540_v9 }
 0x4eb   :  { %v1840_v33 = vsel %vm1104_vm11, %v1838_v32, %v5545_v31 }
 0x5b9   :  { %v1426_v12 = vpop.f32.mrb[0].mxu0 }
 0x5ba   :  { %v1427_v15 = vadd.f32 %v1426_v12, %v6644_v54  ;;  %v5052_v40 = vpop.f32.mrb[1].mxu0  ;;  %v1485_v12 = vpop.permute.xlu1 %1484 }
 0x5bb   :  { %v1429_v41 = vpop.f32.mrb[2].mxu0 }
 0x5bc   :  { %v1433_v42 = vmax.f32 %v1427_v15, 0.0  ;;  %v1430_v55 = vadd.f32 %v1429_v41, %v6644_v54  ;;  %v5053_v46 = vpop.f32.mrb[3].mxu0 }
 0x5be   :  { %v1434_v47 = vmax.f32 %v1430_v55, 0.0  ;;  %v1439_v18 = vadd.f32 %v6648_v43, %v1433_v42  ;;  %v1510_v15 = vpop.permute.xlu1 %1509  ;;  %v1490_v42 = vpop.permute.xlu0 %1489 }
 0x5c0   :  { %v1440_v51 = vadd.f32 %v6648_v43, %v1434_v47 }
 0x5c2   :  { %v1461_v61 = vpack.c.bf16 %v1440_v51, %v1439_v18  ;;  %v1515_v40 = vpop.permute.xlu1 %1514  ;;  %v1495_v46 = vpop.permute.xlu0 %1494 }
 0x5c4   :  { %v1668_v62 = vand.u32 %v6654_v60, %v1461_v61 }
 0x5c6   :  { %5054 = vmatprep.subr.bf16.mxu0 %v1668_v62  ;;  %5186 = vmatprep.subr.bf16.mxu1 %v1668_v62  ;;  %v1500_v41 = vpop.permute.xlu1 %1499  ;;  %v1520_v48 = vpop.permute.xlu0 %1519 }
 0x5c7   :  { %5055 = vmatpush3.bf16.msra.mxu0 %v1668_v62  ;;  %5187 = vmatpush3.bf16.msra.mxu1 %v1668_v62 }
 0x5c8   :  { %5076 = vmatprep.subr.bf16.mxu0 %v5989_v1  ;;  %5118 = vmatprep.subr.bf16.mxu1 %v5999_v44 }
 0x5ca   :  { %5057 = vmatmul.mubr.msk.bf16.vlgmr.msra.gmra.mrb[4].mxu0 %vm1632_vm14, %v5644_v13  ;;  %5073 = vmatmul.mubr.msk.bf16.vlgmr.msra.gmra.mrb[20].mxu1 %vm1632_vm14, %v5645_v63  ;;  %v6775_v55 = vpop.permute.xlu1 %1524  ;;  %v1505_v18 = vpop.permute.xlu0 %1504 }
 0x5cb   :  { %5077 = vmatpush3.bf16.msra.mxu0 %v5646_v50  ;;  %5119 = vmatpush3.bf16.msra.mxu1 %v5999_v44  ;;  %v5541_v44 = vunpack.i.h.bf16 %v5539_v10 }
 0x5cc   :  { %5078 = vmatprep.subr.bf16.mxu0 %v5989_v1  ;;  %5060 = vmatprep.mubr.msk.bf16.mxu0 %vm1632_vm14, %v5648_v17 }
 0x5cd   :  { %5120 = vmatprep.mubr.msk.bf16.mxu1 %vm2400_vm1, %v5649_v0  ;;  %v1839_v36 = vsel %vm1101_vm10, %v1837_v34, %v5541_v44 }
 0x5ce   :  { %v1841_v49 = vsel %vm1104_vm11, %v1839_v36, %v5546_v29  ;;  %v6777_v47 = vpop.permute.xlu1 %1529  ;;  %v6781_v61 = vpop.permute.xlu0 %1534 }
 0x5cf   :  { %5079 = vmatpush3.bf16.msra.mxu0 %v5647_v57  ;;  %v1842_v53 = vpack.c.bf16 %v1841_v49, %v1840_v33 }
 0x5d0   :  { %5080 = vmatprep.subr.bf16.mxu0 %v5989_v1 }
 0x5d2   :  { %5061 = vmatmul.mubr.msk.bf16.gmra.mrb[8].mxu0 %vm1632_vm14, %v5650_v2  ;;  %5121 = vmatmul.mubr.msk.bf16.vlgmr.msra.gmra.mrb[24].mxu1 %vm2400_vm1, %v5651_v3  ;;  %v6779_v16 = vpop.permute.xlu1 %1539  ;;  %v6785_v13 = vpop.permute.xlu0 %1559 }
 0x5d3   :  { %5081 = vmatpush3.bf16.msra.mxu0 %v5652_v58  ;;  %5064 = vmatprep.mubr.msk.bf16.mxu0 %vm1632_vm14, %v5654_v4 }
 0x5d4   :  { %5082 = vmatprep.subr.bf16.mxu0 %v5989_v1  ;;  %5124 = vmatprep.mubr.msk.bf16.mxu1 %vm2400_vm1, %v5655_v23 }
 0x5d6   :  { %v1565_v51 = vpop.permute.xlu1 %1564  ;;  %v6787_v50 = vpop.permute.xlu0 %1544 }
 0x5d7   :  { %5083 = vmatpush3.bf16.msra.mxu0 %v5653_v5 }
 0x5d8   :  { %5084 = vmatprep.subr.bf16.mxu0 %v5989_v1 }
 0x5da   :  { %5065 = vmatmul.mubr.msk.bf16.gmra.mrb[12].mxu0 %vm1632_vm14, %v5656_v6  ;;  %5125 = vmatmul.mubr.msk.bf16.gmra.mrb[28].mxu1 %vm2400_vm1, %v5657_v30  ;;  %v6783_v62 = vpop.permute.xlu1 %1549  ;;  %v1570_v0 = vpop.permute.xlu0 %1569 }
 0x5db   :  { %5085 = vmatpush3.bf16.msra.mxu0 %v5658_v7  ;;  %5068 = vmatprep.mubr.msk.bf16.mxu0 %vm1632_vm14, %v5660_v11 }
 0x5dc   :  { %5086 = vmatprep.subr.bf16.mxu0 %v5989_v1  ;;  %5128 = vmatprep.mubr.msk.bf16.mxu1 %vm2400_vm1, %v5661_v8 }
 0x5de   :  { %v1575_v63 = vpop.permute.xlu1 %1574 }
 0x5df   :  { %5087 = vmatpush3.bf16.msra.mxu0 %v5659_v14 }
 0x5e0   :  { %5088 = vmatprep.subr.bf16.mxu0 %v5989_v1 }
 0x5e2   :  { %5069 = vmatmul.mubr.msk.bf16.gmra.mrb[16].mxu0 %vm1632_vm14, %v5662_v56  ;;  %5129 = vmatmul.mubr.msk.bf16.gmra.mrb[32].mxu1 %vm2400_vm1, %v5663_v20  ;;  %v1580_v17 = vpop.permute.xlu1 %1579 }
 0x5e3   :  { %5089 = vmatpush3.bf16.msra.mxu0 %v5664_v21  ;;  %5092 = vmatprep.mubr.msk.bf16.mxu0 %vm5998_vm13, %v5989_v1 }
 0x5e4   :  { %5090 = vmatprep.subr.bf16.mxu0 %v5989_v1  ;;  %5132 = vmatprep.mubr.msk.bf16.mxu1 %vm2400_vm1, %v5666_v27 }
 0x5e7   :  { %5091 = vmatpush3.bf16.msra.mxu0 %v5665_v38 }
 0x5ea   :  { %5093 = vmatmul.mubr.bf16.vlgmr.msra.gmra.mrb[20].mxu0 %v1842_v53  ;;  %5133 = vmatmul.mubr.msk.bf16.gmra.mrb[36].mxu1 %vm2400_vm1, %v5667_v28 }
 0x5eb   :  { %5136 = vmatprep.mubr.msk.bf16.mxu1 %vm2400_vm1, %v5668_v35  ;;  %5098 = vmatprep.mubr.msk.bf16.mxu0 %vm1632_vm14, %v5670_v37 }
 0x5f2   :  { %5137 = vmatmul.mubr.msk.bf16.gmra.mrb[40].mxu1 %vm2400_vm1, %v5669_v39 }
 0x69d   :  { %v5058_v57 = vpop.f32.mrb[4].mxu0  ;;  %v5074_v2 = vpop.f32.mrb[20].mxu1 }
 0x69e   :  { %v1713_v3 = vadd.f32 %v5058_v57, %v1495_v46  ;;  %v1777_v58 = vadd.f32 %v5074_v2, %v1575_v63  ;;  %v1704_v4 = vpop.f32.mrb[5].mxu0  ;;  %v1768_v23 = vpop.f32.mrb[21].mxu1 }
 0x69f   :  { %v1705_v5 = vadd.f32 %v1704_v4, %v1485_v12  ;;  %v1769_v6 = vadd.f32 %v1768_v23, %v1565_v51  ;;  %v5059_v30 = vpop.f32.mrb[6].mxu0  ;;  %v5075_v7 = vpop.f32.mrb[22].mxu1 }
 0x6a0   :  { %1785 = vst.msk [vmem:[#allocation5 + $0x10] sm:$0xff] %vm878_vm2, %v1713_v3  ;;  %1801 = vst.msk [vmem:[#allocation5 + $0x90] sm:$0xff] %vm878_vm2, %v1777_v58  ;;  %v1716_v11 = vadd.f32 %v5059_v30, %v1500_v41  ;;  %v1780_v59 = vadd.f32 %v5075_v7, %v1580_v17  ;;  %v1707_v8 = vpop.f32.mrb[7].mxu0  ;;  %v1771_v10 = vpop.f32.mrb[23].mxu1 }
 0x6a1   :  { %1783 = vst.msk [vmem:[#allocation5] sm:$0xff] %vm878_vm2, %v1705_v5  ;;  %1799 = vst.msk [vmem:[#allocation5 + $0x80] sm:$0xff] %vm878_vm2, %v1769_v6  ;;  %v1708_v14 = vadd.f32 %v1707_v8, %v1490_v42  ;;  %v1772_v45 = vadd.f32 %v1771_v10, %v1570_v0  ;;  %v1555_v30 = vpop.permute.xlu0 %1554 }
 0x6a2   :  { %1786 = vst.msk [vmem:[#allocation5 + $0x18] sm:$0xff] %vm878_vm2, %v1716_v11  ;;  %1802 = vst.msk [vmem:[#allocation5 + $0x98] sm:$0xff] %vm878_vm2, %v1780_v59 }
 0x6a3   :  { %1784 = vst.msk [vmem:[#allocation5 + $0x8] sm:$0xff] %vm878_vm2, %v1708_v14  ;;  %1800 = vst.msk [vmem:[#allocation5 + $0x88] sm:$0xff] %vm878_vm2, %v1772_v45 }
 0x6a5   :  { %v5062_v25 = vpop.f32.mrb[8].mxu0  ;;  %v5122_v19 = vpop.f32.mrb[24].mxu1 }
 0x6a6   :  { %v1729_v44 = vadd.f32 %v5062_v25, %v1515_v40  ;;  %v1720_v9 = vpop.f32.mrb[9].mxu0  ;;  %v2468_v56 = vpop.f32.mrb[25].mxu1 }
 0x6a7   :  { %v2312_v20 = vld [vmem:[#allocation5 + $0x10] sm:$0xff]  ;;  %v1721_v21 = vadd.f32 %v1720_v9, %v1505_v18  ;;  %v5063_v22 = vpop.f32.mrb[10].mxu0  ;;  %v5123_v26 = vpop.f32.mrb[26].mxu1 }
 0x6a8   :  { %1789 = vst.msk [vmem:[#allocation5 + $0x30] sm:$0xff] %vm878_vm2, %v1729_v44  ;;  %v2549_v27 = vadd.f32 %v5122_v19, %v2312_v20  ;;  %v2310_v34 = vld [vmem:[#allocation5] sm:$0xff]  ;;  %v1732_v24 = vadd.f32 %v5063_v22, %v1520_v48  ;;  %v1723_v29 = vpop.f32.mrb[11].mxu0  ;;  %v2471_v31 = vpop.f32.mrb[27].mxu1 }
 0x6a9   :  { %1787 = vst.msk [vmem:[#allocation5 + $0x20] sm:$0xff] %vm878_vm2, %v1721_v21  ;;  %v2547_v36 = vadd.f32 %v2468_v56, %v2310_v34  ;;  %v2313_v32 = vld [vmem:[#allocation5 + $0x18] sm:$0xff]  ;;  %v1724_v38 = vadd.f32 %v1723_v29, %v1510_v15 }
 0x6aa   :  { %v4653_v49 = vmul.f32 -1.442695, %v2549_v27  ;;  %1790 = vst.msk [vmem:[#allocation5 + $0x38] sm:$0xff] %vm878_vm2, %v1732_v24  ;;  %v2550_v33 = vadd.f32 %v5123_v26, %v2313_v32  ;;  %v2311_v28 = vld [vmem:[#allocation5 + $0x8] sm:$0xff] }
 0x6ab   :  { %v4651_v35 = vmul.f32 -1.442695, %v2547_v36  ;;  %1788 = vst.msk [vmem:[#allocation5 + $0x28] sm:$0xff] %vm878_vm2, %v1724_v38  ;;  %v2548_v53 = vadd.f32 %v2471_v31, %v2311_v28 }
 0x6ac   :  { %5778 = vpow2.f32 %v4653_v49  ;;  %v4654_v39 = vmul.f32 -1.442695, %v2550_v33 }
 0x6ad   :  { %5780 = vpow2.f32 %v4651_v35  ;;  %v4652_v37 = vmul.f32 -1.442695, %v2548_v53  ;;  %v5066_v12 = vpop.f32.mrb[12].mxu0  ;;  %v5126_v40 = vpop.f32.mrb[28].mxu1 }
 0x6ae   :  { %5782 = vpow2.f32 %v4654_v39  ;;  %v1745_v41 = vadd.f32 %v5066_v12, %v6781_v61  ;;  %v1736_v42 = vpop.f32.mrb[13].mxu0  ;;  %v2484_v15 = vpop.f32.mrb[29].mxu1 }
 0x6af   :  { %5784 = vpow2.f32 %v4652_v37  ;;  %v2316_v46 = vld [vmem:[#allocation5 + $0x30] sm:$0xff]  ;;  %v1737_v48 = vadd.f32 %v1736_v42, %v6775_v55  ;;  %v5067_v18 = vpop.f32.mrb[14].mxu0  ;;  %v5127_v51 = vpop.f32.mrb[30].mxu1 }
 0x6b0   :  { %1793 = vst.msk [vmem:[#allocation5 + $0x50] sm:$0xff] %vm878_vm2, %v1745_v41  ;;  %v2553_v63 = vadd.f32 %v5126_v40, %v2316_v46  ;;  %v2314_v17 = vld [vmem:[#allocation5 + $0x20] sm:$0xff]  ;;  %v1748_v0 = vadd.f32 %v5067_v18, %v6779_v16  ;;  %v1739_v57 = vpop.f32.mrb[15].mxu0  ;;  %v2487_v2 = vpop.f32.mrb[31].mxu1 }
 0x6b1   :  { %1791 = vst.msk [vmem:[#allocation5 + $0x40] sm:$0xff] %vm878_vm2, %v1737_v48  ;;  %v2551_v3 = vadd.f32 %v2484_v15, %v2314_v17  ;;  %v2317_v61 = vld [vmem:[#allocation5 + $0x38] sm:$0xff]  ;;  %v1740_v58 = vadd.f32 %v1739_v57, %v6777_v47 }
 0x6b2   :  { %v4657_v4 = vmul.f32 -1.442695, %v2553_v63  ;;  %1794 = vst.msk [vmem:[#allocation5 + $0x58] sm:$0xff] %vm878_vm2, %v1748_v0  ;;  %v2554_v55 = vadd.f32 %v5127_v51, %v2317_v61  ;;  %v2315_v23 = vld [vmem:[#allocation5 + $0x28] sm:$0xff] }
 0x6b3   :  { %v4655_v5 = vmul.f32 -1.442695, %v2551_v3  ;;  %1792 = vst.msk [vmem:[#allocation5 + $0x48] sm:$0xff] %vm878_vm2, %v1740_v58  ;;  %v2552_v6 = vadd.f32 %v2487_v2, %v2315_v23 }
 0x6b4   :  { %5786 = vpow2.f32 %v4657_v4  ;;  %v4658_v8 = vmul.f32 -1.442695, %v2554_v55 }
 0x6b5   :  { %5788 = vpow2.f32 %v4655_v5  ;;  %v4656_v16 = vmul.f32 -1.442695, %v2552_v6  ;;  %v5070_v7 = vpop.f32.mrb[16].mxu0  ;;  %v5130_v11 = vpop.f32.mrb[32].mxu1 }
 0x6b6   :  { %v5779_v59 = vpop.eup %5778  ;;  %v1761_v10 = vadd.f32 %v5070_v7, %v1555_v30  ;;  %v1752_v14 = vpop.f32.mrb[17].mxu0 }
 0x6b7   :  { %v2500_v47 = vpop.f32.mrb[33].mxu1  ;;  %v5781_v45 = vpop.eup %5780  ;;  %v2614_v25 = vadd.f32 1.0, %v5779_v59  ;;  %5790 = vpow2.f32 %v4656_v16  ;;  %v2320_v19 = vld [vmem:[#allocation5 + $0x50] sm:$0xff]  ;;  %v1753_v44 = vadd.f32 %v1752_v14, %v6787_v50 }
 0x6b8   :  { %v5071_v9 = vpop.f32.mrb[18].mxu0  ;;  %v5131_v56 = vpop.f32.mrb[34].mxu1  ;;  %v2612_v21 = vadd.f32 1.0, %v5781_v45  ;;  %1797 = vst.msk [vmem:[#allocation5 + $0x70] sm:$0xff] %vm878_vm2, %v1761_v10  ;;  %v2318_v22 = vld [vmem:[#allocation5 + $0x40] sm:$0xff]  ;;  %v2557_v31 = vadd.f32 %v5130_v11, %v2320_v19  ;;  %5792 = vpow2.f32 %v4658_v8 }
 0x6b9   :  { %v5783_v20 = vpop.eup %5782  ;;  %v1764_v26 = vadd.f32 %v5071_v9, %v6785_v13  ;;  %v1755_v27 = vpop.f32.mrb[19].mxu0  ;;  %1795 = vst.msk [vmem:[#allocation5 + $0x60] sm:$0xff] %vm878_vm2, %v1753_v44  ;;  %v2555_v36 = vadd.f32 %v2500_v47, %v2318_v22  ;;  %v2321_v32 = vld [vmem:[#allocation5 + $0x58] sm:$0xff]  ;;  %5794 = vrcp.f32 %v2614_v25 }
 0x6ba   :  { %v2503_v34 = vpop.f32.mrb[35].mxu1  ;;  %v5785_v24 = vpop.eup %5784  ;;  %v2615_v29 = vadd.f32 1.0, %v5783_v20  ;;  %v1756_v50 = vadd.f32 %v1755_v27, %v6783_v62  ;;  %v2558_v38 = vadd.f32 %v5131_v56, %v2321_v32  ;;  %v2319_v49 = vld [vmem:[#allocation5 + $0x48] sm:$0xff]  ;;  %5796 = vrcp.f32 %v2612_v21 }
 0x6bb   :  { %1798 = vst.msk [vmem:[#allocation5 + $0x78] sm:$0xff] %vm878_vm2, %v1764_v26  ;;  %v2613_v33 = vadd.f32 1.0, %v5785_v24  ;;  %v4659_v28 = vmul.f32 -1.442695, %v2555_v36  ;;  %v2556_v13 = vadd.f32 %v2503_v34, %v2319_v49  ;;  %v4661_v35 = vmul.f32 -1.442695, %v2557_v31 }
 0x6bc   :  { %1796 = vst.msk [vmem:[#allocation5 + $0x68] sm:$0xff] %vm878_vm2, %v1756_v50  ;;  %5798 = vrcp.f32 %v2615_v29  ;;  %v4662_v62 = vmul.f32 -1.442695, %v2558_v38  ;;  %v2329_v36 = vld [vmem:[#allocation5 + $0x98] sm:$0xff]  ;;  %v2327_v49 = vld [vmem:[#allocation5 + $0x88] sm:$0xff] }
 0x6bd   :  { %v4660_v53 = vmul.f32 -1.442695, %v2556_v13  ;;  %v1941_v39 = vpop.f32.mrb[20].mxu0  ;;  %v5134_v37 = vpop.f32.mrb[36].mxu1  ;;  %5800 = vpow2.f32 %v4659_v28 }
 0x6be   :  { %v5787_v12 = vpop.eup %5786  ;;  %v1942_v40 = vadd.f32 %v1941_v39, %v6644_v54  ;;  %v5094_v41 = vpop.f32.mrb[21].mxu0  ;;  %5802 = vrcp.f32 %v2613_v33  ;;  %v5671_v33 = vld [vmem:[%s7226_s5 + $0x8] sm:$0xff]  }
 0x6bf   :  { %v2516_v42 = vpop.f32.mrb[37].mxu1  ;;  %v5789_v15 = vpop.eup %5788  ;;  %v2618_v46 = vadd.f32 1.0, %v5787_v12  ;;  %v2324_v48 = vld [vmem:[#allocation5 + $0x70] sm:$0xff]  ;;  %5804 = vpow2.f32 %v4660_v53 }
 0x6c0   :  { %v1944_v18 = vpop.f32.mrb[22].mxu0  ;;  %v5135_v51 = vpop.f32.mrb[38].mxu1  ;;  %v2561_v63 = vadd.f32 %v5134_v37, %v2324_v48  ;;  %v2322_v17 = vld [vmem:[#allocation5 + $0x60] sm:$0xff]  ;;  %v2616_v3 = vadd.f32 1.0, %v5789_v15  ;;  %5806 = vpow2.f32 %v4661_v35  ;;  %v1948_v61 = vmax.f32 %v1942_v40, 0.0 }
 0x6c1   :  { %v5095_v0 = vpop.f32.mrb[23].mxu0  ;;  %v2519_v57 = vpop.f32.mrb[39].mxu1  ;;  %v1945_v58 = vadd.f32 %v1944_v18, %v6644_v54  ;;  %5808 = vpow2.f32 %v4662_v62  ;;  %v2559_v5 = vadd.f32 %v2516_v42, %v2322_v17  ;;  %v2328_v54 = vld [vmem:[#allocation5 + $0x90] sm:$0xff] }
 0x6c2   :  { %v5791_v2 = vpop.eup %5790  ;;  %v2325_v4 = vld [vmem:[#allocation5 + $0x78] sm:$0xff]  ;;  %v4665_v23 = vmul.f32 -1.442695, %v2561_v63  ;;  %5810 = vrcp.f32 %v2618_v46  ;;  %v1950_v8 = vadd.f32 %v1948_v61, %v6648_v43  ;;  %v5673_v46 = vld [vmem:[%s7226_s5 + $0x18] sm:$0xff]   ;;  %v5674_v17 = vld [vmem:[%s7226_s5 + $0x20] sm:$0xff]  }
 0x6c3   :  { %v2617_v55 = vadd.f32 1.0, %v5791_v2  ;;  %v2323_v6 = vld [vmem:[#allocation5 + $0x68] sm:$0xff]  ;;  %v1949_v30 = vmax.f32 %v1945_v58, 0.0  ;;  %v2562_v16 = vadd.f32 %v5135_v51, %v2325_v4  ;;  %v5793_v7 = vpop.eup %5792  ;;  %v4663_v45 = vmul.f32 -1.442695, %v2559_v5 }
 0x6c4   :  { %v2560_v11 = vadd.f32 %v2519_v57, %v2323_v6  ;;  %v6818_v59 = vpop.eup %5794  ;;  %v2619_v22 = vadd.f32 1.0, %v5793_v7 }
 0x6c5   :  { %5812 = vrcp.f32 %v2617_v55  ;;  %v1951_v10 = vadd.f32 %v1949_v30, %v6648_v43  ;;  %v5138_v14 = vpop.f32.mrb[40].mxu1  ;;  %v5797_v47 = vpop.eup %5796  ;;  %v2326_v43 = vld [vmem:[#allocation5 + $0x80] sm:$0xff] }
 0x6c6   :  { %5814 = vrcp.f32 %v2616_v3  ;;  %v4664_v25 = vmul.f32 -1.442695, %v2560_v11  ;;  %v2565_v19 = vadd.f32 %v5138_v14, %v2328_v54  ;;  %v2532_v44 = vpop.f32.mrb[41].mxu1  ;;  %v5799_v9 = vpop.eup %5798  ;;  %v5675_v14 = vld [vmem:[%s7226_s5 + $0x28] sm:$0xff]  }
 0x6c7   :  { %5816 = vpow2.f32 %v4665_v23  ;;  %v1972_v56 = vpack.c.bf16 %v1951_v10, %v1950_v8  ;;  %v5139_v20 = vpop.f32.mrb[42].mxu1  ;;  %v5801_v21 = vpop.eup %5800  ;;  %v2563_v31 = vadd.f32 %v2532_v44, %v2326_v43 }
 0x6c8   :  { %5818 = vtanh.f32 %v2562_v16  ;;  %v2535_v26 = vpop.f32.mrb[43].mxu1  ;;  %v5803_v27 = vpop.eup %5802  ;;  %v2620_v34 = vadd.f32 1.0, %v5801_v21  ;;  %v2566_v38 = vadd.f32 %v5139_v20, %v2329_v36  ;;  %v5677_v20 = vld [vmem:[%s7226_s5 + $0x38] sm:$0xff]  }
 0x6c9   :  { %5820 = vpow2.f32 %v4664_v25  ;;  %v2174_v24 = vand.u32 %v1972_v56, %v6654_v60  ;;  %v5805_v29 = vpop.eup %5804  ;;  %v2564_v13 = vadd.f32 %v2535_v26, %v2327_v49  ;;  %v5672_v60 = vld [vmem:[%s7226_s5 + $0x10] sm:$0xff]  }
 0x6ca   :  { %5822 = vtanh.f32 %v2565_v19  ;;  %v5807_v32 = vpop.eup %5806  ;;  %v2621_v50 = vadd.f32 1.0, %v5805_v29 }
 0x6cb   :  { %5824 = vpow2.f32 %v4663_v45  ;;  %5096 = vmatprep.subr.bf16.mxu0 %v2174_v24  ;;  %v5809_v28 = vpop.eup %5808  ;;  %v2622_v40 = vadd.f32 1.0, %v5807_v32  ;;  %v5676_v45 = vld [vmem:[%s7226_s5 + $0x30] sm:$0xff]  }
 0x6cc   :  { %5826 = vrcp.f32 %v2620_v34  ;;  %5097 = vmatpush3.bf16.msra.mxu0 %v2174_v24  ;;  %v5811_v35 = vpop.eup %5810  ;;  %v2623_v18 = vadd.f32 1.0, %v5809_v28 }
 0x6cd   :  { %5828 = vrcp.f32 %v2619_v22  ;;  %v2663_v30 = vmul.f32 0.0, %v5811_v35  ;;  %v5678_v22 = vld [vmem:[%s7226_s5 + $0x40] sm:$0xff]   ;;  %v5682_v35 = vld [vmem:[%s7227_s6 + $0x10] sm:$0xff]  }
 0x6ce   :  { %5830 = vrcp.f32 %v2621_v50 }
 0x6cf   :  { %v5813_v53 = vpop.eup %5812  ;;  %5832 = vtanh.f32 %v2563_v31  ;;  %5099 = vmatmul.mubr.msk.bf16.vlgmr.msra.gmra.mrb[24].mxu0 %vm1632_vm14, %v5671_v33  ;;  %v5680_v33 = vld [vmem:[%s7227_s6] sm:$0xff]  }
 0x6d0   :  { %v5815_v39 = vpop.eup %5814  ;;  %5834 = vtanh.f32 %v2566_v38  ;;  %v2662_v12 = vmul.f32 0.0, %v5813_v53  ;;  %5102 = vmatprep.mubr.msk.bf16.mxu0 %vm1632_vm14, %v5672_v60  ;;  %v5679_v38 = vld [vmem:[%s7226_s5 + $0x48] sm:$0xff]   ;;  %v5683_v53 = vld [vmem:[%s7227_s6 + $0x18] sm:$0xff]  }
 0x6d1   :  { %v5817_v37 = vpop.eup %5816  ;;  %5836 = vtanh.f32 %v2564_v13  ;;  %v5681_v60 = vld [vmem:[%s7227_s6 + $0x8] sm:$0xff]  }
 0x6d2   :  { %v5819_v62 = vpop.eup %5818  ;;  %5838 = vrcp.f32 %v2622_v40  ;;  %v2626_v58 = vadd.f32 1.0, %v5817_v37  ;;  %v5685_v37 = vld [vmem:[%s7227_s6 + $0x28] sm:$0xff]   ;;  %v5688_v40 = vld [vmem:[%s7227_s6 + $0x40] sm:$0xff]  }
 0x6d3   :  { %v5821_v41 = vpop.eup %5820  ;;  %v2667_v42 = vmul.f32 %v5819_v62, %v5797_v47  ;;  %v5687_v62 = vld [vmem:[%s7227_s6 + $0x38] sm:$0xff]  }
 0x6d4   :  { %v5823_v15 = vpop.eup %5822  ;;  %v2625_v57 = vadd.f32 1.0, %v5821_v41  ;;  %v5689_v41 = vld [vmem:[%s7227_s6 + $0x48] sm:$0xff]  }
 0x6d5   :  { %v5825_v48 = vpop.eup %5824  ;;  %v6834_v51 = vadd.f32 %v2667_v42, %v2662_v12  ;;  %v2670_v63 = vmul.f32 %v5823_v15, %v5799_v9  ;;  %v5686_v12 = vld [vmem:[%s7227_s6 + $0x30] sm:$0xff]   ;;  %v1996_v42 = vpop.permute.xlu0 %1995 }
 0x6d6   :  { %v5827_v0 = vpop.eup %5826  ;;  %v2624_v23 = vadd.f32 1.0, %v5825_v48 }
 0x6d7   :  { %v5829_v2 = vpop.eup %5828  ;;  %v2665_v3 = vmul.f32 0.0, %v5827_v0  ;;  %5840 = vtanh.f32 %v6834_v51  ;;  %5103 = vmatmul.mubr.msk.bf16.gmra.mrb[28].mxu0 %vm1632_vm14, %v5673_v46  ;;  %v2021_v46 = vpop.permute.xlu1 %2020 }
 0x6d8   :  { %v5831_v61 = vpop.eup %5830  ;;  %5842 = vrcp.f32 %v2623_v18  ;;  %5106 = vmatprep.mubr.msk.bf16.mxu0 %vm1632_vm14, %v5674_v17  ;;  %v2664_v8 = vmul.f32 0.0, %v5829_v2 }
 0x6d9   :  { %v5833_v4 = vpop.eup %5832  ;;  %v2666_v55 = vmul.f32 0.0, %v5831_v61  ;;  %v6841_v5 = vadd.f32 %v2670_v63, %v2665_v3  ;;  %5844 = vrcp.f32 %v2625_v57  ;;  %v2046_v15 = vpop.permute.xlu0 %2045 }
 0x6da   :  { %v5835_v6 = vpop.eup %5834  ;;  %v2668_v16 = vmul.f32 %v5833_v4, %v5803_v27 }
 0x6db   :  { %v5837_v7 = vpop.eup %5836  ;;  %5846 = vtanh.f32 %v6841_v5  ;;  %v2671_v11 = vmul.f32 %v5835_v6, %v5815_v39  ;;  %v5684_v39 = vld [vmem:[%s7227_s6 + $0x20] sm:$0xff]   ;;  %v6922_v18 = vpop.permute.xlu1 %2070 }
 0x6dc   :  { %5848 = vrcp.f32 %v2626_v58  ;;  %v6845_v10 = vadd.f32 %v2668_v16, %v2663_v30  ;;  %v2669_v54 = vmul.f32 %v5837_v7, %v6818_v59  ;;  %v5839_v19 = vpop.eup %5838 }
 0x6dd   :  { %5850 = vrcp.f32 %v2624_v23  ;;  %v6851_v47 = vadd.f32 %v2671_v11, %v2666_v55  ;;  %v2001_v48 = vpop.permute.xlu0 %2000 }
 0x6de   :  { %5852 = vtanh.f32 %v6845_v10  ;;  %v6857_v25 = vadd.f32 %v2669_v54, %v2664_v8 }
 0x6df   :  { %5854 = vtanh.f32 %v6851_v47  ;;  %5107 = vmatmul.mubr.msk.bf16.gmra.mrb[32].mxu0 %vm1632_vm14, %v5675_v14  ;;  %v2026_v17 = vpop.permute.xlu1 %2025 }
 0x6e0   :  { %5856 = vtanh.f32 %v6857_v25  ;;  %5110 = vmatprep.mubr.msk.bf16.mxu0 %vm1632_vm14, %v5676_v45 }
 0x6e1   :  { %v5841_v59 = vpop.eup %5840  ;;  %v2006_v63 = vpop.permute.xlu0 %2005 }
 0x6e2   :  { %v2682_v44 = vmul.f32 %v5841_v59, %v5839_v19  ;;  %v5843_v9 = vpop.eup %5842 }
 0x6e3   :  { %v5845_v56 = vpop.eup %5844  ;;  %v2031_v57 = vpop.permute.xlu1 %2030 }
 0x6e4   :  { %2687 = vst.msk [vmem:[#allocation6] sm:$0xff] %vm878_vm2, %v2682_v44 }
 0x6e5   :  { %v5847_v21 = vpop.eup %5846  ;;  %v2051_v0 = vpop.permute.xlu0 %2050 }
 0x6e6   :  { %v5849_v26 = vpop.eup %5848  ;;  %v2685_v27 = vmul.f32 %v5847_v21, %v5845_v56 }
 0x6e7   :  { %v5851_v34 = vpop.eup %5850  ;;  %5111 = vmatmul.mubr.msk.bf16.gmra.mrb[36].mxu0 %vm1632_vm14, %v5677_v20  ;;  %v6924_v61 = vpop.permute.xlu1 %2075 }
 0x6e8   :  { %v5853_v43 = vpop.eup %5852  ;;  %2690 = vst.msk [vmem:[#allocation6 + $0x18] sm:$0xff] %vm878_vm2, %v2685_v27  ;;  %5114 = vmatprep.mubr.msk.bf16.mxu0 %vm1632_vm14, %v5678_v22 }
 0x6e9   :  { %v5855_v24 = vpop.eup %5854  ;;  %v2683_v29 = vmul.f32 %v5853_v43, %v5843_v9  ;;  %v2056_v2 = vpop.permute.xlu0 %2055 }
 0x6ea   :  { %v5857_v31 = vpop.eup %5856  ;;  %v2686_v36 = vmul.f32 %v5855_v24, %v5849_v26 }
 0x6eb   :  { %2688 = vst.msk [vmem:[#allocation6 + $0x8] sm:$0xff] %vm878_vm2, %v2683_v29  ;;  %v2732_v32 = vpack.c.bf16 %v2683_v29, %v2682_v44  ;;  %v2684_v50 = vmul.f32 %v5857_v31, %v5851_v34  ;;  %v6930_v11 = vpop.permute.xlu1 %2080 }
 0x6ec   :  { %2691 = vst.msk [vmem:[#allocation6 + $0x20] sm:$0xff] %vm878_vm2, %v2686_v36  ;;  %v2734_v28 = vpack.c.bf16 %v2686_v36, %v2686_v36 }
 0x6ed   :  { %5140 = vmatprep.subr.bf16.mxu0 %v2732_v32  ;;  %2689 = vst.msk [vmem:[#allocation6 + $0x10] sm:$0xff] %vm878_vm2, %v2684_v50  ;;  %v2733_v49 = vpack.c.bf16 %v2685_v27, %v2684_v50  ;;  %v2011_v55 = vpop.permute.xlu0 %2010  ;;  %v5691_v50 = vld [vmem:[#allocation7] sm:$0xff]  }
 0x6ee   :  { %5141 = vmatpush3.bf16.msra.mxu0 %v2732_v32  ;;  %v2816_v13 = vsel %vm1663_vm15, %v2734_v28, 0  ;;  %v5690_v32 = vld [vmem:[#allocation7 + $0x40] sm:$0xff]  }
 0x6ef   :  { %5142 = vmatprep.subr.bf16.mxu0 %v2733_v49  ;;  %5115 = vmatmul.mubr.msk.bf16.gmra.mrb[40].mxu0 %vm1632_vm14, %v5679_v38  ;;  %v2036_v20 = vpop.permute.xlu1 %2035  ;;  %v5692_v38 = vld [vmem:[#allocation7 + $0x48] sm:$0xff]  }
 0x6f0   :  { %5146 = vmatprep.mubr.msk.bf16.mxu0 %vm2400_vm1, %v5680_v33  ;;  %4875 = vmatprep.subr.bf16.mxu1 %v5690_v32 }
 0x6f1   :  { %v2016_v54 = vpop.permute.xlu0 %2015  ;;  %4876 = vmatpush3.bf16.msra.mxu1 %v5691_v50 }
 0x6f2   :  { %5143 = vmatpush3.bf16.msra.mxu0 %v2733_v49  ;;  %v5697_v49 = vld [vmem:[#allocation7 + $0x140] sm:$0xff]   ;;  %4877 = vmatprep.subr.bf16.mxu1 %v5692_v38 }
 0x6f3   :  { %5188 = vmatprep.subr.msk.bf16.mxu0 %vm1663_vm15, %v2734_v28  ;;  %v2041_v24 = vpop.permute.xlu1 %2040 }
 0x6f5   :  { %v2061_v27 = vpop.permute.xlu0 %2060 }
 0x6f6   :  { %5145 = vmatpush3.bf16.msra.mxu0 %v2816_v13  ;;  %v5693_v13 = vld [vmem:[#allocation7 + $0x8] sm:$0xff]  }
 0x6f7   :  { %4919 = vmatprep.subr.bf16.mxu0 %v5697_v49  ;;  %4878 = vmatpush3.bf16.msra.mxu1 %v5693_v13 }
 0x6f9   :  { %5147 = vmatmul.mubr.msk.bf16.vlgmr.msra.gmra.mrb[44].mxu0 %vm2400_vm1, %v5681_v60  ;;  %v2066_v33 = vpop.permute.xlu0 %2065  ;;  %v5699_v60 = vld [vmem:[#allocation7 + $0x100] sm:$0xff]  }
 0x6fa   :  { %5150 = vmatprep.mubr.msk.bf16.mxu0 %vm2400_vm1, %v5682_v35  ;;  %4920 = vmatpush3.bf16.msra.mxu0 %v5699_v60 }
 0x701   :  { %5151 = vmatmul.mubr.msk.bf16.gmra.mrb[48].mxu0 %vm2400_vm1, %v5683_v53 }
 0x702   :  { %5154 = vmatprep.mubr.msk.bf16.mxu0 %vm2400_vm1, %v5684_v39  ;;  %v5694_v39 = vld [vmem:[#allocation7 + $0x50] sm:$0xff]  }
 0x703   :  { %4879 = vmatprep.subr.bf16.mxu1 %v5694_v39 }
 0x709   :  { %5155 = vmatmul.mubr.msk.bf16.gmra.mrb[52].mxu0 %vm2400_vm1, %v5685_v37  ;;  %v5701_v37 = vld [vmem:[#allocation7 + $0x148] sm:$0xff]  }
 0x70a   :  { %5158 = vmatprep.mubr.msk.bf16.mxu0 %vm2400_vm1, %v5686_v12  ;;  %4921 = vmatprep.subr.bf16.mxu0 %v5701_v37 }
 0x711   :  { %5159 = vmatmul.mubr.msk.bf16.gmra.mrb[56].mxu0 %vm2400_vm1, %v5687_v62 }
 0x712   :  { %5162 = vmatprep.mubr.msk.bf16.mxu0 %vm2400_vm1, %v5688_v40  ;;  %v5703_v40 = vld [vmem:[#allocation7 + $0x108] sm:$0xff]  }
 0x713   :  { %4922 = vmatpush3.bf16.msra.mxu0 %v5703_v40 }
 0x719   :  { %5163 = vmatmul.mubr.msk.bf16.gmra.mrb[60].mxu0 %vm2400_vm1, %v5689_v41 }
 0x7a2   :  { %v5100_v3 = vpop.f32.mrb[24].mxu0 }
 0x7a3   :  { %v2219_v58 = vadd.f32 %v5100_v3, %v2006_v63  ;;  %v2210_v4 = vpop.f32.mrb[25].mxu0  ;;  %v5695_v63 = vld [vmem:[#allocation7 + $0x10] sm:$0xff]   ;;  %v5700_v3 = vld [vmem:[#allocation7 + $0x60] sm:$0xff]  }
 0x7a4   :  { %v2211_v23 = vadd.f32 %v2210_v4, %v1996_v42  ;;  %v5101_v6 = vpop.f32.mrb[26].mxu0  ;;  %4880 = vmatpush3.bf16.msra.mxu1 %v5695_v63 }
 0x7a5   :  { %2292 = vst.msk [vmem:[#allocation5 + $0xb0] sm:$0xff] %vm878_vm2, %v2219_v58  ;;  %v2222_v30 = vadd.f32 %v5101_v6, %v2011_v55  ;;  %v2213_v16 = vpop.f32.mrb[27].mxu0 }
 0x7a6   :  { %2290 = vst.msk [vmem:[#allocation5 + $0xa0] sm:$0xff] %vm878_vm2, %v2211_v23  ;;  %v2214_v7 = vadd.f32 %v2213_v16, %v2001_v48  ;;  %v5702_v16 = vld [vmem:[#allocation7 + $0x20] sm:$0xff]  }
 0x7a7   :  { %2293 = vst.msk [vmem:[#allocation5 + $0xb8] sm:$0xff] %vm878_vm2, %v2222_v30 }
 0x7a8   :  { %2291 = vst.msk [vmem:[#allocation5 + $0xa8] sm:$0xff] %vm878_vm2, %v2214_v7  ;;  %v5704_v7 = vld [vmem:[#allocation7 + $0x68] sm:$0xff]  }
 0x7aa   :  { %v5104_v8 = vpop.f32.mrb[28].mxu0 }
 0x7ab   :  { %v2235_v14 = vadd.f32 %v5104_v8, %v2026_v17  ;;  %v2226_v45 = vpop.f32.mrb[29].mxu0  ;;  %v5696_v17 = vld [vmem:[#allocation7 + $0x58] sm:$0xff]  }
 0x7ac   :  { %v2227_v19 = vadd.f32 %v2226_v45, %v2016_v54  ;;  %v5105_v59 = vpop.f32.mrb[30].mxu0  ;;  %4881 = vmatprep.subr.bf16.mxu1 %v5696_v17  ;;  %v2694_v8 = vld [vmem:[#allocation5 + $0xb0] sm:$0xff] }
 0x7ad   :  { %2296 = vst.msk [vmem:[#allocation5 + $0xd0] sm:$0xff] %vm878_vm2, %v2235_v14  ;;  %v2238_v44 = vadd.f32 %v5105_v59, %v2031_v57  ;;  %v2229_v9 = vpop.f32.mrb[31].mxu0  ;;  %v2692_v14 = vld [vmem:[#allocation5 + $0xa0] sm:$0xff] }
 0x7ae   :  { %2294 = vst.msk [vmem:[#allocation5 + $0xc0] sm:$0xff] %vm878_vm2, %v2227_v19  ;;  %v2230_v56 = vadd.f32 %v2229_v9, %v2021_v46  ;;  %v2086_v46 = vpop.permute.xlu1 %2085  ;;  %v2695_v59 = vld [vmem:[#allocation5 + $0xb8] sm:$0xff] }
 0x7af   :  { %2297 = vst.msk [vmem:[#allocation5 + $0xd8] sm:$0xff] %vm878_vm2, %v2238_v44 }
 0x7b0   :  { %2295 = vst.msk [vmem:[#allocation5 + $0xc8] sm:$0xff] %vm878_vm2, %v2230_v56  ;;  %v2693_v56 = vld [vmem:[#allocation5 + $0xa8] sm:$0xff] }
 0x7b2   :  { %v5108_v21 = vpop.f32.mrb[32].mxu0  ;;  %v2091_v58 = vpop.permute.xlu1 %2090 }
 0x7b3   :  { %v2251_v22 = vadd.f32 %v5108_v21, %v2046_v15  ;;  %v2242_v26 = vpop.f32.mrb[33].mxu0  ;;  %v5705_v15 = vld [vmem:[#allocation7 + $0x150] sm:$0xff]  }
 0x7b4   :  { %v2243_v34 = vadd.f32 %v2242_v26, %v2036_v20  ;;  %v5109_v43 = vpop.f32.mrb[34].mxu0  ;;  %4923 = vmatprep.subr.bf16.mxu0 %v5705_v15 }
 0x7b5   :  { %2300 = vst.msk [vmem:[#allocation5 + $0xf0] sm:$0xff] %vm878_vm2, %v2251_v22  ;;  %v2254_v29 = vadd.f32 %v5109_v43, %v2051_v0  ;;  %v2245_v31 = vpop.f32.mrb[35].mxu0 }
 0x7b6   :  { %2298 = vst.msk [vmem:[#allocation5 + $0xe0] sm:$0xff] %vm878_vm2, %v2243_v34  ;;  %v2246_v36 = vadd.f32 %v2245_v31, %v2041_v24  ;;  %v2698_v34 = vld [vmem:[#allocation5 + $0xd0] sm:$0xff]  ;;  %v2699_v32 = vld [vmem:[#allocation5 + $0xd8] sm:$0xff] }
 0x7b7   :  { %2301 = vst.msk [vmem:[#allocation5 + $0xf8] sm:$0xff] %vm878_vm2, %v2254_v29  ;;  %v2696_v29 = vld [vmem:[#allocation5 + $0xc0] sm:$0xff] }
 0x7b8   :  { %2299 = vst.msk [vmem:[#allocation5 + $0xe8] sm:$0xff] %vm878_vm2, %v2246_v36 }
 0x7ba   :  { %v5112_v28 = vpop.f32.mrb[36].mxu0 }
 0x7bb   :  { %v2267_v35 = vadd.f32 %v5112_v28, %v2066_v33  ;;  %v2258_v53 = vpop.f32.mrb[37].mxu0  ;;  %v2697_v33 = vld [vmem:[#allocation5 + $0xc8] sm:$0xff] }
 0x7bc   :  { %v2259_v12 = vadd.f32 %v2258_v53, %v2056_v2  ;;  %v5113_v62 = vpop.f32.mrb[38].mxu0 }
 0x7bd   :  { %2304 = vst.msk [vmem:[#allocation5 + $0x110] sm:$0xff] %vm878_vm2, %v2267_v35  ;;  %v2270_v41 = vadd.f32 %v5113_v62, %v6922_v18  ;;  %v2261_v42 = vpop.f32.mrb[39].mxu0  ;;  %v5698_v18 = vld [vmem:[#allocation7 + $0x18] sm:$0xff]  }
 0x7be   :  { %2302 = vst.msk [vmem:[#allocation5 + $0x100] sm:$0xff] %vm878_vm2, %v2259_v12  ;;  %v2262_v48 = vadd.f32 %v2261_v42, %v2061_v27  ;;  %4882 = vmatpush3.bf16.msra.mxu1 %v5698_v18  ;;  %v2703_v18 = vld [vmem:[#allocation5 + $0xf8] sm:$0xff] }
 0x7bf   :  { %2305 = vst.msk [vmem:[#allocation5 + $0x118] sm:$0xff] %vm878_vm2, %v2270_v41  ;;  %4883 = vmatprep.subr.bf16.mxu1 %v5700_v3  ;;  %v2700_v41 = vld [vmem:[#allocation5 + $0xe0] sm:$0xff] }
 0x7c0   :  { %2303 = vst.msk [vmem:[#allocation5 + $0x108] sm:$0xff] %vm878_vm2, %v2262_v48 }
 0x7c2   :  { %v5116_v0 = vpop.f32.mrb[40].mxu0  ;;  %4884 = vmatpush3.bf16.msra.mxu1 %v5702_v16 }
 0x7c3   :  { %v2283_v57 = vadd.f32 %v5116_v0, %v2086_v46  ;;  %v2274_v2 = vpop.f32.mrb[41].mxu0  ;;  %4885 = vmatprep.subr.bf16.mxu1 %v5704_v7  ;;  %v2702_v46 = vld [vmem:[#allocation5 + $0xf0] sm:$0xff] }
 0x7c4   :  { %v2275_v4 = vadd.f32 %v2274_v2, %v6924_v61  ;;  %v5117_v55 = vpop.f32.mrb[42].mxu0 }
 0x7c5   :  { %2308 = vst.msk [vmem:[#allocation5 + $0x130] sm:$0xff] %vm878_vm2, %v2283_v57  ;;  %v2286_v23 = vadd.f32 %v5117_v55, %v2091_v58  ;;  %v2277_v6 = vpop.f32.mrb[43].mxu0  ;;  %v2701_v57 = vld [vmem:[#allocation5 + $0xe8] sm:$0xff] }
 0x7c6   :  { %2306 = vst.msk [vmem:[#allocation5 + $0x120] sm:$0xff] %vm878_vm2, %v2275_v4  ;;  %v2278_v30 = vadd.f32 %v2277_v6, %v6930_v11 }
 0x7c7   :  { %2309 = vst.msk [vmem:[#allocation5 + $0x138] sm:$0xff] %vm878_vm2, %v2286_v23 }
 0x7c8   :  { %2307 = vst.msk [vmem:[#allocation5 + $0x128] sm:$0xff] %vm878_vm2, %v2278_v30 }
 0x7cc   :  { %v5148_v61 = vpop.f32.mrb[44].mxu0 }
 0x7cd   :  { %v2933_v54 = vadd.f32 %v5148_v61, %v2694_v8  ;;  %v2852_v45 = vpop.f32.mrb[45].mxu0  ;;  %v2706_v61 = vld [vmem:[#allocation5 + $0x110] sm:$0xff] }
 0x7ce   :  { %v2931_v19 = vadd.f32 %v2852_v45, %v2692_v14  ;;  %v5149_v44 = vpop.f32.mrb[46].mxu0  ;;  %v2704_v45 = vld [vmem:[#allocation5 + $0x100] sm:$0xff] }
 0x7cf   :  { %v4688_v9 = vmul.f32 -1.442695, %v2933_v54  ;;  %v2934_v11 = vadd.f32 %v5149_v44, %v2695_v59  ;;  %v2855_v20 = vpop.f32.mrb[47].mxu0 }
 0x7d0   :  { %v4686_v21 = vmul.f32 -1.442695, %v2931_v19  ;;  %v2932_v22 = vadd.f32 %v2855_v20, %v2693_v56 }
 0x7d1   :  { %5858 = vpow2.f32 %v4688_v9  ;;  %v4689_v26 = vmul.f32 -1.442695, %v2934_v11 }
 0x7d2   :  { %5860 = vpow2.f32 %v4686_v21  ;;  %v4687_v27 = vmul.f32 -1.442695, %v2932_v22  ;;  %v2707_v21 = vld [vmem:[#allocation5 + $0x118] sm:$0xff]  ;;  %v2705_v22 = vld [vmem:[#allocation5 + $0x108] sm:$0xff] }
 0x7d3   :  { %5862 = vpow2.f32 %v4689_v26 }
 0x7d4   :  { %v5152_v43 = vpop.f32.mrb[48].mxu0  ;;  %5864 = vpow2.f32 %v4687_v27 }
 0x7d5   :  { %v2937_v24 = vadd.f32 %v5152_v43, %v2698_v34  ;;  %v2868_v31 = vpop.f32.mrb[49].mxu0 }
 0x7d6   :  { %v2935_v36 = vadd.f32 %v2868_v31, %v2696_v29  ;;  %v5153_v50 = vpop.f32.mrb[50].mxu0 }
 0x7d7   :  { %v4692_v38 = vmul.f32 -1.442695, %v2937_v24  ;;  %v2938_v49 = vadd.f32 %v5153_v50, %v2699_v32  ;;  %v2871_v28 = vpop.f32.mrb[51].mxu0 }
 0x7d8   :  { %v4690_v13 = vmul.f32 -1.442695, %v2935_v36  ;;  %v2936_v60 = vadd.f32 %v2871_v28, %v2697_v33 }
 0x7d9   :  { %5866 = vpow2.f32 %v4692_v38  ;;  %v4693_v39 = vmul.f32 -1.442695, %v2938_v49 }
 0x7da   :  { %5868 = vpow2.f32 %v4690_v13  ;;  %v4691_v35 = vmul.f32 -1.442695, %v2936_v60  ;;  %v2710_v60 = vld [vmem:[#allocation5 + $0x130] sm:$0xff] }
 0x7db   :  { %v5859_v53 = vpop.eup %5858 }
 0x7dc   :  { %v5861_v37 = vpop.eup %5860  ;;  %5870 = vpow2.f32 %v4691_v35  ;;  %v5156_v12 = vpop.f32.mrb[52].mxu0  ;;  %v2998_v40 = vadd.f32 1.0, %v5859_v53 }
 0x7dd   :  { %v5863_v62 = vpop.eup %5862  ;;  %v2884_v42 = vpop.f32.mrb[53].mxu0  ;;  %v2996_v15 = vadd.f32 1.0, %v5861_v37  ;;  %5872 = vpow2.f32 %v4693_v39  ;;  %v2941_v0 = vadd.f32 %v5156_v12, %v2702_v46  ;;  %v2708_v37 = vld [vmem:[#allocation5 + $0x120] sm:$0xff] }
 0x7de   :  { %v2939_v48 = vadd.f32 %v2884_v42, %v2700_v41  ;;  %v5157_v63 = vpop.f32.mrb[54].mxu0  ;;  %v5865_v17 = vpop.eup %5864  ;;  %v2999_v3 = vadd.f32 1.0, %v5863_v62  ;;  %5874 = vrcp.f32 %v2998_v40  ;;  %v2711_v42 = vld [vmem:[#allocation5 + $0x138] sm:$0xff] }
 0x7df   :  { %v2887_v2 = vpop.f32.mrb[55].mxu0  ;;  %v2942_v4 = vadd.f32 %v5157_v63, %v2703_v18  ;;  %5876 = vrcp.f32 %v2996_v15  ;;  %v2997_v23 = vadd.f32 1.0, %v5865_v17  ;;  %v4696_v16 = vmul.f32 -1.442695, %v2941_v0 }
 0x7e0   :  { %v4694_v58 = vmul.f32 -1.442695, %v2939_v48  ;;  %v2940_v55 = vadd.f32 %v2887_v2, %v2701_v57  ;;  %v2709_v48 = vld [vmem:[#allocation5 + $0x128] sm:$0xff] }
 0x7e1   :  { %v4697_v8 = vmul.f32 -1.442695, %v2942_v4 }
 0x7e2   :  { %v4695_v6 = vmul.f32 -1.442695, %v2940_v55  ;;  %5878 = vpow2.f32 %v4694_v58 }
 0x7e3   :  { %v5867_v30 = vpop.eup %5866  ;;  %5880 = vrcp.f32 %v2999_v3 }
 0x7e4   :  { %v5869_v7 = vpop.eup %5868  ;;  %v5160_v54 = vpop.f32.mrb[56].mxu0  ;;  %5882 = vpow2.f32 %v4695_v6  ;;  %v3002_v44 = vadd.f32 1.0, %v5867_v30 }
 0x7e5   :  { %v2945_v14 = vadd.f32 %v5160_v54, %v2706_v61  ;;  %v2900_v19 = vpop.f32.mrb[57].mxu0  ;;  %5884 = vrcp.f32 %v2997_v23  ;;  %v3000_v56 = vadd.f32 1.0, %v5869_v7 }
 0x7e6   :  { %v5871_v59 = vpop.eup %5870  ;;  %v2943_v9 = vadd.f32 %v2900_v19, %v2704_v45  ;;  %v5161_v11 = vpop.f32.mrb[58].mxu0  ;;  %5886 = vpow2.f32 %v4696_v16 }
 0x7e7   :  { %v3001_v20 = vadd.f32 1.0, %v5871_v59  ;;  %v2903_v26 = vpop.f32.mrb[59].mxu0  ;;  %5888 = vpow2.f32 %v4697_v8  ;;  %v2946_v27 = vadd.f32 %v5161_v11, %v2707_v21  ;;  %v5873_v43 = vpop.eup %5872  ;;  %v4700_v24 = vmul.f32 -1.442695, %v2945_v14 }
 0x7e8   :  { %v2944_v34 = vadd.f32 %v2903_v26, %v2705_v22  ;;  %v4698_v29 = vmul.f32 -1.442695, %v2943_v9  ;;  %v6951_v31 = vpop.eup %5874  ;;  %v3003_v49 = vadd.f32 1.0, %v5873_v43 }
 0x7e9   :  { %5890 = vrcp.f32 %v3001_v20  ;;  %v5877_v32 = vpop.eup %5876 }
 0x7ea   :  { %5892 = vrcp.f32 %v3002_v44  ;;  %v4699_v36 = vmul.f32 -1.442695, %v2944_v34 }
 0x7eb   :  { %5894 = vrcp.f32 %v3000_v56 }
 0x7ec   :  { %5896 = vtanh.f32 %v2946_v27  ;;  %v5164_v50 = vpop.f32.mrb[60].mxu0  ;;  %v5879_v38 = vpop.eup %5878 }
 0x7ed   :  { %5898 = vpow2.f32 %v4700_v24  ;;  %v2916_v33 = vpop.f32.mrb[61].mxu0  ;;  %v5881_v28 = vpop.eup %5880  ;;  %v3004_v13 = vadd.f32 1.0, %v5879_v38  ;;  %v2949_v39 = vadd.f32 %v5164_v50, %v2710_v60  ;;  %v6002_v50 = vmov 1934713408   ;;  %v3077_v60 = vld [vmem:[#allocation6] sm:$0xff] }
 0x7ee   :  { %5900 = vpow2.f32 %v4698_v29  ;;  %v5165_v35 = vpop.f32.mrb[62].mxu0  ;;  %v5883_v53 = vpop.eup %5882  ;;  %v2947_v41 = vadd.f32 %v2916_v33, %v2708_v37  ;;  %v6001_v29 = vmov 1983009808   ;;  %v3120_v38 = vunpack.c.l.s4 %v6002_v50 }
 0x7ef   :  { %5902 = vpow2.f32 %v4699_v36  ;;  %v2919_v12 = vpop.f32.mrb[63].mxu0  ;;  %v5885_v62 = vpop.eup %5884  ;;  %v3005_v40 = vadd.f32 1.0, %v5883_v53  ;;  %v2950_v46 = vadd.f32 %v5165_v35, %v2711_v42  ;;  %v3089_v36 = vunpack.c.l.s4 %v6001_v29 }
 0x7f0   :  { %5904 = vrcp.f32 %v3004_v13  ;;  %v5887_v15 = vpop.eup %5886  ;;  %v2948_v17 = vadd.f32 %v2919_v12, %v2709_v48  ;;  %v3121_v13 = vunpack.c.0.s8 %v3120_v38  ;;  %v5706_v12 = vld [vmem:[#allocation7 + $0x28] sm:$0xff]   ;;  %v3087_v42 = vcombine.high %v3077_v60, %v5989_v1 }
 0x7f1   :  { %5906 = vrcp.f32 %v3003_v49  ;;  %v5889_v63 = vpop.eup %5888  ;;  %v3006_v58 = vadd.f32 1.0, %v5887_v15  ;;  %v3090_v33 = vunpack.c.0.s8 %v3089_v36  ;;  %4886 = vmatpush3.bf16.msra.mxu1 %v5706_v12 }
 0x7f2   :  { %5908 = vrcp.f32 %v3005_v40  ;;  %v3007_v7 = vadd.f32 1.0, %v5889_v63 }
 0x7f3   :  { %v5891_v0 = vpop.eup %5890  ;;  %5910 = vtanh.f32 %v2949_v39  ;;  %v6961_v53 = vsub.s32 %v3090_v33, %v6468_v52  ;;  %v5716_v33 = vld [vmem:[#allocation7 + $0xc0] sm:$0xff]  }
 0x7f4   :  { %v5893_v18 = vpop.eup %5892  ;;  %5912 = vtanh.f32 %v2947_v41  ;;  %v3046_v2 = vmul.f32 %v5891_v0, %v6834_v51 }
 0x7f5   :  { %v5895_v57 = vpop.eup %5894  ;;  %5914 = vtanh.f32 %v2950_v46  ;;  %v3047_v56 = vmul.f32 %v5893_v18, %v6845_v10  ;;  %v6965_v46 = vsub.s32 %v3121_v13, %v6468_v52  ;;  %v3094_v0 = vrot.slane %v3077_v60, %v6961_v53  ;;  %v5709_v52 = vld [vmem:[#allocation7 + $0x158] sm:$0xff]   ;;  %v5717_v60 = vld [vmem:[#allocation7 + $0x168] sm:$0xff]  }
 0x7f6   :  { %v5897_v3 = vpop.eup %5896  ;;  %5916 = vtanh.f32 %v2948_v17 }
 0x7f7   :  { %v5899_v4 = vpop.eup %5898  ;;  %v3051_v55 = vmul.f32 %v5897_v3, %v5877_v32  ;;  %5918 = vrcp.f32 %v3006_v58  ;;  %v5710_v3 = vld [vmem:[#allocation7 + $0x30] sm:$0xff]   ;;  %v3101_v58 = vrot.slane %v3087_v42, %v6961_v53 }
 0x7f8   :  { %v5901_v23 = vpop.eup %5900  ;;  %v3010_v61 = vadd.f32 1.0, %v5899_v4 }
 0x7f9   :  { %v5903_v6 = vpop.eup %5902  ;;  %v3056_v30 = vadd.f32 %v3051_v55, %v3046_v2  ;;  %v3008_v45 = vadd.f32 1.0, %v5901_v23  ;;  %v5708_v2 = vld [vmem:[#allocation7 + $0x70] sm:$0xff]  }
 0x7fa   :  { %v5905_v16 = vpop.eup %5904  ;;  %v3009_v19 = vadd.f32 1.0, %v5903_v6  ;;  %v3078_v6 = vld [vmem:[#allocation6 + $0x8] sm:$0xff]  ;;  %4887 = vmatprep.subr.bf16.mxu1 %v5708_v2 }
 0x7fb   :  { %v5907_v8 = vpop.eup %5906  ;;  %5920 = vtanh.f32 %v3056_v30  ;;  %v3049_v14 = vmul.f32 %v5905_v16, %v6841_v5  ;;  %v5711_v30 = vld [vmem:[#allocation7 + $0x118] sm:$0xff]   ;;  %4888 = vmatpush3.bf16.msra.mxu1 %v5710_v3 }
 0x7fc   :  { %v5909_v54 = vpop.eup %5908  ;;  %5922 = vrcp.f32 %v3007_v7  ;;  %v3048_v27 = vmul.f32 %v5907_v8, %v6857_v25 }
 0x7fd   :  { %v5911_v51 = vpop.eup %5910  ;;  %v3050_v44 = vmul.f32 %v5909_v54, %v6851_v47  ;;  %5924 = vrcp.f32 %v3010_v61  ;;  %v3079_v61 = vld [vmem:[#allocation6 + $0x10] sm:$0xff]  ;;  %v6979_v54 = vld [vmem:[#allocation6 + $0x18] sm:$0xff] }
 0x7fe   :  { %v5913_v59 = vpop.eup %5912  ;;  %v3054_v9 = vmul.f32 %v5911_v51, %v5881_v28  ;;  %5926 = vrcp.f32 %v3008_v45  ;;  %v3226_v38 = vrot.slane %v3079_v61, %v6961_v53 }
 0x7ff   :  { %v5915_v11 = vpop.eup %5914  ;;  %v3052_v20 = vmul.f32 %v5913_v59, %v5885_v62  ;;  %5928 = vrcp.f32 %v3009_v19  ;;  %v5707_v62 = vld [vmem:[#allocation7 + $0x110] sm:$0xff]  }
 0x800   :  { %v5917_v21 = vpop.eup %5916  ;;  %v3059_v22 = vadd.f32 %v3054_v9, %v3049_v14  ;;  %v3055_v26 = vmul.f32 %v5915_v11, %v5895_v57  ;;  %4924 = vmatpush3.bf16.msra.mxu0 %v5707_v62  ;;  %v3153_v14 = vcombine.high %v3078_v6, %v5989_v1  ;;  %v5713_v9 = vld [vmem:[#allocation7 + $0x160] sm:$0xff]  }
 0x801   :  { %v3057_v5 = vadd.f32 %v3052_v20, %v3047_v56  ;;  %v3053_v34 = vmul.f32 %v5917_v21, %v6951_v31  ;;  %v5919_v24 = vpop.eup %5918  ;;  %4925 = vmatprep.subr.bf16.mxu0 %v5709_v52  ;;  %v3160_v56 = vrot.slane %v3078_v6, %v6961_v53  ;;  %v3219_v20 = vcombine.high %v3079_v61, %v5989_v1 }
 0x802   :  { %5930 = vtanh.f32 %v3059_v22  ;;  %v3060_v43 = vadd.f32 %v3055_v26, %v3050_v44  ;;  %v5712_v44 = vld [vmem:[#allocation7 + $0x78] sm:$0xff]   ;;  %v3285_v21 = vcombine.high %v6979_v54, %v5989_v1 }
 0x803   :  { %5932 = vtanh.f32 %v3057_v5  ;;  %v3058_v47 = vadd.f32 %v3053_v34, %v3048_v27  ;;  %v5714_v22 = vld [vmem:[#allocation7 + $0x38] sm:$0xff]   ;;  %4889 = vmatprep.subr.bf16.mxu1 %v5712_v44 }
 0x804   :  { %5934 = vtanh.f32 %v3060_v43  ;;  %4926 = vmatpush3.bf16.msra.mxu0 %v5711_v30  ;;  %4890 = vmatpush3.bf16.msra.mxu1 %v5714_v22  ;;  %v3299_v3 = vrot.slane %v3285_v21, %v6961_v53 }
 0x805   :  { %v5921_v10 = vpop.eup %5920  ;;  %5936 = vtanh.f32 %v3058_v47  ;;  %v3167_v47 = vrot.slane %v3153_v14, %v6961_v53  ;;  %4927 = vmatprep.subr.bf16.mxu0 %v5713_v9  ;;  %4897 = vmatprep.subr.bf16.mxu1 %v5716_v33 }
 0x806   :  { %v3066_v32 = vmul.f32 %v5921_v10, %v5919_v24  ;;  %v5923_v49 = vpop.eup %5922  ;;  %v5715_v10 = vld [vmem:[#allocation7 + $0x120] sm:$0xff]  }
 0x807   :  { %v5925_v25 = vpop.eup %5924 }
 0x808   :  { %3072 = vst.msk [vmem:[#allocation6 + $0x28] sm:$0xff] %vm878_vm2, %v3066_v32  ;;  %v5927_v28 = vpop.eup %5926  ;;  %4928 = vmatpush3.bf16.msra.mxu0 %v5715_v10 }
 0x809   :  { %v5929_v31 = vpop.eup %5928  ;;  %4929 = vmatprep.subr.bf16.mxu0 %v5717_v60 }
 0x80c   :  { %v5931_v35 = vpop.eup %5930 }
 0x80d   :  { %v5933_v39 = vpop.eup %5932  ;;  %v3069_v37 = vmul.f32 %v5931_v35, %v5929_v31 }
 0x80e   :  { %v5935_v40 = vpop.eup %5934  ;;  %v3067_v41 = vmul.f32 %v5933_v39, %v5923_v49 }
 0x80f   :  { %v5937_v15 = vpop.eup %5936  ;;  %3075 = vst.msk [vmem:[#allocation6 + $0x40] sm:$0xff] %vm878_vm2, %v3069_v37  ;;  %v3070_v48 = vmul.f32 %v5935_v40, %v5925_v25  ;;  %v3082_v63 = vld [vmem:[#allocation6 + $0x28] sm:$0xff]  ;;  %v3233_v37 = vrot.slane %v3219_v20, %v6961_v53 }
 0x810   :  { %3073 = vst.msk [vmem:[#allocation6 + $0x30] sm:$0xff] %vm878_vm2, %v3067_v41  ;;  %v3068_v17 = vmul.f32 %v5937_v15, %v5927_v28  ;;  %v3102_v18 = vcombine.high %v3082_v63, %v5989_v1  ;;  %v3109_v57 = vrot.slane %v3082_v63, %v6961_v53  ;;  %v5718_v15 = vld [vmem:[#allocation7 + $0x128] sm:$0xff]   ;;  %v5725_v20 = vld [vmem:[#allocation7 + $0x178] sm:$0xff]  }
 0x811   :  { %3076 = vst.msk [vmem:[#allocation6 + $0x48] sm:$0xff] %vm878_vm2, %v3070_v48  ;;  %4930 = vmatpush3.bf16.msra.mxu0 %v5718_v15 }
 0x812   :  { %3074 = vst.msk [vmem:[#allocation6 + $0x38] sm:$0xff] %vm878_vm2, %v3068_v17  ;;  %v3116_v4 = vrot.slane %v3102_v18, %v6961_v53  ;;  %v3117_v55 = vcombine.low %v3094_v0, %v3109_v57  ;;  %v3118_v23 = vcombine.high %v3094_v0, %v3109_v57  ;;  %v3081_v18 = vld [vmem:[#allocation6 + $0x20] sm:$0xff] }
 0x813   :  { %v5721_v57 = vld [vmem:[#allocation7 + $0x170] sm:$0xff]   ;;  %v3351_v14 = vcombine.high %v3081_v18, %v5989_v1 }
 0x814   :  { %v3134_v16 = vcombine.high %v3101_v58, %v3116_v4  ;;  %v3133_v7 = vcombine.low %v3101_v58, %v3116_v4  ;;  %v6977_v8 = vrot.slane %v3117_v55, %v6965_v46  ;;  %v3132_v45 = vrot.slane %v3118_v23, %v6965_v46  ;;  %4931 = vmatprep.subr.bf16.mxu0 %v5721_v57 }
 0x816   :  { %v3148_v51 = vrot.slane %v3134_v16, %v6965_v46  ;;  %v6985_v19 = vrot.slane %v3133_v7, %v6965_v46  ;;  %v3085_v59 = vld [vmem:[#allocation6 + $0x40] sm:$0xff]  ;;  %v3149_v27 = vcombine.high %v6977_v8, %v5989_v1  ;;  %v3150_v25 = vcombine.high %v3132_v45, %v5989_v1 }
 0x817   :  { %v3083_v11 = vld [vmem:[#allocation6 + $0x30] sm:$0xff]  ;;  %v3300_v36 = vcombine.high %v3085_v59, %v5989_v1  ;;  %v3307_v58 = vrot.slane %v3085_v59, %v6961_v53  ;;  %v3292_v16 = vrot.slane %v6979_v54, %v6961_v53  ;;  %v3358_v54 = vrot.slane %v3081_v18, %v6961_v53 }
 0x818   :  { %v5549_v26 = vpack.i.bf16 %v3132_v45, %v3148_v51  ;;  %v3151_v5 = vcombine.high %v6985_v19, %v5989_v1  ;;  %v3168_v34 = vcombine.high %v3083_v11, %v5989_v1  ;;  %v3152_v43 = vcombine.high %v3148_v51, %v5989_v1  ;;  %v3086_v61 = vld [vmem:[#allocation6 + $0x48] sm:$0xff]  ;;  %v5722_v45 = vld [vmem:[#allocation7 + $0x130] sm:$0xff]  }
 0x819   :  { %v3175_v24 = vrot.slane %v3083_v11, %v6961_v53  ;;  %v3084_v29 = vld [vmem:[#allocation6 + $0x38] sm:$0xff]  ;;  %v7013_v42 = vrot.slane %v3300_v36, %v6961_v53  ;;  %4932 = vmatpush3.bf16.msra.mxu0 %v5722_v45 }
 0x81a   :  { %5550 = vrot.lane.b32.xlu1 %v5549_v26, %s5987_s13  ;;  %v5554_v32 = vpack.i.bf16 %v3149_v27, %v3151_v5  ;;  %v3182_v50 = vrot.slane %v3168_v34, %v6961_v53  ;;  %v3234_v49 = vcombine.high %v3084_v29, %v5989_v1  ;;  %v3241_v13 = vrot.slane %v3084_v29, %v6961_v53 }
 0x81b   :  { %v3183_v28 = vcombine.low %v3160_v56, %v3175_v24  ;;  %v3184_v31 = vcombine.high %v3160_v56, %v3175_v24  ;;  %v5559_v62 = vpack.i.bf16 %v3150_v25, %v3152_v43  ;;  %v3331_v7 = vcombine.low %v3299_v3, %v7013_v42  ;;  %4933 = vmatprep.subr.bf16.mxu0 %v5725_v20 }
 0x81c   :  { %5555 = vrot.lane.b32.xlu0 %v5554_v32, %s5996_s27  ;;  %v3199_v35 = vcombine.low %v3167_v47, %v3182_v50  ;;  %v3200_v39 = vcombine.high %v3167_v47, %v3182_v50  ;;  %v3248_v12 = vrot.slane %v3234_v49, %v6961_v53  ;;  %v3249_v41 = vcombine.low %v3226_v38, %v3241_v13  ;;  %v5726_v47 = vld [vmem:[#allocation7 + $0x138] sm:$0xff]   ;;  %v5729_v32 = vld [vmem:[#allocation7 + $0x240] sm:$0xff]  }
 0x81d   :  { %v7010_v40 = vrot.slane %v3183_v28, %v6965_v46  ;;  %v3198_v2 = vrot.slane %v3184_v31, %v6965_v46  ;;  %v3250_v52 = vcombine.high %v3226_v38, %v3241_v13  ;;  %v3315_v56 = vcombine.low %v3292_v16, %v3307_v58  ;;  %4934 = vmatpush3.bf16.msra.mxu0 %v5726_v47 }
 0x81e   :  { %v7016_v48 = vrot.slane %v3199_v35, %v6965_v46  ;;  %v3214_v63 = vrot.slane %v3200_v39, %v6965_v46  ;;  %v3265_v17 = vcombine.low %v3233_v37, %v3248_v12  ;;  %v3266_v0 = vcombine.high %v3233_v37, %v3248_v12  ;;  %4963 = vmatprep.subr.bf16.mxu0 %v5729_v32  ;;  %v5724_v32 = vld [vmem:[#allocation7 + $0xd0] sm:$0xff]  }
 0x81f   :  { %v3215_v4 = vcombine.high %v7010_v40, %v5989_v1  ;;  %v7028_v23 = vrot.slane %v3249_v41, %v6965_v46  ;;  %v3216_v11 = vcombine.high %v3198_v2, %v5989_v1  ;;  %v3264_v22 = vrot.slane %v3250_v52, %v6965_v46 }
 0x820   :  { %5560 = vrot.lane.b32.xlu0 %v5559_v62, %s5997_s28  ;;  %v3217_v55 = vcombine.high %v7016_v48, %v5989_v1  ;;  %v7031_v6 = vrot.slane %v3265_v17, %v6965_v46  ;;  %v3218_v30 = vcombine.high %v3214_v63, %v5989_v1  ;;  %v5564_v59 = vpack.i.bf16 %v3198_v2, %v3214_v63 }
 0x821   :  { %v3280_v9 = vrot.slane %v3266_v0, %v6965_v46  ;;  %v3281_v21 = vcombine.high %v7028_v23, %v5989_v1  ;;  %v3366_v26 = vcombine.high %v3086_v61, %v5989_v1  ;;  %v7050_v5 = vrot.slane %v3331_v7, %v6965_v46 }
 0x822   :  { %v5569_v51 = vpack.i.bf16 %v3215_v4, %v3217_v55  ;;  %v3283_v44 = vcombine.high %v7031_v6, %v5989_v1  ;;  %v5574_v27 = vpack.i.bf16 %v3216_v11, %v3218_v30  ;;  %v3365_v34 = vrot.slane %v3351_v14, %v6961_v53 }
 0x823   :  { %v3373_v43 = vrot.slane %v3086_v61, %v6961_v53  ;;  %v3284_v29 = vcombine.high %v3280_v9, %v5989_v1  ;;  %v3332_v36 = vcombine.high %v3299_v3, %v7013_v42  ;;  %v3380_v10 = vrot.slane %v3366_v26, %v6961_v53 }
 0x824   :  { %5570 = vrot.lane.b32.xlu1 %v5569_v51, %s5996_s27  ;;  %5565 = vrot.lane.b32.xlu0 %v5564_v59, %s5987_s13  ;;  %v5584_v24 = vpack.i.bf16 %v3281_v21, %v3283_v44  ;;  %v7058_v50 = vrot.slane %v3315_v56, %v6965_v46  ;;  %v3316_v38 = vcombine.high %v3292_v16, %v3307_v58 }
 0x825   :  { %v3282_v49 = vcombine.high %v3264_v22, %v5989_v1  ;;  %v3381_v33 = vcombine.low %v3358_v54, %v3373_v43  ;;  %v3397_v25 = vcombine.low %v3365_v34, %v3380_v10  ;;  %v5579_v28 = vpack.i.bf16 %v3264_v22, %v3280_v9 }
 0x826   :  { %v3349_v31 = vcombine.high %v7050_v5, %v5989_v1  ;;  %v3346_v13 = vrot.slane %v3332_v36, %v6965_v46  ;;  %v3398_v35 = vcombine.high %v3365_v34, %v3380_v10  ;;  %v3347_v39 = vcombine.high %v7058_v50, %v5989_v1  ;;  %v5720_v34 = vld [vmem:[#allocation7 + $0xc8] sm:$0xff]  }
 0x827   :  { %v5589_v53 = vpack.i.bf16 %v3282_v49, %v3284_v29  ;;  %v7067_v60 = vrot.slane %v3397_v25, %v6965_v46  ;;  %v3330_v37 = vrot.slane %v3316_v38, %v6965_v46  ;;  %v7075_v12 = vrot.slane %v3381_v33, %v6965_v46  ;;  %v5723_v36 = vld [vmem:[#allocation7 + $0x88] sm:$0xff]  }
 0x828   :  { %5575 = vrot.lane.b32.xlu1 %v5574_v27, %s5997_s28  ;;  %5585 = vrot.lane.b32.xlu0 %v5584_v24, %s5996_s27  ;;  %v3382_v62 = vcombine.high %v3358_v54, %v3373_v43  ;;  %v5594_v41 = vpack.i.bf16 %v3347_v39, %v3349_v31  ;;  %v3350_v15 = vcombine.high %v3346_v13, %v5989_v1 }
 0x829   :  { %v5599_v42 = vpack.i.bf16 %v3330_v37, %v3346_v13  ;;  %v3415_v63 = vcombine.high %v7067_v60, %v5989_v1  ;;  %v3412_v17 = vrot.slane %v3398_v35, %v6965_v46  ;;  %v3348_v0 = vcombine.high %v3330_v37, %v5989_v1 }
 0x82a   :  { %v3413_v18 = vcombine.high %v7075_v12, %v5989_v1  ;;  %v3396_v57 = vrot.slane %v3382_v62, %v6965_v46  ;;  %v5728_v62 = vld [vmem:[#allocation7 + $0xd8] sm:$0xff]  }
 0x82b   :  { %v5604_v2 = vpack.i.bf16 %v3348_v0, %v3350_v15  ;;  %v3416_v3 = vcombine.high %v3412_v17, %v5989_v1 }
 0x82c   :  { %5580 = vrot.lane.b32.xlu1 %v5579_v28, %s5987_s13  ;;  %5590 = vrot.lane.b32.xlu0 %v5589_v53, %s5997_s28  ;;  %v5609_v52 = vpack.i.bf16 %v3413_v18, %v3415_v63  ;;  %v3414_v58 = vcombine.high %v3396_v57, %v5989_v1  ;;  %v5614_v4 = vpack.i.bf16 %v3396_v57, %v3412_v17  ;;  %v5727_v53 = vld [vmem:[#allocation7 + $0x90] sm:$0xff]  }
 0x82e   :  { %v5619_v55 = vpack.i.bf16 %v3414_v58, %v3416_v3  ;;  %v5733_v58 = vld [vmem:[#allocation7 + $0x248] sm:$0xff]  }
 0x830   :  { %5595 = vrot.lane.b32.xlu1 %v5594_v41, %s5996_s27  ;;  %5600 = vrot.lane.b32.xlu0 %v5599_v42, %s5987_s13 }
 0x834   :  { %5605 = vrot.lane.b32.xlu1 %v5604_v2, %s5997_s28  ;;  %5610 = vrot.lane.b32.xlu0 %v5609_v52, %s5996_s27  ;;  %v5730_v2 = vld [vmem:[#allocation7 + $0x98] sm:$0xff]  }
 0x838   :  { %5615 = vrot.lane.b32.xlu1 %v5614_v4, %s5987_s13  ;;  %5620 = vrot.lane.b32.xlu0 %v5619_v55, %s5997_s28 }
 0x88c   :  { %v5551_v16 = vpop.permute.xlu1 %5550 }
 0x88d   :  { %v5553_v45 = vunpack.i.h.bf16 %v5551_v16  ;;  %v5552_v51 = vunpack.i.l.bf16 %v5551_v16  ;;  %v5736_v16 = vld [vmem:[#allocation7 + $0xe8] sm:$0xff]  }
 0x88e   :  { %v5556_v30 = vpop.permute.xlu0 %5555 }
 0x88f   :  { %v5558_v7 = vunpack.i.h.bf16 %v5556_v30  ;;  %v5557_v46 = vunpack.i.l.bf16 %v5556_v30  ;;  %v5734_v30 = vld [vmem:[#allocation7 + $0xa0] sm:$0xff]  }
 0x891   :  { %v3537_v61 = vsel %vm878_vm2, %v6977_v8, %v5558_v7  ;;  %v3540_v14 = vsel %vm878_vm2, %v6985_v19, %v5557_v46  ;;  %v5719_v19 = vld [vmem:[#allocation7 + $0x80] sm:$0xff]   ;;  %v5735_v46 = vld [vmem:[#allocation7 + $0x208] sm:$0xff]  }
 0x892   :  { %v5561_v59 = vpop.permute.xlu0 %5560  ;;  %v3538_v11 = vsel %vm1101_vm10, %v3537_v61, %v5553_v45  ;;  %v3541_v56 = vsel %vm1101_vm10, %v3540_v14, %v5552_v51  ;;  %v5737_v61 = vld [vmem:[#allocation7 + $0x250] sm:$0xff]   ;;  %v5738_v51 = vld [vmem:[#allocation7 + $0xa8] sm:$0xff]  }
 0x893   :  { %v5563_v44 = vunpack.i.h.bf16 %v5561_v59  ;;  %v5562_v9 = vunpack.i.l.bf16 %v5561_v59 }
 0x895   :  { %v3539_v54 = vsel %vm1104_vm11, %v3538_v11, %v5563_v44  ;;  %v3542_v20 = vsel %vm1104_vm11, %v3541_v56, %v5562_v9  ;;  %v5740_v9 = vld [vmem:[#allocation7 + $0xf0] sm:$0xff]  }
 0x896   :  { %v3567_v21 = vpack.c.bf16 %v3539_v54, %v3539_v54  ;;  %v7101_v22 = vpop.permute.xlu1 %5570  ;;  %v7103_v8 = vpop.permute.xlu0 %5565  ;;  %v3568_v26 = vpack.c.bf16 %v3542_v20, %v3542_v20  ;;  %v5739_v54 = vld [vmem:[#allocation7 + $0x210] sm:$0xff]  }
 0x897   :  { %v5572_v27 = vunpack.i.l.bf16 %v7101_v22  ;;  %v5567_v43 = vunpack.i.l.bf16 %v7103_v8  ;;  %v5573_v11 = vunpack.i.h.bf16 %v7101_v22  ;;  %v5744_v22 = vld [vmem:[#allocation7 + $0xf8] sm:$0xff]  }
 0x898   :  { %4256 = vmatprep.mubr.bf16.mxu1 %v3568_v26  ;;  %v5741_v26 = vld [vmem:[#allocation7 + $0x258] sm:$0xff]  }
 0x899   :  { %v3546_v47 = vsel %vm878_vm2, %v7016_v48, %v5572_v27  ;;  %4257 = vmatmul.mubr.bf16.vlgmr.msra.gmra.mrb[44].mxu1 %v3567_v21  ;;  %v5742_v27 = vld [vmem:[#allocation7 + $0xb0] sm:$0xff]  }
 0x89a   :  { %v7109_v24 = vpop.permute.xlu1 %5575  ;;  %4898 = vmatpush3.bf16.msra.mxu1 %v5719_v19  ;;  %v5586_v29 = vpop.permute.xlu0 %5585  ;;  %v3547_v38 = vsel %vm1101_vm10, %v3546_v47, %v5567_v43 }
 0x89b   :  { %v5577_v10 = vunpack.i.l.bf16 %v7109_v24  ;;  %4899 = vmatprep.subr.bf16.mxu1 %v5720_v34  ;;  %v5588_v49 = vunpack.i.h.bf16 %v5586_v29  ;;  %v5587_v33 = vunpack.i.l.bf16 %v5586_v29  ;;  %v5568_v34 = vunpack.i.h.bf16 %v7103_v8  ;;  %v5745_v8 = vld [vmem:[#allocation7 + $0x260] sm:$0xff]  }
 0x89c   :  { %v5578_v47 = vunpack.i.h.bf16 %v7109_v24 }
 0x89d   :  { %v3548_v25 = vsel %vm1104_vm11, %v3547_v38, %v5577_v10  ;;  %v3549_v41 = vsel %vm878_vm2, %v7028_v23, %v5588_v49  ;;  %v3552_v42 = vsel %vm878_vm2, %v7031_v6, %v5587_v33  ;;  %v5732_v23 = vld [vmem:[#allocation7 + $0xe0] sm:$0xff]   ;;  %v5746_v38 = vld [vmem:[#allocation7 + $0xb8] sm:$0xff]  }
 0x89e   :  { %v5581_v28 = vpop.permute.xlu1 %5580  ;;  %4900 = vmatpush3.bf16.msra.mxu1 %v5723_v36  ;;  %v5591_v31 = vpop.permute.xlu0 %5590  ;;  %v3570_v48 = vpack.c.bf16 %v3548_v25, %v3548_v25  ;;  %v5731_v6 = vld [vmem:[#allocation7 + $0x200] sm:$0xff]   ;;  %v5743_v36 = vld [vmem:[#allocation7 + $0x218] sm:$0xff]  }
 0x89f   :  { %v5583_v13 = vunpack.i.h.bf16 %v5581_v28  ;;  %v5582_v35 = vunpack.i.l.bf16 %v5581_v28  ;;  %v5593_v39 = vunpack.i.h.bf16 %v5591_v31  ;;  %v5592_v37 = vunpack.i.l.bf16 %v5591_v31  ;;  %4901 = vmatprep.subr.bf16.mxu1 %v5724_v32  ;;  %v5747_v25 = vld [vmem:[#allocation7 + $0x220] sm:$0xff]   ;;  %v5749_v28 = vld [vmem:[#allocation7 + $0x268] sm:$0xff]  }
 0x8a0   :  { %4296 = vmatprep.mubr.bf16.mxu1 %v3570_v48  ;;  %v5750_v31 = vld [vmem:[#allocation7 + $0x180] sm:$0xff]  }
 0x8a1   :  { %v3550_v15 = vsel %vm1101_vm10, %v3549_v41, %v5583_v13  ;;  %v3553_v63 = vsel %vm1101_vm10, %v3552_v42, %v5582_v35  ;;  %v5751_v35 = vld [vmem:[#allocation7 + $0x228] sm:$0xff]   ;;  %v5756_v42 = vld [vmem:[#allocation7 + $0x1d0] sm:$0xff]  }
 0x8a2   :  { %v3551_v17 = vsel %vm1104_vm11, %v3550_v15, %v5593_v39  ;;  %v7121_v0 = vpop.permute.xlu1 %5595  ;;  %4902 = vmatpush3.bf16.msra.mxu1 %v5727_v53  ;;  %v7123_v18 = vpop.permute.xlu0 %5600  ;;  %v3554_v57 = vsel %vm1104_vm11, %v3553_v63, %v5592_v37  ;;  %v5752_v53 = vld [vmem:[#allocation7 + $0x1c8] sm:$0xff]   ;;  %v5753_v39 = vld [vmem:[#allocation7 + $0x270] sm:$0xff]   ;;  %v5757_v63 = vld [vmem:[#allocation7 + $0x278] sm:$0xff]  }
 0x8a3   :  { %v3571_v52 = vpack.c.bf16 %v3551_v17, %v3551_v17  ;;  %4903 = vmatprep.subr.bf16.mxu1 %v5728_v62  ;;  %v3572_v3 = vpack.c.bf16 %v3554_v57, %v3554_v57  ;;  %v5597_v20 = vunpack.i.l.bf16 %v7121_v0  ;;  %v5602_v29 = vunpack.i.l.bf16 %v7123_v18  ;;  %v5754_v62 = vld [vmem:[#allocation7 + $0x188] sm:$0xff]   ;;  %v5755_v15 = vld [vmem:[#allocation7 + $0x230] sm:$0xff]  }
 0x8a5   :  { %4336 = vmatprep.mubr.bf16.mxu0 %v3572_v3  ;;  %v3558_v10 = vsel %vm878_vm2, %v7050_v5, %v5597_v20  ;;  %v5759_v3 = vld [vmem:[#allocation7 + $0x238] sm:$0xff]   ;;  %v5774_v20 = vld [vmem:[%s7231_s10 + $0x20] sm:$0xff]  }
 0x8a6   :  { %v7126_v4 = vpop.permute.xlu1 %5605  ;;  %4904 = vmatpush3.bf16.msra.mxu1 %v5730_v2  ;;  %v7128_v55 = vpop.permute.xlu0 %5610  ;;  %4337 = vmatmul.mubr.bf16.vlgmr.msra.gmra.mrb[64].mxu0 %v3571_v52  ;;  %v3559_v33 = vsel %vm1101_vm10, %v3558_v10, %v5602_v29  ;;  %v5758_v2 = vld [vmem:[#allocation7 + $0x190] sm:$0xff]  }
 0x8a7   :  { %4905 = vmatprep.subr.bf16.mxu1 %v5732_v23  ;;  %4964 = vmatpush3.bf16.msra.mxu0 %v5731_v6  ;;  %v5612_v7 = vunpack.i.l.bf16 %v7128_v55  ;;  %v5607_v32 = vunpack.i.l.bf16 %v7126_v4  ;;  %v5613_v37 = vunpack.i.h.bf16 %v7128_v55  ;;  %v5760_v23 = vld [vmem:[#allocation7 + $0x1d8] sm:$0xff]   ;;  %v5762_v55 = vld [vmem:[#allocation7 + $0x1e0] sm:$0xff]  }
 0x8a8   :  { %4965 = vmatprep.subr.bf16.mxu0 %v5733_v58  ;;  %v5761_v58 = vld [vmem:[#allocation7 + $0x198] sm:$0xff]  }
 0x8a9   :  { %v3564_v56 = vsel %vm878_vm2, %v7067_v60, %v5612_v7  ;;  %v3543_v60 = vsel %vm878_vm2, %v7010_v40, %v5573_v11  ;;  %v5748_v40 = vld [vmem:[#allocation7 + $0x1c0] sm:$0xff]   ;;  %v3560_v5 = vsel %vm1104_vm11, %v3559_v33, %v5607_v32  ;;  %v3561_v17 = vsel %vm878_vm2, %v7075_v12, %v5613_v37  ;;  %v5765_v7 = vld [vmem:[#allocation7 + $0x1a8] sm:$0xff]  }
 0x8aa   :  { %v7131_v14 = vpop.permute.xlu1 %5615  ;;  %4906 = vmatpush3.bf16.msra.mxu1 %v5734_v30  ;;  %v7133_v45 = vpop.permute.xlu0 %5620  ;;  %v3544_v49 = vsel %vm1101_vm10, %v3543_v60, %v5568_v34  ;;  %v3574_v13 = vpack.c.bf16 %v3560_v5, %v3560_v5  ;;  %v5763_v12 = vld [vmem:[#allocation7 + $0x1a0] sm:$0xff]  }
 0x8ab   :  { %v5617_v59 = vunpack.i.l.bf16 %v7131_v14  ;;  %v5622_v44 = vunpack.i.l.bf16 %v7133_v45  ;;  %4907 = vmatprep.subr.bf16.mxu1 %v5736_v16  ;;  %4966 = vmatpush3.bf16.msra.mxu0 %v5735_v46  ;;  %v3545_v24 = vsel %vm1104_vm11, %v3544_v49, %v5578_v47  ;;  %v5618_v41 = vunpack.i.h.bf16 %v7131_v14  ;;  %v5764_v16 = vld [vmem:[#allocation7 + $0x1e8] sm:$0xff]   ;;  %v5766_v46 = vld [vmem:[#allocation7 + $0x1f0] sm:$0xff]  }
 0x8ac   :  { %4967 = vmatprep.subr.bf16.mxu0 %v5737_v61  ;;  %v3569_v48 = vpack.c.bf16 %v3545_v24, %v3545_v24  ;;  %v5623_v57 = vunpack.i.h.bf16 %v7133_v45  ;;  %v5598_v61 = vunpack.i.h.bf16 %v7121_v0  ;;  %v5767_v14 = vld [vmem:[#allocation7 + $0x1b0] sm:$0xff]   ;;  %v5603_v45 = vunpack.i.h.bf16 %v7123_v18  ;;  %v5771_v18 = vld [vmem:[%s7231_s10 + $0x8] sm:$0xff]  }
 0x8ad   :  { %v3565_v21 = vsel %vm1101_vm10, %v3564_v56, %v5617_v59  ;;  %v3562_v52 = vsel %vm1101_vm10, %v3561_v17, %v5618_v41 }
 0x8ae   :  { %4908 = vmatpush3.bf16.msra.mxu1 %v5738_v51  ;;  %v3566_v19 = vsel %vm1104_vm11, %v3565_v21, %v5622_v44  ;;  %v3563_v6 = vsel %vm1104_vm11, %v3562_v52, %v5623_v57  ;;  %v5768_v51 = vld [vmem:[#allocation7 + $0x1f8] sm:$0xff]   ;;  %v3555_v59 = vsel %vm878_vm2, %v7058_v50, %v5598_v61  ;;  %v5608_v44 = vunpack.i.h.bf16 %v7126_v4  ;;  %v5770_v50 = vld [vmem:[%s7231_s10] sm:$0xff]   ;;  %v5772_v4 = vld [vmem:[%s7231_s10 + $0x10] sm:$0xff]  }
 0x8af   :  { %4909 = vmatprep.subr.bf16.mxu1 %v5740_v9  ;;  %v3576_v43 = vpack.c.bf16 %v3566_v19, %v3566_v19  ;;  %4968 = vmatpush3.bf16.msra.mxu0 %v5739_v54  ;;  %v3575_v30 = vpack.c.bf16 %v3563_v6, %v3563_v6  ;;  %v5769_v9 = vld [vmem:[#allocation7 + $0x1b8] sm:$0xff]   ;;  %v3556_v11 = vsel %vm1101_vm10, %v3555_v59, %v5603_v45  ;;  %v5775_v21 = vld [vmem:[%s7231_s10 + $0x28] sm:$0xff]   ;;  %v4782_v57 = vld [vmem:[%s7232_s11] ss:$0 sm:$0xff]  ;;  %vm4537_vm2 = vcmask 41984  }
 0x8b0   :  { %4969 = vmatprep.subr.bf16.mxu0 %v5741_v26  ;;  %v3557_v56 = vsel %vm1104_vm11, %v3556_v11, %v5608_v44  ;;  %v5773_v54 = vld [vmem:[%s7231_s10 + $0x18] sm:$0xff]   ;;  %v5776_v26 = vld [vmem:[%s7231_s10 + $0x30] sm:$0xff]  }
 0x8b1   :  { %4416 = vmatprep.mubr.bf16.mxu0 %v3576_v43  ;;  %v3573_v0 = vpack.c.bf16 %v3557_v56, %v3557_v56  ;;  %v5777_v19 = vld [vmem:[%s7231_s10 + $0x38] sm:$0xff]  }
 0x8b2   :  { %4910 = vmatpush3.bf16.msra.mxu1 %v5742_v27 }
 0x8b3   :  { %4911 = vmatprep.subr.bf16.mxu1 %v5744_v22  ;;  %4970 = vmatpush3.bf16.msra.mxu0 %v5743_v36 }
 0x8b4   :  { %4971 = vmatprep.subr.bf16.mxu0 %v5745_v8  ;;  %v4701_v8 = vld [vmem:[%s7230_s9] ss:$0 sm:$0xff] }
 0x8b6   :  { %4912 = vmatpush3.bf16.msra.mxu1 %v5746_v38 }
 0x8b7   :  { %4941 = vmatprep.subr.bf16.mxu1 %v5748_v40  ;;  %4972 = vmatpush3.bf16.msra.mxu0 %v5747_v25 }
 0x8b8   :  { %4973 = vmatprep.subr.bf16.mxu0 %v5749_v28 }
 0x8b9   :  { %4297 = vmatmul.mubr.bf16.vlgmr.msra.gmra.mrb[48].mxu1 %v3569_v48 }
 0x8ba   :  { %4942 = vmatpush3.bf16.msra.mxu1 %v5750_v31  ;;  %4376 = vmatprep.mubr.bf16.mxu1 %v3574_v13 }
 0x8bb   :  { %4943 = vmatprep.subr.bf16.mxu1 %v5752_v53  ;;  %4974 = vmatpush3.bf16.msra.mxu0 %v5751_v35 }
 0x8bc   :  { %4975 = vmatprep.subr.bf16.mxu0 %v5753_v39 }
 0x8be   :  { %4944 = vmatpush3.bf16.msra.mxu1 %v5754_v62 }
 0x8bf   :  { %4945 = vmatprep.subr.bf16.mxu1 %v5756_v42  ;;  %4976 = vmatpush3.bf16.msra.mxu0 %v5755_v15 }
 0x8c0   :  { %4977 = vmatprep.subr.bf16.mxu0 %v5757_v63 }
 0x8c2   :  { %4946 = vmatpush3.bf16.msra.mxu1 %v5758_v2 }
 0x8c3   :  { %4947 = vmatprep.subr.bf16.mxu1 %v5760_v23  ;;  %4978 = vmatpush3.bf16.msra.mxu0 %v5759_v3 }
 0x8c6   :  { %4948 = vmatpush3.bf16.msra.mxu1 %v5761_v58  ;;  %4417 = vmatmul.mubr.bf16.vlgmr.msra.gmra.mrb[68].mxu0 %v3575_v30 }
 0x8c7   :  { %4949 = vmatprep.subr.bf16.mxu1 %v5762_v55 }
 0x8ca   :  { %4950 = vmatpush3.bf16.msra.mxu1 %v5763_v12 }
 0x8cb   :  { %4951 = vmatprep.subr.bf16.mxu1 %v5764_v16 }
 0x8ce   :  { %4952 = vmatpush3.bf16.msra.mxu1 %v5765_v7 }
 0x8cf   :  { %4953 = vmatprep.subr.bf16.mxu1 %v5766_v46 }
 0x8d2   :  { %4954 = vmatpush3.bf16.msra.mxu1 %v5767_v14 }
 0x8d3   :  { %4955 = vmatprep.subr.bf16.mxu1 %v5768_v51 }
 0x8d6   :  { %4956 = vmatpush3.bf16.msra.mxu1 %v5769_v9 }
 0x8d7   :  { %5166 = vmatprep.subr.bf16.mxu1 %v5989_v1 }
 0x8d9   :  { %4377 = vmatmul.mubr.bf16.vlgmr.msra.gmra.mrb[52].mxu1 %v3573_v0 }
 0x8da   :  { %5182 = vmatprep.mubr.msk.bf16.mxu1 %vm5998_vm13, %v5989_v1  ;;  %5167 = vmatpush3.bf16.msra.mxu1 %v5770_v50 }
 0x8db   :  { %5168 = vmatprep.subr.bf16.mxu1 %v5989_v1 }
 0x8de   :  { %5169 = vmatpush3.bf16.msra.mxu1 %v5771_v18 }
 0x8df   :  { %5170 = vmatprep.subr.bf16.mxu1 %v5989_v1 }
 0x8e2   :  { %5171 = vmatpush3.bf16.msra.mxu1 %v5772_v4 }
 0x8e3   :  { %5172 = vmatprep.subr.bf16.mxu1 %v5989_v1 }
 0x8e6   :  { %5173 = vmatpush3.bf16.msra.mxu1 %v5773_v54 }
 0x8e7   :  { %5174 = vmatprep.subr.bf16.mxu1 %v5989_v1 }
 0x8ea   :  { %5175 = vmatpush3.bf16.msra.mxu1 %v5774_v20 }
 0x8eb   :  { %5176 = vmatprep.subr.bf16.mxu1 %v5989_v1 }
 0x8ee   :  { %5177 = vmatpush3.bf16.msra.mxu1 %v5775_v21 }
 0x8ef   :  { %5178 = vmatprep.subr.bf16.mxu1 %v5989_v1 }
 0x8f2   :  { %5179 = vmatpush3.bf16.msra.mxu1 %v5776_v26 }
 0x8f3   :  { %5180 = vmatprep.subr.bf16.mxu1 %v5989_v1 }
 0x8f6   :  { %5181 = vmatpush3.bf16.msra.mxu1 %v5777_v19 }
 0x96c   :  { %v4891_v27 = vpop.f32.mrb[44].mxu1 }
 0x96d   :  { %v4892_v34 = vpop.f32.mrb[45].mxu1 }
 0x96e   :  { %v4893_v43 = vadd.f32 %v4892_v34, %v4891_v27  ;;  %v4894_v22 = vpop.f32.mrb[46].mxu1 }
 0x96f   :  { %v4895_v60 = vpop.f32.mrb[47].mxu1 }
 0x970   :  { %v4259_v40 = vadd.f32 %v4893_v43, %v4701_v8 }
 0x979   :  { %v4935_v47 = vpop.f32.mrb[64].mxu0 }
 0x97a   :  { %v4936_v29 = vpop.f32.mrb[65].mxu0 }
 0x97b   :  { %v4937_v36 = vadd.f32 %v4936_v29, %v4935_v47  ;;  %v4938_v10 = vpop.f32.mrb[66].mxu0 }
 0x97c   :  { %v4939_v32 = vpop.f32.mrb[67].mxu0 }
 0x98c   :  { %v4913_v38 = vpop.f32.mrb[48].mxu1 }
 0x98d   :  { %v4914_v49 = vpop.f32.mrb[49].mxu1 }
 0x98e   :  { %v4915_v24 = vadd.f32 %v4914_v49, %v4913_v38  ;;  %v4916_v1 = vpop.f32.mrb[50].mxu1 }
 0x98f   :  { %v4917_v33 = vpop.f32.mrb[51].mxu1 }
 0x990   :  { %v4299_v25 = vadd.f32 %v4915_v24, %v4259_v40 }
 0x992   :  { %v4339_v28 = vadd.f32 %v4937_v36, %v4299_v25 }
 0x999   :  { %v4979_v5 = vpop.f32.mrb[68].mxu0 }
 0x99a   :  { %v4980_v31 = vpop.f32.mrb[69].mxu0 }
 0x99b   :  { %v4981_v48 = vadd.f32 %v4980_v31, %v4979_v5  ;;  %v4982_v53 = vpop.f32.mrb[70].mxu0 }
 0x99c   :  { %v4983_v13 = vpop.f32.mrb[71].mxu0 }
 0x9ac   :  { %v4957_v35 = vpop.f32.mrb[52].mxu1 }
 0x9ad   :  { %v4958_v39 = vpop.f32.mrb[53].mxu1 }
 0x9ae   :  { %v4959_v37 = vadd.f32 %v4958_v39, %v4957_v35  ;;  %v4960_v62 = vpop.f32.mrb[54].mxu1 }
 0x9af   :  { %v4961_v41 = vpop.f32.mrb[55].mxu1 }
 0x9b0   :  { %v4379_v42 = vadd.f32 %v4959_v37, %v4339_v28 }
 0x9b2   :  { %v4419_v15 = vadd.f32 %v4981_v48, %v4379_v42 }
 0x9b4   :  { %v4424_v63 = vmax.f32 %v4419_v15, 0.0 }
 0x9b6   :  { %v4425_v17 = vpack.c.bf16 %v4424_v63, %v4424_v63 }
 0x9b8   :  { %5183 = vmatmul.mubr.bf16.vlgmr.msra.gmra.mrb[56].mxu1 %v4425_v17 }
 0xa8b   :  { %v4531_v2 = vpop.f32.mrb[56].mxu1 }
 0xa8c   :  { %v4532_v52 = vadd.f32 %v4782_v57, %v4531_v2  ;;  %v5184_v23 = vpop.f32.mrb[57].mxu1 }
 0xa8d   :  { %v4534_v3 = vpop.f32.mrb[58].mxu1 }
 0xa8e   :  { %v5185_v6 = vpop.f32.mrb[59].mxu1  ;;  %4538 = vst.msk [vmem:[#allocation10] sm:$0x3] %vm4537_vm2, %v4532_v52 }
 0xa8f   :  { %5971 = shalt.err (!%p5968_p12)
}
 0xa90   :  { %s5972_s11 = scalar_lea.hbm %s7233_s12, 32 }
 0xa91   :  { %p5973_p13 = scmp.ne.s32.totalorder %s7233_s12, %s5972_s11  ;;  %p5976_p0 = scmp.lt.u32.totalorder %s5972_s11, %s7233_s12 }
 0xa93   :  { %p5978_p1 = pnand %p5976_p0, %p5973_p13 }
 0xa95   :  { %5981 = shalt.err (!%p5978_p1)
}
 0xa96   :  { %4548 = dma.vmem_to_hbm [thread:$0]  %s4546_s14, 32, %s7233_s12, [#allocation9]  }
 0xa97   :  { %5984 = dma.done.wait [#allocation9], 32  }
 0xa98   :  { %5985 = vsyncadd [#allocation9], 4294967264 }
 0xa99   :  { %4552 = vsyncpa [#allocation8], 1 }
 0xa9a   :  { %4553 = vsyncpa [#allocation9], 1 }

</bundles_post_ra>
